<compile_context>
chip_gen: v6e
topology: v6e:2x2x1
jax: 0.10.0
libtpu: 0.0.40
codegen_flags: <defaults>
</compile_context>

<pallas_src>
import numpy as np
import jax
import jax.numpy as jnp
from jax.experimental import pallas as pl
from jax.experimental.pallas import tpu as pltpu

SQRT1_2 = 0.7071067811865475
MXU_DTYPE = jnp.bfloat16              # operand dtype for the big feed-forward GEMMs
_VMEM_LIMIT = 64 * 1024 * 1024        # explicit scoped-VMEM budget (fits v7x's 64 MiB)


def _round_up(n, m):
    return ((n + m - 1) // m) * m


def _pick_lane_block(n, candidates=(2048, 1024, 512, 256, 128)):
    for bl in candidates:
        if n % bl == 0:
            return bl
    return n                           # fall back to full (lane dim must be full or %128)


def _gelu_exact(x):
    # matches torch.nn.functional.gelu default (erf form), kept in f32
    return 0.5 * x * (1.0 + jax.lax.erf(x * SQRT1_2))


# ----------------------------------------------------------------------------- GEMM

def _make_matmul_kernel(act, has_residual):
    def _finish(y, r_ref):
        if act == "gelu":
            y = _gelu_exact(y)
        if r_ref is not None:
            y = y + r_ref[...]
        return y

    if has_residual:
        def kernel(x_ref, w_ref, b_ref, r_ref, o_ref):
            y = jnp.dot(x_ref[...], w_ref[...],
                        preferred_element_type=jnp.float32) + b_ref[...]
            o_ref[...] = _finish(y, r_ref)
    else:
        def kernel(x_ref, w_ref, b_ref, o_ref):
            y = jnp.dot(x_ref[...], w_ref[...],
                        preferred_element_type=jnp.float32) + b_ref[...]
            o_ref[...] = _finish(y, None)
    return kernel


def pallas_matmul(x, w, b, act=None, residual=None, block_m=256, in_dtype=MXU_DTYPE):
    """y = act(x @ w + b) (+ residual).  x: (M,K), w: (K,N), b: (N,).

    Tiled over M with a 1-D grid marked "parallel" (megacore sharding on v7x); K and N
    are kept whole (weight tiles here are at most a few MB).  MXU operands are cast to
    bf16; accumulation and the bias/GELU/residual epilogue stay in f32."""
    M, K = x.shape
    N = w.shape[1]
    bm = min(block_m, _round_up(M, 8))
    Mp = _round_up(M, bm)

    x = x.astype(in_dtype)
    w = w.astype(in_dtype)
    b = b.reshape(1, N).astype(jnp.float32)
    if residual is not None:
        residual = residual.astype(jnp.float32)
    if Mp != M:
        x = jnp.pad(x, ((0, Mp - M), (0, 0)))
        if residual is not None:
            residual = jnp.pad(residual, ((0, Mp - M), (0, 0)))

    in_specs = [
        pl.BlockSpec((bm, K), lambda i: (i, 0)),
        pl.BlockSpec((K, N), lambda i: (0, 0)),
        pl.BlockSpec((1, N), lambda i: (0, 0)),
    ]
    args = [x, w, b]
    if residual is not None:
        in_specs.append(pl.BlockSpec((bm, N), lambda i: (i, 0)))
        args.append(residual)

    out = pl.pallas_call(
        _make_matmul_kernel(act, residual is not None),
        out_shape=jax.ShapeDtypeStruct((Mp, N), jnp.float32),
        grid=(Mp // bm,),
        in_specs=in_specs,
        out_specs=pl.BlockSpec((bm, N), lambda i: (i, 0)),
        compiler_params=pltpu.CompilerParams(
            dimension_semantics=("parallel",),
            vmem_limit_bytes=_VMEM_LIMIT),
    )(*args)
    return out[:M] if Mp != M else out


# ----------------------------------------------------------------------------- LayerNorm + GELU

def _ln_gelu_rows_kernel(x_ref, g_ref, b_ref, o_ref):
    x = x_ref[...]
    mu = jnp.mean(x, axis=-1, keepdims=True)
    var = jnp.mean(jnp.square(x - mu), axis=-1, keepdims=True)   # biased, like torch LN
    y = (x - mu) * jax.lax.rsqrt(var + 1e-5) * g_ref[...] + b_ref[...]
    o_ref[...] = _gelu_exact(y)


def pallas_ln_gelu_rows(x2d, gamma, beta, block_m=512):
    """LayerNorm over the last dim + GELU, tiled over rows."""
    M, D = x2d.shape
    bm = min(block_m, _round_up(M, 8))
    Mp = _round_up(M, bm)
    xp = jnp.pad(x2d, ((0, Mp - M), (0, 0))) if Mp != M else x2d
    out = pl.pallas_call(
        _ln_gelu_rows_kernel,
        out_shape=jax.ShapeDtypeStruct((Mp, D), jnp.float32),
        grid=(Mp // bm,),
        in_specs=[pl.BlockSpec((bm, D), lambda i: (i, 0)),
                  pl.BlockSpec((1, D), lambda i: (0, 0)),
                  pl.BlockSpec((1, D), lambda i: (0, 0))],
        out_specs=pl.BlockSpec((bm, D), lambda i: (i, 0)),
        compiler_params=pltpu.CompilerParams(dimension_semantics=("parallel",)),
    )(xp, gamma.reshape(1, D).astype(jnp.float32),
      beta.reshape(1, D).astype(jnp.float32))
    return out[:M] if Mp != M else out


def _ln_gelu_feat_kernel(x_ref, g_ref, b_ref, o_ref):
    x = x_ref[...]                                   # (1, F, lane_block)
    mu = jnp.mean(x, axis=1, keepdims=True)
    var = jnp.mean(jnp.square(x - mu), axis=1, keepdims=True)
    y = (x - mu) * jax.lax.rsqrt(var + 1e-5) * g_ref[...] + b_ref[...]
    o_ref[...] = _gelu_exact(y)


def cnn_ln_gelu(x, gamma, beta):
    """CNNLayerNorm + GELU on NHWC activations: LN over the F axis of (B, F, T, C),
    computed on a lane-dense (B, F, T*C) view — no HBM transposes."""
    B, F, T, C = x.shape
    TC = T * C
    bl = _pick_lane_block(TC)
    xv = x.reshape(B, F, TC)
    y = pl.pallas_call(
        _ln_gelu_feat_kernel,
        out_shape=jax.ShapeDtypeStruct((B, F, TC), jnp.float32),
        grid=(B, TC // bl),
        in_specs=[pl.BlockSpec((1, F, bl), lambda b, c: (b, 0, c)),
                  pl.BlockSpec((1, F, 1), lambda b, c: (0, 0, 0)),
                  pl.BlockSpec((1, F, 1), lambda b, c: (0, 0, 0))],
        out_specs=pl.BlockSpec((1, F, bl), lambda b, c: (b, 0, c)),
        compiler_params=pltpu.CompilerParams(
            dimension_semantics=("parallel", "parallel")),
    )(xv, gamma.reshape(1, F, 1).astype(jnp.float32),
      beta.reshape(1, F, 1).astype(jnp.float32))
    return y.reshape(B, F, T, C)


# ----------------------------------------------------------------------------- bidirectional GRU

def _bigru_step_kernel(gxf_ref, gxb_ref, whhf_ref, whhb_ref, bhnf_ref, bhnb_ref,
                       of_ref, ob_ref, hf_ref, hb_ref):
    H = hf_ref.shape[-1]

    @pl.when(pl.program_id(0) == 0)
    def _():
        hf_ref[...] = jnp.zeros_like(hf_ref)
        hb_ref[...] = jnp.zeros_like(hb_ref)

    def direction(gx_ref, whh_ref, bhn_ref, h_ref, o_ref):
        h = h_ref[...]                                                      # (N, H)
        gh = jnp.dot(h, whh_ref[...], preferred_element_type=jnp.float32)   # (N, 3H), one MXU push
        gx = gx_ref[0]                                                      # (N, 3H): x@Wih^T + b_ih + [b_hr, b_hz, 0]
        r = jax.nn.sigmoid(gx[:, :H] + gh[:, :H])
        z = jax.nn.sigmoid(gx[:, H:2 * H] + gh[:, H:2 * H])
        n = jnp.tanh(gx[:, 2 * H:] + r * (gh[:, 2 * H:] + bhn_ref[...]))
        h_new = (1.0 - z) * n + z * h
        h_ref[...] = h_new
        o_ref[0] = h_new

    direction(gxf_ref, whhf_ref, bhnf_ref, hf_ref, of_ref)       # time t
    direction(gxb_ref, whhb_ref, bhnb_ref, hb_ref, ob_ref)       # time L-1-t


def bigru(x_seq, lp):
    """Bidirectional GRU over axis 0 of x_seq: (L, N, D) -> (L, N, 2H).
    Both directions run in one pallas_call with grid=(L,): the forward direction
    consumes step t, the backward direction step L-1-t (via the BlockSpec index
    maps), with both hidden states carried in VMEM scratch."""
    L, N, D = x_seq.shape
    H = lp['whh_f'].shape[1]
    x2d = x_seq.reshape(L * N, D)

    def prep(wih, bih, whh, bhh):
        # fold b_hh[r], b_hh[z] into the precomputed input projection; keep b_hh[n]
        gx_bias = bih + jnp.concatenate([bhh[:2 * H], jnp.zeros((H,), bhh.dtype)])
        gx = pallas_matmul(x2d, wih.T, gx_bias).reshape(L, N, 3 * H)
        return gx, whh.T.astype(jnp.float32), bhh[2 * H:].reshape(1, H).astype(jnp.float32)

    gx_f, whhf_t, bhnf = prep(lp['wih_f'], lp['bih_f'], lp['whh_f'], lp['bhh_f'])
    gx_b, whhb_t, bhnb = prep(lp['wih_b'], lp['bih_b'], lp['whh_b'], lp['bhh_b'])

    out_f, out_b = pl.pallas_call(
        _bigru_step_kernel,
        out_shape=(jax.ShapeDtypeStruct((L, N, H), jnp.float32),
                   jax.ShapeDtypeStruct((L, N, H), jnp.float32)),
        grid=(L,),
        in_specs=[
            pl.BlockSpec((1, N, 3 * H), lambda t: (t, 0, 0)),
            pl.BlockSpec((1, N, 3 * H), lambda t: (L - 1 - t, 0, 0)),
            pl.BlockSpec((H, 3 * H), lambda t: (0, 0)),
            pl.BlockSpec((H, 3 * H), lambda t: (0, 0)),
            pl.BlockSpec((1, H), lambda t: (0, 0)),
            pl.BlockSpec((1, H), lambda t: (0, 0)),
        ],
        out_specs=(pl.BlockSpec((1, N, H), lambda t: (t, 0, 0)),
                   pl.BlockSpec((1, N, H), lambda t: (L - 1 - t, 0, 0))),
        scratch_shapes=[pltpu.VMEM((N, H), jnp.float32),
                        pltpu.VMEM((N, H), jnp.float32)],
        compiler_params=pltpu.CompilerParams(
            dimension_semantics=("arbitrary",),
            vmem_limit_bytes=_VMEM_LIMIT),
    )(gx_f, gx_b, whhf_t, whhb_t, bhnf, bhnb)
    return jnp.concatenate([out_f, out_b], axis=-1)


# ----------------------------------------------------------------------------- pooling

def _mean_time_kernel(x_ref, o_ref):
    # AvgPool1d over the full time axis == mean over axis 1
    o_ref[...] = jnp.mean(x_ref[...], axis=1, keepdims=True)


def pallas_mean_time(x):
    B, T, R = x.shape
    return pl.pallas_call(
        _mean_time_kernel,
        out_shape=jax.ShapeDtypeStruct((B, 1, R), jnp.float32),
        grid=(B,),
        in_specs=[pl.BlockSpec((1, T, R), lambda b: (b, 0, 0))],
        out_specs=pl.BlockSpec((1, 1, R), lambda b: (b, 0, 0)),
        compiler_params=pltpu.CompilerParams(dimension_semantics=("parallel",)),
    )(x)


# ----------------------------------------------------------------------------- conv glue (NHWC)

def _im2col_nhwc(x, kh, kw, stride, pad):
    """(B, H, W, C) -> (B*Ho*Wo, kh*kw*C) patches via one channel-axis concat.
    # TODO(synk): fold the patch gather into the GEMM kernel (halo-aware BlockSpec)
    # to avoid the kh*kw activation blow-up at production sizes."""
    B, H, W, C = x.shape
    xp = jnp.pad(x, ((0, 0), (pad, pad), (pad, pad), (0, 0)))
    Ho = (H + 2 * pad - kh) // stride + 1
    Wo = (W + 2 * pad - kw) // stride + 1
    cols = []
    for i in range(kh):
        for j in range(kw):
            cols.append(xp[:, i:i + (Ho - 1) * stride + 1:stride,
                           j:j + (Wo - 1) * stride + 1:stride, :])
    patches = jnp.concatenate(cols, axis=-1)     # (B, Ho, Wo, kh*kw*C), order (i, j, c)
    return patches.reshape(B * Ho * Wo, kh * kw * C), Ho, Wo


def conv2d_pallas(x, w, b, stride, pad, residual=None):
    """NHWC conv via im2col + tiled Pallas GEMM; optional fused residual add.
    `w` is in PyTorch layout (Cout, Cin, kh, kw)."""
    B, H, W, Cin = x.shape
    Cout, _, kh, kw = w.shape
    cols, Ho, Wo = _im2col_nhwc(x.astype(MXU_DTYPE), kh, kw, stride, pad)
    wmat = jnp.transpose(w, (2, 3, 1, 0)).reshape(kh * kw * Cin, Cout)
    res2d = residual.reshape(B * Ho * Wo, Cout) if residual is not None else None
    out = pallas_matmul(cols, wmat, b, residual=res2d)
    return out.reshape(B, Ho, Wo, Cout)


# ----------------------------------------------------------------------------- model

def audio_model_forward(x, params):
    # x: (B, 3, F_in, T_in) in PyTorch NCHW; CNN stage runs in NHWC (B, F, T, C).
    x = jnp.transpose(x, (0, 2, 3, 1))
    x = conv2d_pallas(x, params['cnn_w'], params['cnn_b'], stride=2, pad=1)

    for lp in params['rescnn']:
        residual = x
        y = cnn_ln_gelu(x, lp['ln1_g'], lp['ln1_b'])
        y = conv2d_pallas(y, lp['cnn1_w'], lp['cnn1_b'], stride=1, pad=1)
        y = cnn_ln_gelu(y, lp['ln2_g'], lp['ln2_b'])
        x = conv2d_pallas(y, lp['cnn2_w'], lp['cnn2_b'], stride=1, pad=1,
                          residual=residual)                    # fused "x += residual"

    B, Fp, Tp, C = x.shape
    # PyTorch: view(B, C*F', T').transpose(1,2) -> per-(b,t) features ordered (c, f).
    # Ours is NHWC -> features ordered (f, c); permute the fc weight columns instead.
    x = jnp.transpose(x, (0, 2, 1, 3)).reshape(B * Tp, Fp * C)
    R = params['fc_w'].shape[0]
    fc_w = params['fc_w'].reshape(R, C, Fp).transpose(0, 2, 1).reshape(R, Fp * C)
    x = pallas_matmul(x, fc_w.T, params['fc_b']).reshape(B, Tp, R)

    for i, lp in enumerate(params['birnn']):
        D = x.shape[-1]
        x2 = pallas_ln_gelu_rows(x.reshape(-1, D), lp['ln_g'], lp['ln_b']).reshape(x.shape)
        if i == 0:
            # batch_first=True: scan over the time axis
            y = bigru(jnp.transpose(x2, (1, 0, 2)), lp)         # (T, B, 2H)
            x = jnp.transpose(y, (1, 0, 2))                     # (B, T, 2H)
        else:
            # batch_first=False quirk: PyTorch scans over the leading (batch) axis
            x = bigru(x2, lp)                                   # (B, T, 2H)

    B_, T_, D2 = x.shape
    x = pallas_matmul(x.reshape(B_ * T_, D2), params['proc_w'].T, params['proc_b'],
                      act="gelu").reshape(B_, T_, -1)
    x = pallas_mean_time(x)                                     # (B, 1, R)
    x = pallas_matmul(x.reshape(B_, -1), params['cls_w'].T, params['cls_b'])
    return x                                                    # (B, out_dim) == squeeze(1)


# ----------------------------------------------------------------------------- params

def init_params(key, n_cnn_layers, n_rnn_layers, rnn_dim, out_dim, n_feats_in):
    F = n_feats_in // 2
    keys = iter(jax.random.split(key, 128))

    def u(shape, fan_in):
        bound = 1.0 / np.sqrt(fan_in)
        return jax.random.uniform(next(keys), shape, jnp.float32, -bound, bound)

    p = {
        'cnn_w': u((32, 3, 3, 3), 3 * 9),
        'cnn_b': u((32,), 3 * 9),
        'rescnn': [],
        'birnn': [],
    }
    for _ in range(n_cnn_layers):
        p['rescnn'].append({
            'ln1_g': jnp.ones((F,), jnp.float32), 'ln1_b': jnp.zeros((F,), jnp.float32),
            'cnn1_w': u((32, 32, 3, 3), 32 * 9), 'cnn1_b': u((32,), 32 * 9),
            'ln2_g': jnp.ones((F,), jnp.float32), 'ln2_b': jnp.zeros((F,), jnp.float32),
            'cnn2_w': u((32, 32, 3, 3), 32 * 9), 'cnn2_b': u((32,), 32 * 9),
        })
    p['fc_w'] = u((rnn_dim, 32 * F), 32 * F)
    p['fc_b'] = u((rnn_dim,), 32 * F)
    for i in range(n_rnn_layers):
        D = rnn_dim if i == 0 else rnn_dim * 2
        H = rnn_dim
        p['birnn'].append({
            'ln_g': jnp.ones((D,), jnp.float32), 'ln_b': jnp.zeros((D,), jnp.float32),
            'wih_f': u((3 * H, D), H), 'whh_f': u((3 * H, H), H),
            'bih_f': u((3 * H,), H), 'bhh_f': u((3 * H,), H),
            'wih_b': u((3 * H, D), H), 'whh_b': u((3 * H, H), H),
            'bih_b': u((3 * H,), H), 'bhh_b': u((3 * H,), H),
        })
    p['proc_w'] = u((rnn_dim, rnn_dim * 2), rnn_dim * 2)
    p['proc_b'] = u((rnn_dim,), rnn_dim * 2)
    p['cls_w'] = u((out_dim, rnn_dim), rnn_dim)
    p['cls_b'] = u((out_dim,), rnn_dim)
    return p


# ----------------------------------------------------------------------------- main

if __name__ == "__main__":
    # Small, consistent hyperparameters (module defaults scaled down):
    B, F_in, T_in = 2, 16, 16          # input: (B, 3, n_feats, time)
    n_cnn_layers, n_rnn_layers = 2, 2
    rnn_dim, out_dim = 32, 16

    key = jax.random.PRNGKey(0)
    kx, kp = jax.random.split(key)
    x = jax.random.normal(kx, (B, 3, F_in, T_in), jnp.float32)
    params = init_params(kp, n_cnn_layers, n_rnn_layers, rnn_dim, out_dim, F_in)

    forward = jax.jit(audio_model_forward)
    out = forward(x, params)
    out = jax.block_until_ready(out)
    assert out.shape == (B, out_dim), out.shape
    assert jnp.all(jnp.isfinite(out))
    print("KERNEL_OK")
</pallas_src>

<mosaic_0001>
module attributes {stable_mosaic.version = 11 : i64} {
  func.func @kernel(%arg0: i32, %arg1: memref<128x27xbf16, #tpu.memory_space<vmem>>, %arg2: memref<27x32xbf16, #tpu.memory_space<vmem>>, %arg3: memref<1x32xf32, #tpu.memory_space<vmem>>, %arg4: memref<128x32xf32, #tpu.memory_space<vmem>>) attributes {dimension_semantics = [#tpu.dimension_semantics<parallel>], iteration_bounds = array<i64: 1>, scalar_prefetch = 0 : i64, scratch_operands = 0 : i64, tpu.core_type = #tpu.core_type<tc>, window_params = [{transform_indices = @transform_0, window_bounds = array<i64: 128, 27>}, {pipeline_mode = #tpu.pipeline_mode<synchronous>, transform_indices = @transform_1, window_bounds = array<i64: 27, 32>}, {pipeline_mode = #tpu.pipeline_mode<synchronous>, transform_indices = @transform_2, window_bounds = array<i64: 1, 32>}, {transform_indices = @transform_3, window_bounds = array<i64: 128, 32>}]} {
    %c0 = arith.constant 0 : index
    %c0_0 = arith.constant 0 : index
    %0 = vector.load %arg1[%c0, %c0_0] : memref<128x27xbf16, #tpu.memory_space<vmem>>, vector<128x27xbf16>
    %c0_1 = arith.constant 0 : index
    %c0_2 = arith.constant 0 : index
    %1 = vector.load %arg2[%c0_1, %c0_2] : memref<27x32xbf16, #tpu.memory_space<vmem>>, vector<27x32xbf16>
    %cst = arith.constant dense<0.000000e+00> : vector<128x32xf32>
    %2 = tpu.matmul %0, %1, %cst {dimension_numbers = #tpu.dot_dimension_numbers<[1], [0], [0], [1], [0, 0, 1, 1], [], []>} : vector<128x27xbf16>, vector<27x32xbf16>, vector<128x32xf32> -> vector<128x32xf32>
    %c0_3 = arith.constant 0 : index
    %c0_4 = arith.constant 0 : index
    %3 = vector.load %arg3[%c0_3, %c0_4] : memref<1x32xf32, #tpu.memory_space<vmem>>, vector<1x32xf32>
    %4 = vector.broadcast %3 : vector<1x32xf32> to vector<128x32xf32>
    %5 = arith.addf %2, %4 : vector<128x32xf32>
    %c0_5 = arith.constant 0 : index
    %c0_6 = arith.constant 0 : index
    %6 = vector.load %arg4[%c0_5, %c0_6] : memref<128x32xf32, #tpu.memory_space<vmem>>, vector<128x32xf32>
    tpu.vector_store %arg4[%c0_5, %c0_6], %5 {strides = array<i32>} : memref<128x32xf32, #tpu.memory_space<vmem>>, vector<128x32xf32>,
    return
  }
  func.func @transform_0(%arg0: i32) -> (i32, i32) {
    %c0_i32 = arith.constant 0 : i32
    %c0_i32_0 = arith.constant 0 : i32
    return %arg0, %c0_i32 : i32, i32
  }
  func.func @transform_1(%arg0: i32) -> (i32, i32) {
    %c0_i32 = arith.constant 0 : i32
    %c0_i32_0 = arith.constant 0 : i32
    %c0_i32_1 = arith.constant 0 : i32
    return %c0_i32, %c0_i32_0 : i32, i32
  }
  func.func @transform_2(%arg0: i32) -> (i32, i32) {
    %c0_i32 = arith.constant 0 : i32
    %c0_i32_0 = arith.constant 0 : i32
    %c0_i32_1 = arith.constant 0 : i32
    return %c0_i32, %c0_i32_0 : i32, i32
  }
  func.func @transform_3(%arg0: i32) -> (i32, i32) {
    %c0_i32 = arith.constant 0 : i32
    %c0_i32_0 = arith.constant 0 : i32
    return %arg0, %c0_i32 : i32, i32
  }
}

module attributes {stable_mosaic.version = 11 : i64} {
  func.func @_ln_gelu_feat_kernel(%arg0: i32, %arg1: i32, %arg2: memref<1x8x256xf32, #tpu.memory_space<vmem>>, %arg3: memref<1x8x1xf32, #tpu.memory_space<vmem>>, %arg4: memref<1x8x1xf32, #tpu.memory_space<vmem>>, %arg5: memref<1x8x256xf32, #tpu.memory_space<vmem>>) attributes {dimension_semantics = [#tpu.dimension_semantics<parallel>, #tpu.dimension_semantics<parallel>], iteration_bounds = array<i64: 2, 1>, scalar_prefetch = 0 : i64, scratch_operands = 0 : i64, tpu.core_type = #tpu.core_type<tc>, window_params = [{transform_indices = @transform_0, window_bounds = array<i64: 1, 8, 256>}, {pipeline_mode = #tpu.pipeline_mode<synchronous>, transform_indices = @transform_1, window_bounds = array<i64: 1, 8, 1>}, {pipeline_mode = #tpu.pipeline_mode<synchronous>, transform_indices = @transform_2, window_bounds = array<i64: 1, 8, 1>}, {transform_indices = @transform_3, window_bounds = array<i64: 1, 8, 256>}]} {
    %c0 = arith.constant 0 : index
    %c0_0 = arith.constant 0 : index
    %c0_1 = arith.constant 0 : index
    %0 = vector.load %arg2[%c0, %c0_0, %c0_1] : memref<1x8x256xf32, #tpu.memory_space<vmem>>, vector<1x8x256xf32>
    %cst = arith.constant dense<0.000000e+00> : vector<1x256xf32>
    %1 = vector.multi_reduction <add>, %0, %cst [1] : vector<1x8x256xf32> to vector<1x256xf32>
    %2 = vector.shape_cast %1 : vector<1x256xf32> to vector<1x1x256xf32>
    %cst_2 = arith.constant 8.000000e+00 : f32
    %3 = vector.broadcast %cst_2 : f32 to vector<1x1x256xf32>
    %4 = arith.divf %2, %3 : vector<1x1x256xf32>
    %5 = vector.broadcast %4 : vector<1x1x256xf32> to vector<1x8x256xf32>
    %6 = arith.subf %0, %5 : vector<1x8x256xf32>
    %7 = arith.mulf %6, %6 : vector<1x8x256xf32>
    %cst_3 = arith.constant dense<0.000000e+00> : vector<1x256xf32>
    %8 = vector.multi_reduction <add>, %7, %cst_3 [1] : vector<1x8x256xf32> to vector<1x256xf32>
    %9 = vector.shape_cast %8 : vector<1x256xf32> to vector<1x1x256xf32>
    %cst_4 = arith.constant 8.000000e+00 : f32
    %10 = vector.broadcast %cst_4 : f32 to vector<1x1x256xf32>
    %11 = arith.divf %9, %10 : vector<1x1x256xf32>
    %12 = vector.broadcast %4 : vector<1x1x256xf32> to vector<1x8x256xf32>
    %13 = arith.subf %0, %12 : vector<1x8x256xf32>
    %cst_5 = arith.constant 9.99999974E-6 : f32
    %14 = vector.broadcast %cst_5 : f32 to vector<1x1x256xf32>
    %15 = arith.addf %11, %14 : vector<1x1x256xf32>
    %16 = math.rsqrt %15 : vector<1x1x256xf32>
    %17 = vector.broadcast %16 : vector<1x1x256xf32> to vector<1x8x256xf32>
    %18 = arith.mulf %13, %17 : vector<1x8x256xf32>
    %c0_6 = arith.constant 0 : index
    %c0_7 = arith.constant 0 : index
    %c0_8 = arith.constant 0 : index
    %19 = vector.load %arg3[%c0_6, %c0_7, %c0_8] : memref<1x8x1xf32, #tpu.memory_space<vmem>>, vector<1x8x1xf32>
    %20 = vector.broadcast %19 : vector<1x8x1xf32> to vector<1x8x256xf32>
    %21 = arith.mulf %18, %20 : vector<1x8x256xf32>
    %c0_9 = arith.constant 0 : index
    %c0_10 = arith.constant 0 : index
    %c0_11 = arith.constant 0 : index
    %22 = vector.load %arg4[%c0_9, %c0_10, %c0_11] : memref<1x8x1xf32, #tpu.memory_space<vmem>>, vector<1x8x1xf32>
    %23 = vector.broadcast %22 : vector<1x8x1xf32> to vector<1x8x256xf32>
    %24 = arith.addf %21, %23 : vector<1x8x256xf32>
    %cst_12 = arith.constant 5.000000e-01 : f32
    %25 = vector.broadcast %cst_12 : f32 to vector<1x8x256xf32>
    %26 = arith.mulf %25, %24 : vector<1x8x256xf32>
    %cst_13 = arith.constant 0.707106769 : f32
    %27 = vector.broadcast %cst_13 : f32 to vector<1x8x256xf32>
    %28 = arith.mulf %24, %27 : vector<1x8x256xf32>
    %29 = math.erf %28 : vector<1x8x256xf32>
    %cst_14 = arith.constant 1.000000e+00 : f32
    %30 = vector.broadcast %cst_14 : f32 to vector<1x8x256xf32>
    %31 = arith.addf %30, %29 : vector<1x8x256xf32>
    %32 = arith.mulf %26, %31 : vector<1x8x256xf32>
    %c0_15 = arith.constant 0 : index
    %c0_16 = arith.constant 0 : index
    %c0_17 = arith.constant 0 : index
    %33 = vector.load %arg5[%c0_15, %c0_16, %c0_17] : memref<1x8x256xf32, #tpu.memory_space<vmem>>, vector<1x8x256xf32>
    tpu.vector_store %arg5[%c0_15, %c0_16, %c0_17], %32 {strides = array<i32>} : memref<1x8x256xf32, #tpu.memory_space<vmem>>, vector<1x8x256xf32>,
    return
  }
  func.func @transform_0(%arg0: i32, %arg1: i32) -> (i32, i32, i32) {
    %c0_i32 = arith.constant 0 : i32
    %c0_i32_0 = arith.constant 0 : i32
    return %arg0, %c0_i32, %arg1 : i32, i32, i32
  }
  func.func @transform_1(%arg0: i32, %arg1: i32) -> (i32, i32, i32) {
    %c0_i32 = arith.constant 0 : i32
    %c0_i32_0 = arith.constant 0 : i32
    %c0_i32_1 = arith.constant 0 : i32
    %c0_i32_2 = arith.constant 0 : i32
    return %c0_i32, %c0_i32_0, %c0_i32_1 : i32, i32, i32
  }
  func.func @transform_2(%arg0: i32, %arg1: i32) -> (i32, i32, i32) {
    %c0_i32 = arith.constant 0 : i32
    %c0_i32_0 = arith.constant 0 : i32
    %c0_i32_1 = arith.constant 0 : i32
    %c0_i32_2 = arith.constant 0 : i32
    return %c0_i32, %c0_i32_0, %c0_i32_1 : i32, i32, i32
  }
  func.func @transform_3(%arg0: i32, %arg1: i32) -> (i32, i32, i32) {
    %c0_i32 = arith.constant 0 : i32
    %c0_i32_0 = arith.constant 0 : i32
    return %arg0, %c0_i32, %arg1 : i32, i32, i32
  }
}

module attributes {stable_mosaic.version = 11 : i64} {
  func.func @kernel(%arg0: i32, %arg1: memref<128x288xbf16, #tpu.memory_space<vmem>>, %arg2: memref<288x32xbf16, #tpu.memory_space<vmem>>, %arg3: memref<1x32xf32, #tpu.memory_space<vmem>>, %arg4: memref<128x32xf32, #tpu.memory_space<vmem>>, %arg5: memref<128x32xf32, #tpu.memory_space<vmem>>) attributes {dimension_semantics = [#tpu.dimension_semantics<parallel>], iteration_bounds = array<i64: 1>, scalar_prefetch = 0 : i64, scratch_operands = 0 : i64, tpu.core_type = #tpu.core_type<tc>, window_params = [{transform_indices = @transform_0, window_bounds = array<i64: 128, 288>}, {pipeline_mode = #tpu.pipeline_mode<synchronous>, transform_indices = @transform_1, window_bounds = array<i64: 288, 32>}, {pipeline_mode = #tpu.pipeline_mode<synchronous>, transform_indices = @transform_2, window_bounds = array<i64: 1, 32>}, {transform_indices = @transform_3, window_bounds = array<i64: 128, 32>}, {transform_indices = @transform_4, window_bounds = array<i64: 128, 32>}]} {
    %c0 = arith.constant 0 : index
    %c0_0 = arith.constant 0 : index
    %0 = vector.load %arg1[%c0, %c0_0] : memref<128x288xbf16, #tpu.memory_space<vmem>>, vector<128x288xbf16>
    %c0_1 = arith.constant 0 : index
    %c0_2 = arith.constant 0 : index
    %1 = vector.load %arg2[%c0_1, %c0_2] : memref<288x32xbf16, #tpu.memory_space<vmem>>, vector<288x32xbf16>
    %cst = arith.constant dense<0.000000e+00> : vector<128x32xf32>
    %2 = tpu.matmul %0, %1, %cst {dimension_numbers = #tpu.dot_dimension_numbers<[1], [0], [0], [1], [0, 0, 1, 1], [], []>} : vector<128x288xbf16>, vector<288x32xbf16>, vector<128x32xf32> -> vector<128x32xf32>
    %c0_3 = arith.constant 0 : index
    %c0_4 = arith.constant 0 : index
    %3 = vector.load %arg3[%c0_3, %c0_4] : memref<1x32xf32, #tpu.memory_space<vmem>>, vector<1x32xf32>
    %4 = vector.broadcast %3 : vector<1x32xf32> to vector<128x32xf32>
    %5 = arith.addf %2, %4 : vector<128x32xf32>
    %c0_5 = arith.constant 0 : index
    %c0_6 = arith.constant 0 : index
    %6 = vector.load %arg4[%c0_5, %c0_6] : memref<128x32xf32, #tpu.memory_space<vmem>>, vector<128x32xf32>
    %7 = arith.addf %5, %6 : vector<128x32xf32>
    %c0_7 = arith.constant 0 : index
    %c0_8 = arith.constant 0 : index
    %8 = vector.load %arg5[%c0_7, %c0_8] : memref<128x32xf32, #tpu.memory_space<vmem>>, vector<128x32xf32>
    tpu.vector_store %arg5[%c0_7, %c0_8], %7 {strides = array<i32>} : memref<128x32xf32, #tpu.memory_space<vmem>>, vector<128x32xf32>,
    return
  }
  func.func @transform_0(%arg0: i32) -> (i32, i32) {
    %c0_i32 = arith.constant 0 : i32
    %c0_i32_0 = arith.constant 0 : i32
    return %arg0, %c0_i32 : i32, i32
  }
  func.func @transform_1(%arg0: i32) -> (i32, i32) {
    %c0_i32 = arith.constant 0 : i32
    %c0_i32_0 = arith.constant 0 : i32
    %c0_i32_1 = arith.constant 0 : i32
    return %c0_i32, %c0_i32_0 : i32, i32
  }
  func.func @transform_2(%arg0: i32) -> (i32, i32) {
    %c0_i32 = arith.constant 0 : i32
    %c0_i32_0 = arith.constant 0 : i32
    %c0_i32_1 = arith.constant 0 : i32
    return %c0_i32, %c0_i32_0 : i32, i32
  }
  func.func @transform_3(%arg0: i32) -> (i32, i32) {
    %c0_i32 = arith.constant 0 : i32
    %c0_i32_0 = arith.constant 0 : i32
    return %arg0, %c0_i32 : i32, i32
  }
  func.func @transform_4(%arg0: i32) -> (i32, i32) {
    %c0_i32 = arith.constant 0 : i32
    %c0_i32_0 = arith.constant 0 : i32
    return %arg0, %c0_i32 : i32, i32
  }
}

module attributes {stable_mosaic.version = 11 : i64} {
  func.func @kernel(%arg0: i32, %arg1: memref<128x288xbf16, #tpu.memory_space<vmem>>, %arg2: memref<288x32xbf16, #tpu.memory_space<vmem>>, %arg3: memref<1x32xf32, #tpu.memory_space<vmem>>, %arg4: memref<128x32xf32, #tpu.memory_space<vmem>>) attributes {dimension_semantics = [#tpu.dimension_semantics<parallel>], iteration_bounds = array<i64: 1>, scalar_prefetch = 0 : i64, scratch_operands = 0 : i64, tpu.core_type = #tpu.core_type<tc>, window_params = [{transform_indices = @transform_0, window_bounds = array<i64: 128, 288>}, {pipeline_mode = #tpu.pipeline_mode<synchronous>, transform_indices = @transform_1, window_bounds = array<i64: 288, 32>}, {pipeline_mode = #tpu.pipeline_mode<synchronous>, transform_indices = @transform_2, window_bounds = array<i64: 1, 32>}, {transform_indices = @transform_3, window_bounds = array<i64: 128, 32>}]} {
    %c0 = arith.constant 0 : index
    %c0_0 = arith.constant 0 : index
    %0 = vector.load %arg1[%c0, %c0_0] : memref<128x288xbf16, #tpu.memory_space<vmem>>, vector<128x288xbf16>
    %c0_1 = arith.constant 0 : index
    %c0_2 = arith.constant 0 : index
    %1 = vector.load %arg2[%c0_1, %c0_2] : memref<288x32xbf16, #tpu.memory_space<vmem>>, vector<288x32xbf16>
    %cst = arith.constant dense<0.000000e+00> : vector<128x32xf32>
    %2 = tpu.matmul %0, %1, %cst {dimension_numbers = #tpu.dot_dimension_numbers<[1], [0], [0], [1], [0, 0, 1, 1], [], []>} : vector<128x288xbf16>, vector<288x32xbf16>, vector<128x32xf32> -> vector<128x32xf32>
    %c0_3 = arith.constant 0 : index
    %c0_4 = arith.constant 0 : index
    %3 = vector.load %arg3[%c0_3, %c0_4] : memref<1x32xf32, #tpu.memory_space<vmem>>, vector<1x32xf32>
    %4 = vector.broadcast %3 : vector<1x32xf32> to vector<128x32xf32>
    %5 = arith.addf %2, %4 : vector<128x32xf32>
    %c0_5 = arith.constant 0 : index
    %c0_6 = arith.constant 0 : index
    %6 = vector.load %arg4[%c0_5, %c0_6] : memref<128x32xf32, #tpu.memory_space<vmem>>, vector<128x32xf32>
    tpu.vector_store %arg4[%c0_5, %c0_6], %5 {strides = array<i32>} : memref<128x32xf32, #tpu.memory_space<vmem>>, vector<128x32xf32>,
    return
  }
  func.func @transform_0(%arg0: i32) -> (i32, i32) {
    %c0_i32 = arith.constant 0 : i32
    %c0_i32_0 = arith.constant 0 : i32
    return %arg0, %c0_i32 : i32, i32
  }
  func.func @transform_1(%arg0: i32) -> (i32, i32) {
    %c0_i32 = arith.constant 0 : i32
    %c0_i32_0 = arith.constant 0 : i32
    %c0_i32_1 = arith.constant 0 : i32
    return %c0_i32, %c0_i32_0 : i32, i32
  }
  func.func @transform_2(%arg0: i32) -> (i32, i32) {
    %c0_i32 = arith.constant 0 : i32
    %c0_i32_0 = arith.constant 0 : i32
    %c0_i32_1 = arith.constant 0 : i32
    return %c0_i32, %c0_i32_0 : i32, i32
  }
  func.func @transform_3(%arg0: i32) -> (i32, i32) {
    %c0_i32 = arith.constant 0 : i32
    %c0_i32_0 = arith.constant 0 : i32
    return %arg0, %c0_i32 : i32, i32
  }
}

module attributes {stable_mosaic.version = 11 : i64} {
  func.func @_ln_gelu_rows_kernel(%arg0: i32, %arg1: memref<16x32xf32, #tpu.memory_space<vmem>>, %arg2: memref<1x32xf32, #tpu.memory_space<vmem>>, %arg3: memref<1x32xf32, #tpu.memory_space<vmem>>, %arg4: memref<16x32xf32, #tpu.memory_space<vmem>>) attributes {dimension_semantics = [#tpu.dimension_semantics<parallel>], iteration_bounds = array<i64: 1>, scalar_prefetch = 0 : i64, scratch_operands = 0 : i64, tpu.core_type = #tpu.core_type<tc>, window_params = [{transform_indices = @transform_0, window_bounds = array<i64: 16, 32>}, {pipeline_mode = #tpu.pipeline_mode<synchronous>, transform_indices = @transform_1, window_bounds = array<i64: 1, 32>}, {pipeline_mode = #tpu.pipeline_mode<synchronous>, transform_indices = @transform_2, window_bounds = array<i64: 1, 32>}, {transform_indices = @transform_3, window_bounds = array<i64: 16, 32>}]} {
    %c0 = arith.constant 0 : index
    %c0_0 = arith.constant 0 : index
    %0 = vector.load %arg1[%c0, %c0_0] : memref<16x32xf32, #tpu.memory_space<vmem>>, vector<16x32xf32>
    %cst = arith.constant dense<0.000000e+00> : vector<16xf32>
    %1 = vector.multi_reduction <add>, %0, %cst [1] : vector<16x32xf32> to vector<16xf32>
    %2 = vector.shape_cast %1 : vector<16xf32> to vector<16x1xf32>
    %cst_1 = arith.constant 3.200000e+01 : f32
    %3 = vector.broadcast %cst_1 : f32 to vector<16x1xf32>
    %4 = arith.divf %2, %3 : vector<16x1xf32>
    %5 = vector.broadcast %4 : vector<16x1xf32> to vector<16x32xf32>
    %6 = arith.subf %0, %5 : vector<16x32xf32>
    %7 = arith.mulf %6, %6 : vector<16x32xf32>
    %cst_2 = arith.constant dense<0.000000e+00> : vector<16xf32>
    %8 = vector.multi_reduction <add>, %7, %cst_2 [1] : vector<16x32xf32> to vector<16xf32>
    %9 = vector.shape_cast %8 : vector<16xf32> to vector<16x1xf32>
    %cst_3 = arith.constant 3.200000e+01 : f32
    %10 = vector.broadcast %cst_3 : f32 to vector<16x1xf32>
    %11 = arith.divf %9, %10 : vector<16x1xf32>
    %12 = vector.broadcast %4 : vector<16x1xf32> to vector<16x32xf32>
    %13 = arith.subf %0, %12 : vector<16x32xf32>
    %cst_4 = arith.constant 9.99999974E-6 : f32
    %14 = vector.broadcast %cst_4 : f32 to vector<16x1xf32>
    %15 = arith.addf %11, %14 : vector<16x1xf32>
    %16 = math.rsqrt %15 : vector<16x1xf32>
    %17 = vector.broadcast %16 : vector<16x1xf32> to vector<16x32xf32>
    %18 = arith.mulf %13, %17 : vector<16x32xf32>
    %c0_5 = arith.constant 0 : index
    %c0_6 = arith.constant 0 : index
    %19 = vector.load %arg2[%c0_5, %c0_6] : memref<1x32xf32, #tpu.memory_space<vmem>>, vector<1x32xf32>
    %20 = vector.broadcast %19 : vector<1x32xf32> to vector<16x32xf32>
    %21 = arith.mulf %18, %20 : vector<16x32xf32>
    %c0_7 = arith.constant 0 : index
    %c0_8 = arith.constant 0 : index
    %22 = vector.load %arg3[%c0_7, %c0_8] : memref<1x32xf32, #tpu.memory_space<vmem>>, vector<1x32xf32>
    %23 = vector.broadcast %22 : vector<1x32xf32> to vector<16x32xf32>
    %24 = arith.addf %21, %23 : vector<16x32xf32>
    %cst_9 = arith.constant 5.000000e-01 : f32
    %25 = vector.broadcast %cst_9 : f32 to vector<16x32xf32>
    %26 = arith.mulf %25, %24 : vector<16x32xf32>
    %cst_10 = arith.constant 0.707106769 : f32
    %27 = vector.broadcast %cst_10 : f32 to vector<16x32xf32>
    %28 = arith.mulf %24, %27 : vector<16x32xf32>
    %29 = math.erf %28 : vector<16x32xf32>
    %cst_11 = arith.constant 1.000000e+00 : f32
    %30 = vector.broadcast %cst_11 : f32 to vector<16x32xf32>
    %31 = arith.addf %30, %29 : vector<16x32xf32>
    %32 = arith.mulf %26, %31 : vector<16x32xf32>
    %c0_12 = arith.constant 0 : index
    %c0_13 = arith.constant 0 : index
    %33 = vector.load %arg4[%c0_12, %c0_13] : memref<16x32xf32, #tpu.memory_space<vmem>>, vector<16x32xf32>
    tpu.vector_store %arg4[%c0_12, %c0_13], %32 {strides = array<i32>} : memref<16x32xf32, #tpu.memory_space<vmem>>, vector<16x32xf32>,
    return
  }
  func.func @transform_0(%arg0: i32) -> (i32, i32) {
    %c0_i32 = arith.constant 0 : i32
    %c0_i32_0 = arith.constant 0 : i32
    return %arg0, %c0_i32 : i32, i32
  }
  func.func @transform_1(%arg0: i32) -> (i32, i32) {
    %c0_i32 = arith.constant 0 : i32
    %c0_i32_0 = arith.constant 0 : i32
    %c0_i32_1 = arith.constant 0 : i32
    return %c0_i32, %c0_i32_0 : i32, i32
  }
  func.func @transform_2(%arg0: i32) -> (i32, i32) {
    %c0_i32 = arith.constant 0 : i32
    %c0_i32_0 = arith.constant 0 : i32
    %c0_i32_1 = arith.constant 0 : i32
    return %c0_i32, %c0_i32_0 : i32, i32
  }
  func.func @transform_3(%arg0: i32) -> (i32, i32) {
    %c0_i32 = arith.constant 0 : i32
    %c0_i32_0 = arith.constant 0 : i32
    return %arg0, %c0_i32 : i32, i32
  }
}

module attributes {stable_mosaic.version = 11 : i64} {
  func.func @kernel(%arg0: i32, %arg1: memref<16x256xbf16, #tpu.memory_space<vmem>>, %arg2: memref<256x32xbf16, #tpu.memory_space<vmem>>, %arg3: memref<1x32xf32, #tpu.memory_space<vmem>>, %arg4: memref<16x32xf32, #tpu.memory_space<vmem>>) attributes {dimension_semantics = [#tpu.dimension_semantics<parallel>], iteration_bounds = array<i64: 1>, scalar_prefetch = 0 : i64, scratch_operands = 0 : i64, tpu.core_type = #tpu.core_type<tc>, window_params = [{transform_indices = @transform_0, window_bounds = array<i64: 16, 256>}, {pipeline_mode = #tpu.pipeline_mode<synchronous>, transform_indices = @transform_1, window_bounds = array<i64: 256, 32>}, {pipeline_mode = #tpu.pipeline_mode<synchronous>, transform_indices = @transform_2, window_bounds = array<i64: 1, 32>}, {transform_indices = @transform_3, window_bounds = array<i64: 16, 32>}]} {
    %c0 = arith.constant 0 : index
    %c0_0 = arith.constant 0 : index
    %0 = vector.load %arg1[%c0, %c0_0] : memref<16x256xbf16, #tpu.memory_space<vmem>>, vector<16x256xbf16>
    %c0_1 = arith.constant 0 : index
    %c0_2 = arith.constant 0 : index
    %1 = vector.load %arg2[%c0_1, %c0_2] : memref<256x32xbf16, #tpu.memory_space<vmem>>, vector<256x32xbf16>
    %cst = arith.constant dense<0.000000e+00> : vector<16x32xf32>
    %2 = tpu.matmul %0, %1, %cst {dimension_numbers = #tpu.dot_dimension_numbers<[1], [0], [0], [1], [0, 0, 1, 1], [], []>} : vector<16x256xbf16>, vector<256x32xbf16>, vector<16x32xf32> -> vector<16x32xf32>
    %c0_3 = arith.constant 0 : index
    %c0_4 = arith.constant 0 : index
    %3 = vector.load %arg3[%c0_3, %c0_4] : memref<1x32xf32, #tpu.memory_space<vmem>>, vector<1x32xf32>
    %4 = vector.broadcast %3 : vector<1x32xf32> to vector<16x32xf32>
    %5 = arith.addf %2, %4 : vector<16x32xf32>
    %c0_5 = arith.constant 0 : index
    %c0_6 = arith.constant 0 : index
    %6 = vector.load %arg4[%c0_5, %c0_6] : memref<16x32xf32, #tpu.memory_space<vmem>>, vector<16x32xf32>
    tpu.vector_store %arg4[%c0_5, %c0_6], %5 {strides = array<i32>} : memref<16x32xf32, #tpu.memory_space<vmem>>, vector<16x32xf32>,
    return
  }
  func.func @transform_0(%arg0: i32) -> (i32, i32) {
    %c0_i32 = arith.constant 0 : i32
    %c0_i32_0 = arith.constant 0 : i32
    return %arg0, %c0_i32 : i32, i32
  }
  func.func @transform_1(%arg0: i32) -> (i32, i32) {
    %c0_i32 = arith.constant 0 : i32
    %c0_i32_0 = arith.constant 0 : i32
    %c0_i32_1 = arith.constant 0 : i32
    return %c0_i32, %c0_i32_0 : i32, i32
  }
  func.func @transform_2(%arg0: i32) -> (i32, i32) {
    %c0_i32 = arith.constant 0 : i32
    %c0_i32_0 = arith.constant 0 : i32
    %c0_i32_1 = arith.constant 0 : i32
    return %c0_i32, %c0_i32_0 : i32, i32
  }
  func.func @transform_3(%arg0: i32) -> (i32, i32) {
    %c0_i32 = arith.constant 0 : i32
    %c0_i32_0 = arith.constant 0 : i32
    return %arg0, %c0_i32 : i32, i32
  }
}

module attributes {stable_mosaic.version = 11 : i64} {
  func.func @kernel(%arg0: i32, %arg1: memref<16x32xbf16, #tpu.memory_space<vmem>>, %arg2: memref<32x96xbf16, #tpu.memory_space<vmem>>, %arg3: memref<1x96xf32, #tpu.memory_space<vmem>>, %arg4: memref<16x96xf32, #tpu.memory_space<vmem>>) attributes {dimension_semantics = [#tpu.dimension_semantics<parallel>], iteration_bounds = array<i64: 1>, scalar_prefetch = 0 : i64, scratch_operands = 0 : i64, tpu.core_type = #tpu.core_type<tc>, window_params = [{transform_indices = @transform_0, window_bounds = array<i64: 16, 32>}, {pipeline_mode = #tpu.pipeline_mode<synchronous>, transform_indices = @transform_1, window_bounds = array<i64: 32, 96>}, {pipeline_mode = #tpu.pipeline_mode<synchronous>, transform_indices = @transform_2, window_bounds = array<i64: 1, 96>}, {transform_indices = @transform_3, window_bounds = array<i64: 16, 96>}]} {
    %c0 = arith.constant 0 : index
    %c0_0 = arith.constant 0 : index
    %0 = vector.load %arg1[%c0, %c0_0] : memref<16x32xbf16, #tpu.memory_space<vmem>>, vector<16x32xbf16>
    %c0_1 = arith.constant 0 : index
    %c0_2 = arith.constant 0 : index
    %1 = vector.load %arg2[%c0_1, %c0_2] : memref<32x96xbf16, #tpu.memory_space<vmem>>, vector<32x96xbf16>
    %cst = arith.constant dense<0.000000e+00> : vector<16x96xf32>
    %2 = tpu.matmul %0, %1, %cst {dimension_numbers = #tpu.dot_dimension_numbers<[1], [0], [0], [1], [0, 0, 1, 1], [], []>} : vector<16x32xbf16>, vector<32x96xbf16>, vector<16x96xf32> -> vector<16x96xf32>
    %c0_3 = arith.constant 0 : index
    %c0_4 = arith.constant 0 : index
    %3 = vector.load %arg3[%c0_3, %c0_4] : memref<1x96xf32, #tpu.memory_space<vmem>>, vector<1x96xf32>
    %4 = vector.broadcast %3 : vector<1x96xf32> to vector<16x96xf32>
    %5 = arith.addf %2, %4 : vector<16x96xf32>
    %c0_5 = arith.constant 0 : index
    %c0_6 = arith.constant 0 : index
    %6 = vector.load %arg4[%c0_5, %c0_6] : memref<16x96xf32, #tpu.memory_space<vmem>>, vector<16x96xf32>
    tpu.vector_store %arg4[%c0_5, %c0_6], %5 {strides = array<i32>} : memref<16x96xf32, #tpu.memory_space<vmem>>, vector<16x96xf32>,
    return
  }
  func.func @transform_0(%arg0: i32) -> (i32, i32) {
    %c0_i32 = arith.constant 0 : i32
    %c0_i32_0 = arith.constant 0 : i32
    return %arg0, %c0_i32 : i32, i32
  }
  func.func @transform_1(%arg0: i32) -> (i32, i32) {
    %c0_i32 = arith.constant 0 : i32
    %c0_i32_0 = arith.constant 0 : i32
    %c0_i32_1 = arith.constant 0 : i32
    return %c0_i32, %c0_i32_0 : i32, i32
  }
  func.func @transform_2(%arg0: i32) -> (i32, i32) {
    %c0_i32 = arith.constant 0 : i32
    %c0_i32_0 = arith.constant 0 : i32
    %c0_i32_1 = arith.constant 0 : i32
    return %c0_i32, %c0_i32_0 : i32, i32
  }
  func.func @transform_3(%arg0: i32) -> (i32, i32) {
    %c0_i32 = arith.constant 0 : i32
    %c0_i32_0 = arith.constant 0 : i32
    return %arg0, %c0_i32 : i32, i32
  }
}

module attributes {stable_mosaic.version = 11 : i64} {
  func.func @_ln_gelu_rows_kernel(%arg0: i32, %arg1: memref<16x64xf32, #tpu.memory_space<vmem>>, %arg2: memref<1x64xf32, #tpu.memory_space<vmem>>, %arg3: memref<1x64xf32, #tpu.memory_space<vmem>>, %arg4: memref<16x64xf32, #tpu.memory_space<vmem>>) attributes {dimension_semantics = [#tpu.dimension_semantics<parallel>], iteration_bounds = array<i64: 1>, scalar_prefetch = 0 : i64, scratch_operands = 0 : i64, tpu.core_type = #tpu.core_type<tc>, window_params = [{transform_indices = @transform_0, window_bounds = array<i64: 16, 64>}, {pipeline_mode = #tpu.pipeline_mode<synchronous>, transform_indices = @transform_1, window_bounds = array<i64: 1, 64>}, {pipeline_mode = #tpu.pipeline_mode<synchronous>, transform_indices = @transform_2, window_bounds = array<i64: 1, 64>}, {transform_indices = @transform_3, window_bounds = array<i64: 16, 64>}]} {
    %c0 = arith.constant 0 : index
    %c0_0 = arith.constant 0 : index
    %0 = vector.load %arg1[%c0, %c0_0] : memref<16x64xf32, #tpu.memory_space<vmem>>, vector<16x64xf32>
    %cst = arith.constant dense<0.000000e+00> : vector<16xf32>
    %1 = vector.multi_reduction <add>, %0, %cst [1] : vector<16x64xf32> to vector<16xf32>
    %2 = vector.shape_cast %1 : vector<16xf32> to vector<16x1xf32>
    %cst_1 = arith.constant 6.400000e+01 : f32
    %3 = vector.broadcast %cst_1 : f32 to vector<16x1xf32>
    %4 = arith.divf %2, %3 : vector<16x1xf32>
    %5 = vector.broadcast %4 : vector<16x1xf32> to vector<16x64xf32>
    %6 = arith.subf %0, %5 : vector<16x64xf32>
    %7 = arith.mulf %6, %6 : vector<16x64xf32>
    %cst_2 = arith.constant dense<0.000000e+00> : vector<16xf32>
    %8 = vector.multi_reduction <add>, %7, %cst_2 [1] : vector<16x64xf32> to vector<16xf32>
    %9 = vector.shape_cast %8 : vector<16xf32> to vector<16x1xf32>
    %cst_3 = arith.constant 6.400000e+01 : f32
    %10 = vector.broadcast %cst_3 : f32 to vector<16x1xf32>
    %11 = arith.divf %9, %10 : vector<16x1xf32>
    %12 = vector.broadcast %4 : vector<16x1xf32> to vector<16x64xf32>
    %13 = arith.subf %0, %12 : vector<16x64xf32>
    %cst_4 = arith.constant 9.99999974E-6 : f32
    %14 = vector.broadcast %cst_4 : f32 to vector<16x1xf32>
    %15 = arith.addf %11, %14 : vector<16x1xf32>
    %16 = math.rsqrt %15 : vector<16x1xf32>
    %17 = vector.broadcast %16 : vector<16x1xf32> to vector<16x64xf32>
    %18 = arith.mulf %13, %17 : vector<16x64xf32>
    %c0_5 = arith.constant 0 : index
    %c0_6 = arith.constant 0 : index
    %19 = vector.load %arg2[%c0_5, %c0_6] : memref<1x64xf32, #tpu.memory_space<vmem>>, vector<1x64xf32>
    %20 = vector.broadcast %19 : vector<1x64xf32> to vector<16x64xf32>
    %21 = arith.mulf %18, %20 : vector<16x64xf32>
    %c0_7 = arith.constant 0 : index
    %c0_8 = arith.constant 0 : index
    %22 = vector.load %arg3[%c0_7, %c0_8] : memref<1x64xf32, #tpu.memory_space<vmem>>, vector<1x64xf32>
    %23 = vector.broadcast %22 : vector<1x64xf32> to vector<16x64xf32>
    %24 = arith.addf %21, %23 : vector<16x64xf32>
    %cst_9 = arith.constant 5.000000e-01 : f32
    %25 = vector.broadcast %cst_9 : f32 to vector<16x64xf32>
    %26 = arith.mulf %25, %24 : vector<16x64xf32>
    %cst_10 = arith.constant 0.707106769 : f32
    %27 = vector.broadcast %cst_10 : f32 to vector<16x64xf32>
    %28 = arith.mulf %24, %27 : vector<16x64xf32>
    %29 = math.erf %28 : vector<16x64xf32>
    %cst_11 = arith.constant 1.000000e+00 : f32
    %30 = vector.broadcast %cst_11 : f32 to vector<16x64xf32>
    %31 = arith.addf %30, %29 : vector<16x64xf32>
    %32 = arith.mulf %26, %31 : vector<16x64xf32>
    %c0_12 = arith.constant 0 : index
    %c0_13 = arith.constant 0 : index
    %33 = vector.load %arg4[%c0_12, %c0_13] : memref<16x64xf32, #tpu.memory_space<vmem>>, vector<16x64xf32>
    tpu.vector_store %arg4[%c0_12, %c0_13], %32 {strides = array<i32>} : memref<16x64xf32, #tpu.memory_space<vmem>>, vector<16x64xf32>,
    return
  }
  func.func @transform_0(%arg0: i32) -> (i32, i32) {
    %c0_i32 = arith.constant 0 : i32
    %c0_i32_0 = arith.constant 0 : i32
    return %arg0, %c0_i32 : i32, i32
  }
  func.func @transform_1(%arg0: i32) -> (i32, i32) {
    %c0_i32 = arith.constant 0 : i32
    %c0_i32_0 = arith.constant 0 : i32
    %c0_i32_1 = arith.constant 0 : i32
    return %c0_i32, %c0_i32_0 : i32, i32
  }
  func.func @transform_2(%arg0: i32) -> (i32, i32) {
    %c0_i32 = arith.constant 0 : i32
    %c0_i32_0 = arith.constant 0 : i32
    %c0_i32_1 = arith.constant 0 : i32
    return %c0_i32, %c0_i32_0 : i32, i32
  }
  func.func @transform_3(%arg0: i32) -> (i32, i32) {
    %c0_i32 = arith.constant 0 : i32
    %c0_i32_0 = arith.constant 0 : i32
    return %arg0, %c0_i32 : i32, i32
  }
}

module attributes {stable_mosaic.version = 11 : i64} {
  func.func @_bigru_step_kernel(%arg0: i32, %arg1: memref<1x2x96xf32, #tpu.memory_space<vmem>>, %arg2: memref<1x2x96xf32, #tpu.memory_space<vmem>>, %arg3: memref<32x96xf32, #tpu.memory_space<vmem>>, %arg4: memref<32x96xf32, #tpu.memory_space<vmem>>, %arg5: memref<1x32xf32, #tpu.memory_space<vmem>>, %arg6: memref<1x32xf32, #tpu.memory_space<vmem>>, %arg7: memref<1x2x32xf32, #tpu.memory_space<vmem>>, %arg8: memref<1x2x32xf32, #tpu.memory_space<vmem>>, %arg9: memref<2x32xf32, #tpu.memory_space<vmem>>, %arg10: memref<2x32xf32, #tpu.memory_space<vmem>>) attributes {dimension_semantics = [#tpu.dimension_semantics<arbitrary>], iteration_bounds = array<i64: 8>, scalar_prefetch = 0 : i64, scratch_operands = 2 : i64, tpu.core_type = #tpu.core_type<tc>, window_params = [{transform_indices = @transform_0, window_bounds = array<i64: 1, 2, 96>}, {transform_indices = @transform_1, window_bounds = array<i64: 1, 2, 96>}, {pipeline_mode = #tpu.pipeline_mode<synchronous>, transform_indices = @transform_2, window_bounds = array<i64: 32, 96>}, {pipeline_mode = #tpu.pipeline_mode<synchronous>, transform_indices = @transform_3, window_bounds = array<i64: 32, 96>}, {pipeline_mode = #tpu.pipeline_mode<synchronous>, transform_indices = @transform_4, window_bounds = array<i64: 1, 32>}, {pipeline_mode = #tpu.pipeline_mode<synchronous>, transform_indices = @transform_5, window_bounds = array<i64: 1, 32>}, {transform_indices = @transform_6, window_bounds = array<i64: 1, 2, 32>}, {transform_indices = @transform_7, window_bounds = array<i64: 1, 2, 32>}]} {
    %c0_i32 = arith.constant 0 : i32
    %0 = arith.cmpi eq, %arg0, %c0_i32 : i32
    %1 = arith.extui %0 : i1 to i32
    %c0_i32_0 = arith.constant 0 : i32
    %2 = arith.cmpi ne, %1, %c0_i32_0 : i32
    scf.if %2 {
      %cst_35 = arith.constant 0.000000e+00 : f32
      %79 = vector.broadcast %cst_35 : f32 to vector<2x32xf32>
      %c0_36 = arith.constant 0 : index
      %c0_37 = arith.constant 0 : index
      %80 = vector.load %arg9[%c0_36, %c0_37] : memref<2x32xf32, #tpu.memory_space<vmem>>, vector<2x32xf32>
      tpu.vector_store %arg9[%c0_36, %c0_37], %79 {strides = array<i32>} : memref<2x32xf32, #tpu.memory_space<vmem>>, vector<2x32xf32>,
      %cst_38 = arith.constant 0.000000e+00 : f32
      %81 = vector.broadcast %cst_38 : f32 to vector<2x32xf32>
      %c0_39 = arith.constant 0 : index
      %c0_40 = arith.constant 0 : index
      %82 = vector.load %arg10[%c0_39, %c0_40] : memref<2x32xf32, #tpu.memory_space<vmem>>, vector<2x32xf32>
      tpu.vector_store %arg10[%c0_39, %c0_40], %81 {strides = array<i32>} : memref<2x32xf32, #tpu.memory_space<vmem>>, vector<2x32xf32>,
    } else {
    }
    %c0 = arith.constant 0 : index
    %c0_1 = arith.constant 0 : index
    %3 = vector.load %arg9[%c0, %c0_1] : memref<2x32xf32, #tpu.memory_space<vmem>>, vector<2x32xf32>
    %c0_2 = arith.constant 0 : index
    %c0_3 = arith.constant 0 : index
    %4 = vector.load %arg3[%c0_2, %c0_3] : memref<32x96xf32, #tpu.memory_space<vmem>>, vector<32x96xf32>
    %cst = arith.constant dense<0.000000e+00> : vector<2x96xf32>
    %5 = tpu.matmul %3, %4, %cst {dimension_numbers = #tpu.dot_dimension_numbers<[1], [0], [0], [1], [0, 0, 1, 1], [], []>} : vector<2x32xf32>, vector<32x96xf32>, vector<2x96xf32> -> vector<2x96xf32>
    %c0_4 = arith.constant 0 : index
    %c0_5 = arith.constant 0 : index
    %c0_6 = arith.constant 0 : index
    %6 = vector.load %arg1[%c0_4, %c0_5, %c0_6] : memref<1x2x96xf32, #tpu.memory_space<vmem>>, vector<1x2x96xf32>
    %7 = vector.shape_cast %6 : vector<1x2x96xf32> to vector<2x96xf32>
    %8 = vector.extract_strided_slice %7 {offsets = [0, 0], sizes = [2, 32], strides = [1, 1]} : vector<2x96xf32> to vector<2x32xf32>
    %9 = vector.extract_strided_slice %5 {offsets = [0, 0], sizes = [2, 32], strides = [1, 1]} : vector<2x96xf32> to vector<2x32xf32>
    %10 = arith.addf %8, %9 : vector<2x32xf32>
    %11 = arith.negf %10 : vector<2x32xf32>
    %12 = math.exp %11 : vector<2x32xf32>
    %cst_7 = arith.constant 1.000000e+00 : f32
    %13 = vector.broadcast %cst_7 : f32 to vector<2x32xf32>
    %14 = arith.addf %13, %12 : vector<2x32xf32>
    %15 = arith.divf %13, %14 : vector<2x32xf32>
    %16 = vector.extract_strided_slice %7 {offsets = [0, 32], sizes = [2, 32], strides = [1, 1]} : vector<2x96xf32> to vector<2x32xf32>
    %17 = vector.extract_strided_slice %5 {offsets = [0, 32], sizes = [2, 32], strides = [1, 1]} : vector<2x96xf32> to vector<2x32xf32>
    %18 = arith.addf %16, %17 : vector<2x32xf32>
    %19 = arith.negf %18 : vector<2x32xf32>
    %20 = math.exp %19 : vector<2x32xf32>
    %cst_8 = arith.constant 1.000000e+00 : f32
    %21 = vector.broadcast %cst_8 : f32 to vector<2x32xf32>
    %22 = arith.addf %21, %20 : vector<2x32xf32>
    %23 = arith.divf %21, %22 : vector<2x32xf32>
    %24 = vector.extract_strided_slice %7 {offsets = [0, 64], sizes = [2, 32], strides = [1, 1]} : vector<2x96xf32> to vector<2x32xf32>
    %25 = vector.extract_strided_slice %5 {offsets = [0, 64], sizes = [2, 32], strides = [1, 1]} : vector<2x96xf32> to vector<2x32xf32>
    %c0_9 = arith.constant 0 : index
    %c0_10 = arith.constant 0 : index
    %26 = vector.load %arg5[%c0_9, %c0_10] : memref<1x32xf32, #tpu.memory_space<vmem>>, vector<1x32xf32>
    %27 = vector.broadcast %26 : vector<1x32xf32> to vector<2x32xf32>
    %28 = arith.addf %25, %27 : vector<2x32xf32>
    %29 = arith.mulf %15, %28 : vector<2x32xf32>
    %30 = arith.addf %24, %29 : vector<2x32xf32>
    %31 = math.tanh %30 : vector<2x32xf32>
    %cst_11 = arith.constant 1.000000e+00 : f32
    %32 = vector.broadcast %cst_11 : f32 to vector<2x32xf32>
    %33 = arith.subf %32, %23 : vector<2x32xf32>
    %34 = arith.mulf %33, %31 : vector<2x32xf32>
    %35 = arith.mulf %23, %3 : vector<2x32xf32>
    %36 = arith.addf %34, %35 : vector<2x32xf32>
    %c0_12 = arith.constant 0 : index
    %c0_13 = arith.constant 0 : index
    %37 = vector.load %arg9[%c0_12, %c0_13] : memref<2x32xf32, #tpu.memory_space<vmem>>, vector<2x32xf32>
    tpu.vector_store %arg9[%c0_12, %c0_13], %36 {strides = array<i32>} : memref<2x32xf32, #tpu.memory_space<vmem>>, vector<2x32xf32>,
    %c0_14 = arith.constant 0 : index
    %c0_15 = arith.constant 0 : index
    %c0_16 = arith.constant 0 : index
    %38 = vector.load %arg7[%c0_14, %c0_15, %c0_16] : memref<1x2x32xf32, #tpu.memory_space<vmem>>, vector<1x2x32xf32>
    %39 = vector.shape_cast %38 : vector<1x2x32xf32> to vector<2x32xf32>
    %40 = vector.shape_cast %36 : vector<2x32xf32> to vector<1x2x32xf32>
    tpu.vector_store %arg7[%c0_14, %c0_15, %c0_16], %40 {strides = array<i32>} : memref<1x2x32xf32, #tpu.memory_space<vmem>>, vector<1x2x32xf32>,
    %c0_17 = arith.constant 0 : index
    %c0_18 = arith.constant 0 : index
    %41 = vector.load %arg10[%c0_17, %c0_18] : memref<2x32xf32, #tpu.memory_space<vmem>>, vector<2x32xf32>
    %c0_19 = arith.constant 0 : index
    %c0_20 = arith.constant 0 : index
    %42 = vector.load %arg4[%c0_19, %c0_20] : memref<32x96xf32, #tpu.memory_space<vmem>>, vector<32x96xf32>
    %cst_21 = arith.constant dense<0.000000e+00> : vector<2x96xf32>
    %43 = tpu.matmul %41, %42, %cst_21 {dimension_numbers = #tpu.dot_dimension_numbers<[1], [0], [0], [1], [0, 0, 1, 1], [], []>} : vector<2x32xf32>, vector<32x96xf32>, vector<2x96xf32> -> vector<2x96xf32>
    %c0_22 = arith.constant 0 : index
    %c0_23 = arith.constant 0 : index
    %c0_24 = arith.constant 0 : index
    %44 = vector.load %arg2[%c0_22, %c0_23, %c0_24] : memref<1x2x96xf32, #tpu.memory_space<vmem>>, vector<1x2x96xf32>
    %45 = vector.shape_cast %44 : vector<1x2x96xf32> to vector<2x96xf32>
    %46 = vector.extract_strided_slice %45 {offsets = [0, 0], sizes = [2, 32], strides = [1, 1]} : vector<2x96xf32> to vector<2x32xf32>
    %47 = vector.extract_strided_slice %43 {offsets = [0, 0], sizes = [2, 32], strides = [1, 1]} : vector<2x96xf32> to vector<2x32xf32>
    %48 = arith.addf %46, %47 : vector<2x32xf32>
    %49 = arith.negf %48 : vector<2x32xf32>
    %50 = math.exp %49 : vector<2x32xf32>
    %cst_25 = arith.constant 1.000000e+00 : f32
    %51 = vector.broadcast %cst_25 : f32 to vector<2x32xf32>
    %52 = arith.addf %51, %50 : vector<2x32xf32>
    %53 = arith.divf %51, %52 : vector<2x32xf32>
    %54 = vector.extract_strided_slice %45 {offsets = [0, 32], sizes = [2, 32], strides = [1, 1]} : vector<2x96xf32> to vector<2x32xf32>
    %55 = vector.extract_strided_slice %43 {offsets = [0, 32], sizes = [2, 32], strides = [1, 1]} : vector<2x96xf32> to vector<2x32xf32>
    %56 = arith.addf %54, %55 : vector<2x32xf32>
    %57 = arith.negf %56 : vector<2x32xf32>
    %58 = math.exp %57 : vector<2x32xf32>
    %cst_26 = arith.constant 1.000000e+00 : f32
    %59 = vector.broadcast %cst_26 : f32 to vector<2x32xf32>
    %60 = arith.addf %59, %58 : vector<2x32xf32>
    %61 = arith.divf %59, %60 : vector<2x32xf32>
    %62 = vector.extract_strided_slice %45 {offsets = [0, 64], sizes = [2, 32], strides = [1, 1]} : vector<2x96xf32> to vector<2x32xf32>
    %63 = vector.extract_strided_slice %43 {offsets = [0, 64], sizes = [2, 32], strides = [1, 1]} : vector<2x96xf32> to vector<2x32xf32>
    %c0_27 = arith.constant 0 : index
    %c0_28 = arith.constant 0 : index
    %64 = vector.load %arg6[%c0_27, %c0_28] : memref<1x32xf32, #tpu.memory_space<vmem>>, vector<1x32xf32>
    %65 = vector.broadcast %64 : vector<1x32xf32> to vector<2x32xf32>
    %66 = arith.addf %63, %65 : vector<2x32xf32>
    %67 = arith.mulf %53, %66 : vector<2x32xf32>
    %68 = arith.addf %62, %67 : vector<2x32xf32>
    %69 = math.tanh %68 : vector<2x32xf32>
    %cst_29 = arith.constant 1.000000e+00 : f32
    %70 = vector.broadcast %cst_29 : f32 to vector<2x32xf32>
    %71 = arith.subf %70, %61 : vector<2x32xf32>
    %72 = arith.mulf %71, %69 : vector<2x32xf32>
    %73 = arith.mulf %61, %41 : vector<2x32xf32>
    %74 = arith.addf %72, %73 : vector<2x32xf32>
    %c0_30 = arith.constant 0 : index
    %c0_31 = arith.constant 0 : index
    %75 = vector.load %arg10[%c0_30, %c0_31] : memref<2x32xf32, #tpu.memory_space<vmem>>, vector<2x32xf32>
    tpu.vector_store %arg10[%c0_30, %c0_31], %74 {strides = array<i32>} : memref<2x32xf32, #tpu.memory_space<vmem>>, vector<2x32xf32>,
    %c0_32 = arith.constant 0 : index
    %c0_33 = arith.constant 0 : index
    %c0_34 = arith.constant 0 : index
    %76 = vector.load %arg8[%c0_32, %c0_33, %c0_34] : memref<1x2x32xf32, #tpu.memory_space<vmem>>, vector<1x2x32xf32>
    %77 = vector.shape_cast %76 : vector<1x2x32xf32> to vector<2x32xf32>
    %78 = vector.shape_cast %74 : vector<2x32xf32> to vector<1x2x32xf32>
    tpu.vector_store %arg8[%c0_32, %c0_33, %c0_34], %78 {strides = array<i32>} : memref<1x2x32xf32, #tpu.memory_space<vmem>>, vector<1x2x32xf32>,
    return
  }
  func.func @transform_0(%arg0: i32) -> (i32, i32, i32) {
    %c0_i32 = arith.constant 0 : i32
    %c0_i32_0 = arith.constant 0 : i32
    %c0_i32_1 = arith.constant 0 : i32
    return %arg0, %c0_i32, %c0_i32_0 : i32, i32, i32
  }
  func.func @transform_1(%arg0: i32) -> (i32, i32, i32) {
    %c7_i32 = arith.constant 7 : i32
    %0 = arith.subi %c7_i32, %arg0 : i32
    %c0_i32 = arith.constant 0 : i32
    %c0_i32_0 = arith.constant 0 : i32
    %c0_i32_1 = arith.constant 0 : i32
    return %0, %c0_i32, %c0_i32_0 : i32, i32, i32
  }
  func.func @transform_2(%arg0: i32) -> (i32, i32) {
    %c0_i32 = arith.constant 0 : i32
    %c0_i32_0 = arith.constant 0 : i32
    %c0_i32_1 = arith.constant 0 : i32
    return %c0_i32, %c0_i32_0 : i32, i32
  }
  func.func @transform_3(%arg0: i32) -> (i32, i32) {
    %c0_i32 = arith.constant 0 : i32
    %c0_i32_0 = arith.constant 0 : i32
    %c0_i32_1 = arith.constant 0 : i32
    return %c0_i32, %c0_i32_0 : i32, i32
  }
  func.func @transform_4(%arg0: i32) -> (i32, i32) {
    %c0_i32 = arith.constant 0 : i32
    %c0_i32_0 = arith.constant 0 : i32
    %c0_i32_1 = arith.constant 0 : i32
    return %c0_i32, %c0_i32_0 : i32, i32
  }
  func.func @transform_5(%arg0: i32) -> (i32, i32) {
    %c0_i32 = arith.constant 0 : i32
    %c0_i32_0 = arith.constant 0 : i32
    %c0_i32_1 = arith.constant 0 : i32
    return %c0_i32, %c0_i32_0 : i32, i32
  }
  func.func @transform_6(%arg0: i32) -> (i32, i32, i32) {
    %c0_i32 = arith.constant 0 : i32
    %c0_i32_0 = arith.constant 0 : i32
    %c0_i32_1 = arith.constant 0 : i32
    return %arg0, %c0_i32, %c0_i32_0 : i32, i32, i32
  }
  func.func @transform_7(%arg0: i32) -> (i32, i32, i32) {
    %c7_i32 = arith.constant 7 : i32
    %0 = arith.subi %c7_i32, %arg0 : i32
    %c0_i32 = arith.constant 0 : i32
    %c0_i32_0 = arith.constant 0 : i32
    %c0_i32_1 = arith.constant 0 : i32
    return %0, %c0_i32, %c0_i32_0 : i32, i32, i32
  }
}

module attributes {stable_mosaic.version = 11 : i64} {
  func.func @kernel(%arg0: i32, %arg1: memref<16x64xbf16, #tpu.memory_space<vmem>>, %arg2: memref<64x96xbf16, #tpu.memory_space<vmem>>, %arg3: memref<1x96xf32, #tpu.memory_space<vmem>>, %arg4: memref<16x96xf32, #tpu.memory_space<vmem>>) attributes {dimension_semantics = [#tpu.dimension_semantics<parallel>], iteration_bounds = array<i64: 1>, scalar_prefetch = 0 : i64, scratch_operands = 0 : i64, tpu.core_type = #tpu.core_type<tc>, window_params = [{transform_indices = @transform_0, window_bounds = array<i64: 16, 64>}, {pipeline_mode = #tpu.pipeline_mode<synchronous>, transform_indices = @transform_1, window_bounds = array<i64: 64, 96>}, {pipeline_mode = #tpu.pipeline_mode<synchronous>, transform_indices = @transform_2, window_bounds = array<i64: 1, 96>}, {transform_indices = @transform_3, window_bounds = array<i64: 16, 96>}]} {
    %c0 = arith.constant 0 : index
    %c0_0 = arith.constant 0 : index
    %0 = vector.load %arg1[%c0, %c0_0] : memref<16x64xbf16, #tpu.memory_space<vmem>>, vector<16x64xbf16>
    %c0_1 = arith.constant 0 : index
    %c0_2 = arith.constant 0 : index
    %1 = vector.load %arg2[%c0_1, %c0_2] : memref<64x96xbf16, #tpu.memory_space<vmem>>, vector<64x96xbf16>
    %cst = arith.constant dense<0.000000e+00> : vector<16x96xf32>
    %2 = tpu.matmul %0, %1, %cst {dimension_numbers = #tpu.dot_dimension_numbers<[1], [0], [0], [1], [0, 0, 1, 1], [], []>} : vector<16x64xbf16>, vector<64x96xbf16>, vector<16x96xf32> -> vector<16x96xf32>
    %c0_3 = arith.constant 0 : index
    %c0_4 = arith.constant 0 : index
    %3 = vector.load %arg3[%c0_3, %c0_4] : memref<1x96xf32, #tpu.memory_space<vmem>>, vector<1x96xf32>
    %4 = vector.broadcast %3 : vector<1x96xf32> to vector<16x96xf32>
    %5 = arith.addf %2, %4 : vector<16x96xf32>
    %c0_5 = arith.constant 0 : index
    %c0_6 = arith.constant 0 : index
    %6 = vector.load %arg4[%c0_5, %c0_6] : memref<16x96xf32, #tpu.memory_space<vmem>>, vector<16x96xf32>
    tpu.vector_store %arg4[%c0_5, %c0_6], %5 {strides = array<i32>} : memref<16x96xf32, #tpu.memory_space<vmem>>, vector<16x96xf32>,
    return
  }
  func.func @transform_0(%arg0: i32) -> (i32, i32) {
    %c0_i32 = arith.constant 0 : i32
    %c0_i32_0 = arith.constant 0 : i32
    return %arg0, %c0_i32 : i32, i32
  }
  func.func @transform_1(%arg0: i32) -> (i32, i32) {
    %c0_i32 = arith.constant 0 : i32
    %c0_i32_0 = arith.constant 0 : i32
    %c0_i32_1 = arith.constant 0 : i32
    return %c0_i32, %c0_i32_0 : i32, i32
  }
  func.func @transform_2(%arg0: i32) -> (i32, i32) {
    %c0_i32 = arith.constant 0 : i32
    %c0_i32_0 = arith.constant 0 : i32
    %c0_i32_1 = arith.constant 0 : i32
    return %c0_i32, %c0_i32_0 : i32, i32
  }
  func.func @transform_3(%arg0: i32) -> (i32, i32) {
    %c0_i32 = arith.constant 0 : i32
    %c0_i32_0 = arith.constant 0 : i32
    return %arg0, %c0_i32 : i32, i32
  }
}

module attributes {stable_mosaic.version = 11 : i64} {
  func.func @_bigru_step_kernel(%arg0: i32, %arg1: memref<1x8x96xf32, #tpu.memory_space<vmem>>, %arg2: memref<1x8x96xf32, #tpu.memory_space<vmem>>, %arg3: memref<32x96xf32, #tpu.memory_space<vmem>>, %arg4: memref<32x96xf32, #tpu.memory_space<vmem>>, %arg5: memref<1x32xf32, #tpu.memory_space<vmem>>, %arg6: memref<1x32xf32, #tpu.memory_space<vmem>>, %arg7: memref<1x8x32xf32, #tpu.memory_space<vmem>>, %arg8: memref<1x8x32xf32, #tpu.memory_space<vmem>>, %arg9: memref<8x32xf32, #tpu.memory_space<vmem>>, %arg10: memref<8x32xf32, #tpu.memory_space<vmem>>) attributes {dimension_semantics = [#tpu.dimension_semantics<arbitrary>], iteration_bounds = array<i64: 2>, scalar_prefetch = 0 : i64, scratch_operands = 2 : i64, tpu.core_type = #tpu.core_type<tc>, window_params = [{transform_indices = @transform_0, window_bounds = array<i64: 1, 8, 96>}, {transform_indices = @transform_1, window_bounds = array<i64: 1, 8, 96>}, {pipeline_mode = #tpu.pipeline_mode<synchronous>, transform_indices = @transform_2, window_bounds = array<i64: 32, 96>}, {pipeline_mode = #tpu.pipeline_mode<synchronous>, transform_indices = @transform_3, window_bounds = array<i64: 32, 96>}, {pipeline_mode = #tpu.pipeline_mode<synchronous>, transform_indices = @transform_4, window_bounds = array<i64: 1, 32>}, {pipeline_mode = #tpu.pipeline_mode<synchronous>, transform_indices = @transform_5, window_bounds = array<i64: 1, 32>}, {transform_indices = @transform_6, window_bounds = array<i64: 1, 8, 32>}, {transform_indices = @transform_7, window_bounds = array<i64: 1, 8, 32>}]} {
    %c0_i32 = arith.constant 0 : i32
    %0 = arith.cmpi eq, %arg0, %c0_i32 : i32
    %1 = arith.extui %0 : i1 to i32
    %c0_i32_0 = arith.constant 0 : i32
    %2 = arith.cmpi ne, %1, %c0_i32_0 : i32
    scf.if %2 {
      %cst_35 = arith.constant 0.000000e+00 : f32
      %79 = vector.broadcast %cst_35 : f32 to vector<8x32xf32>
      %c0_36 = arith.constant 0 : index
      %c0_37 = arith.constant 0 : index
      %80 = vector.load %arg9[%c0_36, %c0_37] : memref<8x32xf32, #tpu.memory_space<vmem>>, vector<8x32xf32>
      tpu.vector_store %arg9[%c0_36, %c0_37], %79 {strides = array<i32>} : memref<8x32xf32, #tpu.memory_space<vmem>>, vector<8x32xf32>,
      %cst_38 = arith.constant 0.000000e+00 : f32
      %81 = vector.broadcast %cst_38 : f32 to vector<8x32xf32>
      %c0_39 = arith.constant 0 : index
      %c0_40 = arith.constant 0 : index
      %82 = vector.load %arg10[%c0_39, %c0_40] : memref<8x32xf32, #tpu.memory_space<vmem>>, vector<8x32xf32>
      tpu.vector_store %arg10[%c0_39, %c0_40], %81 {strides = array<i32>} : memref<8x32xf32, #tpu.memory_space<vmem>>, vector<8x32xf32>,
    } else {
    }
    %c0 = arith.constant 0 : index
    %c0_1 = arith.constant 0 : index
    %3 = vector.load %arg9[%c0, %c0_1] : memref<8x32xf32, #tpu.memory_space<vmem>>, vector<8x32xf32>
    %c0_2 = arith.constant 0 : index
    %c0_3 = arith.constant 0 : index
    %4 = vector.load %arg3[%c0_2, %c0_3] : memref<32x96xf32, #tpu.memory_space<vmem>>, vector<32x96xf32>
    %cst = arith.constant dense<0.000000e+00> : vector<8x96xf32>
    %5 = tpu.matmul %3, %4, %cst {dimension_numbers = #tpu.dot_dimension_numbers<[1], [0], [0], [1], [0, 0, 1, 1], [], []>} : vector<8x32xf32>, vector<32x96xf32>, vector<8x96xf32> -> vector<8x96xf32>
    %c0_4 = arith.constant 0 : index
    %c0_5 = arith.constant 0 : index
    %c0_6 = arith.constant 0 : index
    %6 = vector.load %arg1[%c0_4, %c0_5, %c0_6] : memref<1x8x96xf32, #tpu.memory_space<vmem>>, vector<1x8x96xf32>
    %7 = vector.shape_cast %6 : vector<1x8x96xf32> to vector<8x96xf32>
    %8 = vector.extract_strided_slice %7 {offsets = [0, 0], sizes = [8, 32], strides = [1, 1]} : vector<8x96xf32> to vector<8x32xf32>
    %9 = vector.extract_strided_slice %5 {offsets = [0, 0], sizes = [8, 32], strides = [1, 1]} : vector<8x96xf32> to vector<8x32xf32>
    %10 = arith.addf %8, %9 : vector<8x32xf32>
    %11 = arith.negf %10 : vector<8x32xf32>
    %12 = math.exp %11 : vector<8x32xf32>
    %cst_7 = arith.constant 1.000000e+00 : f32
    %13 = vector.broadcast %cst_7 : f32 to vector<8x32xf32>
    %14 = arith.addf %13, %12 : vector<8x32xf32>
    %15 = arith.divf %13, %14 : vector<8x32xf32>
    %16 = vector.extract_strided_slice %7 {offsets = [0, 32], sizes = [8, 32], strides = [1, 1]} : vector<8x96xf32> to vector<8x32xf32>
    %17 = vector.extract_strided_slice %5 {offsets = [0, 32], sizes = [8, 32], strides = [1, 1]} : vector<8x96xf32> to vector<8x32xf32>
    %18 = arith.addf %16, %17 : vector<8x32xf32>
    %19 = arith.negf %18 : vector<8x32xf32>
    %20 = math.exp %19 : vector<8x32xf32>
    %cst_8 = arith.constant 1.000000e+00 : f32
    %21 = vector.broadcast %cst_8 : f32 to vector<8x32xf32>
    %22 = arith.addf %21, %20 : vector<8x32xf32>
    %23 = arith.divf %21, %22 : vector<8x32xf32>
    %24 = vector.extract_strided_slice %7 {offsets = [0, 64], sizes = [8, 32], strides = [1, 1]} : vector<8x96xf32> to vector<8x32xf32>
    %25 = vector.extract_strided_slice %5 {offsets = [0, 64], sizes = [8, 32], strides = [1, 1]} : vector<8x96xf32> to vector<8x32xf32>
    %c0_9 = arith.constant 0 : index
    %c0_10 = arith.constant 0 : index
    %26 = vector.load %arg5[%c0_9, %c0_10] : memref<1x32xf32, #tpu.memory_space<vmem>>, vector<1x32xf32>
    %27 = vector.broadcast %26 : vector<1x32xf32> to vector<8x32xf32>
    %28 = arith.addf %25, %27 : vector<8x32xf32>
    %29 = arith.mulf %15, %28 : vector<8x32xf32>
    %30 = arith.addf %24, %29 : vector<8x32xf32>
    %31 = math.tanh %30 : vector<8x32xf32>
    %cst_11 = arith.constant 1.000000e+00 : f32
    %32 = vector.broadcast %cst_11 : f32 to vector<8x32xf32>
    %33 = arith.subf %32, %23 : vector<8x32xf32>
    %34 = arith.mulf %33, %31 : vector<8x32xf32>
    %35 = arith.mulf %23, %3 : vector<8x32xf32>
    %36 = arith.addf %34, %35 : vector<8x32xf32>
    %c0_12 = arith.constant 0 : index
    %c0_13 = arith.constant 0 : index
    %37 = vector.load %arg9[%c0_12, %c0_13] : memref<8x32xf32, #tpu.memory_space<vmem>>, vector<8x32xf32>
    tpu.vector_store %arg9[%c0_12, %c0_13], %36 {strides = array<i32>} : memref<8x32xf32, #tpu.memory_space<vmem>>, vector<8x32xf32>,
    %c0_14 = arith.constant 0 : index
    %c0_15 = arith.constant 0 : index
    %c0_16 = arith.constant 0 : index
    %38 = vector.load %arg7[%c0_14, %c0_15, %c0_16] : memref<1x8x32xf32, #tpu.memory_space<vmem>>, vector<1x8x32xf32>
    %39 = vector.shape_cast %38 : vector<1x8x32xf32> to vector<8x32xf32>
    %40 = vector.shape_cast %36 : vector<8x32xf32> to vector<1x8x32xf32>
    tpu.vector_store %arg7[%c0_14, %c0_15, %c0_16], %40 {strides = array<i32>} : memref<1x8x32xf32, #tpu.memory_space<vmem>>, vector<1x8x32xf32>,
    %c0_17 = arith.constant 0 : index
    %c0_18 = arith.constant 0 : index
    %41 = vector.load %arg10[%c0_17, %c0_18] : memref<8x32xf32, #tpu.memory_space<vmem>>, vector<8x32xf32>
    %c0_19 = arith.constant 0 : index
    %c0_20 = arith.constant 0 : index
    %42 = vector.load %arg4[%c0_19, %c0_20] : memref<32x96xf32, #tpu.memory_space<vmem>>, vector<32x96xf32>
    %cst_21 = arith.constant dense<0.000000e+00> : vector<8x96xf32>
    %43 = tpu.matmul %41, %42, %cst_21 {dimension_numbers = #tpu.dot_dimension_numbers<[1], [0], [0], [1], [0, 0, 1, 1], [], []>} : vector<8x32xf32>, vector<32x96xf32>, vector<8x96xf32> -> vector<8x96xf32>
    %c0_22 = arith.constant 0 : index
    %c0_23 = arith.constant 0 : index
    %c0_24 = arith.constant 0 : index
    %44 = vector.load %arg2[%c0_22, %c0_23, %c0_24] : memref<1x8x96xf32, #tpu.memory_space<vmem>>, vector<1x8x96xf32>
    %45 = vector.shape_cast %44 : vector<1x8x96xf32> to vector<8x96xf32>
    %46 = vector.extract_strided_slice %45 {offsets = [0, 0], sizes = [8, 32], strides = [1, 1]} : vector<8x96xf32> to vector<8x32xf32>
    %47 = vector.extract_strided_slice %43 {offsets = [0, 0], sizes = [8, 32], strides = [1, 1]} : vector<8x96xf32> to vector<8x32xf32>
    %48 = arith.addf %46, %47 : vector<8x32xf32>
    %49 = arith.negf %48 : vector<8x32xf32>
    %50 = math.exp %49 : vector<8x32xf32>
    %cst_25 = arith.constant 1.000000e+00 : f32
    %51 = vector.broadcast %cst_25 : f32 to vector<8x32xf32>
    %52 = arith.addf %51, %50 : vector<8x32xf32>
    %53 = arith.divf %51, %52 : vector<8x32xf32>
    %54 = vector.extract_strided_slice %45 {offsets = [0, 32], sizes = [8, 32], strides = [1, 1]} : vector<8x96xf32> to vector<8x32xf32>
    %55 = vector.extract_strided_slice %43 {offsets = [0, 32], sizes = [8, 32], strides = [1, 1]} : vector<8x96xf32> to vector<8x32xf32>
    %56 = arith.addf %54, %55 : vector<8x32xf32>
    %57 = arith.negf %56 : vector<8x32xf32>
    %58 = math.exp %57 : vector<8x32xf32>
    %cst_26 = arith.constant 1.000000e+00 : f32
    %59 = vector.broadcast %cst_26 : f32 to vector<8x32xf32>
    %60 = arith.addf %59, %58 : vector<8x32xf32>
    %61 = arith.divf %59, %60 : vector<8x32xf32>
    %62 = vector.extract_strided_slice %45 {offsets = [0, 64], sizes = [8, 32], strides = [1, 1]} : vector<8x96xf32> to vector<8x32xf32>
    %63 = vector.extract_strided_slice %43 {offsets = [0, 64], sizes = [8, 32], strides = [1, 1]} : vector<8x96xf32> to vector<8x32xf32>
    %c0_27 = arith.constant 0 : index
    %c0_28 = arith.constant 0 : index
    %64 = vector.load %arg6[%c0_27, %c0_28] : memref<1x32xf32, #tpu.memory_space<vmem>>, vector<1x32xf32>
    %65 = vector.broadcast %64 : vector<1x32xf32> to vector<8x32xf32>
    %66 = arith.addf %63, %65 : vector<8x32xf32>
    %67 = arith.mulf %53, %66 : vector<8x32xf32>
    %68 = arith.addf %62, %67 : vector<8x32xf32>
    %69 = math.tanh %68 : vector<8x32xf32>
    %cst_29 = arith.constant 1.000000e+00 : f32
    %70 = vector.broadcast %cst_29 : f32 to vector<8x32xf32>
    %71 = arith.subf %70, %61 : vector<8x32xf32>
    %72 = arith.mulf %71, %69 : vector<8x32xf32>
    %73 = arith.mulf %61, %41 : vector<8x32xf32>
    %74 = arith.addf %72, %73 : vector<8x32xf32>
    %c0_30 = arith.constant 0 : index
    %c0_31 = arith.constant 0 : index
    %75 = vector.load %arg10[%c0_30, %c0_31] : memref<8x32xf32, #tpu.memory_space<vmem>>, vector<8x32xf32>
    tpu.vector_store %arg10[%c0_30, %c0_31], %74 {strides = array<i32>} : memref<8x32xf32, #tpu.memory_space<vmem>>, vector<8x32xf32>,
    %c0_32 = arith.constant 0 : index
    %c0_33 = arith.constant 0 : index
    %c0_34 = arith.constant 0 : index
    %76 = vector.load %arg8[%c0_32, %c0_33, %c0_34] : memref<1x8x32xf32, #tpu.memory_space<vmem>>, vector<1x8x32xf32>
    %77 = vector.shape_cast %76 : vector<1x8x32xf32> to vector<8x32xf32>
    %78 = vector.shape_cast %74 : vector<8x32xf32> to vector<1x8x32xf32>
    tpu.vector_store %arg8[%c0_32, %c0_33, %c0_34], %78 {strides = array<i32>} : memref<1x8x32xf32, #tpu.memory_space<vmem>>, vector<1x8x32xf32>,
    return
  }
  func.func @transform_0(%arg0: i32) -> (i32, i32, i32) {
    %c0_i32 = arith.constant 0 : i32
    %c0_i32_0 = arith.constant 0 : i32
    %c0_i32_1 = arith.constant 0 : i32
    return %arg0, %c0_i32, %c0_i32_0 : i32, i32, i32
  }
  func.func @transform_1(%arg0: i32) -> (i32, i32, i32) {
    %c1_i32 = arith.constant 1 : i32
    %0 = arith.subi %c1_i32, %arg0 : i32
    %c0_i32 = arith.constant 0 : i32
    %c0_i32_0 = arith.constant 0 : i32
    %c0_i32_1 = arith.constant 0 : i32
    return %0, %c0_i32, %c0_i32_0 : i32, i32, i32
  }
  func.func @transform_2(%arg0: i32) -> (i32, i32) {
    %c0_i32 = arith.constant 0 : i32
    %c0_i32_0 = arith.constant 0 : i32
    %c0_i32_1 = arith.constant 0 : i32
    return %c0_i32, %c0_i32_0 : i32, i32
  }
  func.func @transform_3(%arg0: i32) -> (i32, i32) {
    %c0_i32 = arith.constant 0 : i32
    %c0_i32_0 = arith.constant 0 : i32
    %c0_i32_1 = arith.constant 0 : i32
    return %c0_i32, %c0_i32_0 : i32, i32
  }
  func.func @transform_4(%arg0: i32) -> (i32, i32) {
    %c0_i32 = arith.constant 0 : i32
    %c0_i32_0 = arith.constant 0 : i32
    %c0_i32_1 = arith.constant 0 : i32
    return %c0_i32, %c0_i32_0 : i32, i32
  }
  func.func @transform_5(%arg0: i32) -> (i32, i32) {
    %c0_i32 = arith.constant 0 : i32
    %c0_i32_0 = arith.constant 0 : i32
    %c0_i32_1 = arith.constant 0 : i32
    return %c0_i32, %c0_i32_0 : i32, i32
  }
  func.func @transform_6(%arg0: i32) -> (i32, i32, i32) {
    %c0_i32 = arith.constant 0 : i32
    %c0_i32_0 = arith.constant 0 : i32
    %c0_i32_1 = arith.constant 0 : i32
    return %arg0, %c0_i32, %c0_i32_0 : i32, i32, i32
  }
  func.func @transform_7(%arg0: i32) -> (i32, i32, i32) {
    %c1_i32 = arith.constant 1 : i32
    %0 = arith.subi %c1_i32, %arg0 : i32
    %c0_i32 = arith.constant 0 : i32
    %c0_i32_0 = arith.constant 0 : i32
    %c0_i32_1 = arith.constant 0 : i32
    return %0, %c0_i32, %c0_i32_0 : i32, i32, i32
  }
}

module attributes {stable_mosaic.version = 11 : i64} {
  func.func @kernel(%arg0: i32, %arg1: memref<16x64xbf16, #tpu.memory_space<vmem>>, %arg2: memref<64x32xbf16, #tpu.memory_space<vmem>>, %arg3: memref<1x32xf32, #tpu.memory_space<vmem>>, %arg4: memref<16x32xf32, #tpu.memory_space<vmem>>) attributes {dimension_semantics = [#tpu.dimension_semantics<parallel>], iteration_bounds = array<i64: 1>, scalar_prefetch = 0 : i64, scratch_operands = 0 : i64, tpu.core_type = #tpu.core_type<tc>, window_params = [{transform_indices = @transform_0, window_bounds = array<i64: 16, 64>}, {pipeline_mode = #tpu.pipeline_mode<synchronous>, transform_indices = @transform_1, window_bounds = array<i64: 64, 32>}, {pipeline_mode = #tpu.pipeline_mode<synchronous>, transform_indices = @transform_2, window_bounds = array<i64: 1, 32>}, {transform_indices = @transform_3, window_bounds = array<i64: 16, 32>}]} {
    %c0 = arith.constant 0 : index
    %c0_0 = arith.constant 0 : index
    %0 = vector.load %arg1[%c0, %c0_0] : memref<16x64xbf16, #tpu.memory_space<vmem>>, vector<16x64xbf16>
    %c0_1 = arith.constant 0 : index
    %c0_2 = arith.constant 0 : index
    %1 = vector.load %arg2[%c0_1, %c0_2] : memref<64x32xbf16, #tpu.memory_space<vmem>>, vector<64x32xbf16>
    %cst = arith.constant dense<0.000000e+00> : vector<16x32xf32>
    %2 = tpu.matmul %0, %1, %cst {dimension_numbers = #tpu.dot_dimension_numbers<[1], [0], [0], [1], [0, 0, 1, 1], [], []>} : vector<16x64xbf16>, vector<64x32xbf16>, vector<16x32xf32> -> vector<16x32xf32>
    %c0_3 = arith.constant 0 : index
    %c0_4 = arith.constant 0 : index
    %3 = vector.load %arg3[%c0_3, %c0_4] : memref<1x32xf32, #tpu.memory_space<vmem>>, vector<1x32xf32>
    %4 = vector.broadcast %3 : vector<1x32xf32> to vector<16x32xf32>
    %5 = arith.addf %2, %4 : vector<16x32xf32>
    %cst_5 = arith.constant 5.000000e-01 : f32
    %6 = vector.broadcast %cst_5 : f32 to vector<16x32xf32>
    %7 = arith.mulf %6, %5 : vector<16x32xf32>
    %cst_6 = arith.constant 0.707106769 : f32
    %8 = vector.broadcast %cst_6 : f32 to vector<16x32xf32>
    %9 = arith.mulf %5, %8 : vector<16x32xf32>
    %10 = math.erf %9 : vector<16x32xf32>
    %cst_7 = arith.constant 1.000000e+00 : f32
    %11 = vector.broadcast %cst_7 : f32 to vector<16x32xf32>
    %12 = arith.addf %11, %10 : vector<16x32xf32>
    %13 = arith.mulf %7, %12 : vector<16x32xf32>
    %c0_8 = arith.constant 0 : index
    %c0_9 = arith.constant 0 : index
    %14 = vector.load %arg4[%c0_8, %c0_9] : memref<16x32xf32, #tpu.memory_space<vmem>>, vector<16x32xf32>
    tpu.vector_store %arg4[%c0_8, %c0_9], %13 {strides = array<i32>} : memref<16x32xf32, #tpu.memory_space<vmem>>, vector<16x32xf32>,
    return
  }
  func.func @transform_0(%arg0: i32) -> (i32, i32) {
    %c0_i32 = arith.constant 0 : i32
    %c0_i32_0 = arith.constant 0 : i32
    return %arg0, %c0_i32 : i32, i32
  }
  func.func @transform_1(%arg0: i32) -> (i32, i32) {
    %c0_i32 = arith.constant 0 : i32
    %c0_i32_0 = arith.constant 0 : i32
    %c0_i32_1 = arith.constant 0 : i32
    return %c0_i32, %c0_i32_0 : i32, i32
  }
  func.func @transform_2(%arg0: i32) -> (i32, i32) {
    %c0_i32 = arith.constant 0 : i32
    %c0_i32_0 = arith.constant 0 : i32
    %c0_i32_1 = arith.constant 0 : i32
    return %c0_i32, %c0_i32_0 : i32, i32
  }
  func.func @transform_3(%arg0: i32) -> (i32, i32) {
    %c0_i32 = arith.constant 0 : i32
    %c0_i32_0 = arith.constant 0 : i32
    return %arg0, %c0_i32 : i32, i32
  }
}

module attributes {stable_mosaic.version = 11 : i64} {
  func.func @_mean_time_kernel(%arg0: i32, %arg1: memref<1x8x32xf32, #tpu.memory_space<vmem>>, %arg2: memref<1x1x32xf32, #tpu.memory_space<vmem>>) attributes {dimension_semantics = [#tpu.dimension_semantics<parallel>], iteration_bounds = array<i64: 2>, scalar_prefetch = 0 : i64, scratch_operands = 0 : i64, tpu.core_type = #tpu.core_type<tc>, window_params = [{transform_indices = @transform_0, window_bounds = array<i64: 1, 8, 32>}, {transform_indices = @transform_1, window_bounds = array<i64: 1, 1, 32>}]} {
    %c0 = arith.constant 0 : index
    %c0_0 = arith.constant 0 : index
    %c0_1 = arith.constant 0 : index
    %0 = vector.load %arg1[%c0, %c0_0, %c0_1] : memref<1x8x32xf32, #tpu.memory_space<vmem>>, vector<1x8x32xf32>
    %cst = arith.constant dense<0.000000e+00> : vector<1x32xf32>
    %1 = vector.multi_reduction <add>, %0, %cst [1] : vector<1x8x32xf32> to vector<1x32xf32>
    %2 = vector.shape_cast %1 : vector<1x32xf32> to vector<1x1x32xf32>
    %cst_2 = arith.constant 8.000000e+00 : f32
    %3 = vector.broadcast %cst_2 : f32 to vector<1x1x32xf32>
    %4 = arith.divf %2, %3 : vector<1x1x32xf32>
    %c0_3 = arith.constant 0 : index
    %c0_4 = arith.constant 0 : index
    %c0_5 = arith.constant 0 : index
    %5 = vector.load %arg2[%c0_3, %c0_4, %c0_5] : memref<1x1x32xf32, #tpu.memory_space<vmem>>, vector<1x1x32xf32>
    tpu.vector_store %arg2[%c0_3, %c0_4, %c0_5], %4 {strides = array<i32>} : memref<1x1x32xf32, #tpu.memory_space<vmem>>, vector<1x1x32xf32>,
    return
  }
  func.func @transform_0(%arg0: i32) -> (i32, i32, i32) {
    %c0_i32 = arith.constant 0 : i32
    %c0_i32_0 = arith.constant 0 : i32
    %c0_i32_1 = arith.constant 0 : i32
    return %arg0, %c0_i32, %c0_i32_0 : i32, i32, i32
  }
  func.func @transform_1(%arg0: i32) -> (i32, i32, i32) {
    %c0_i32 = arith.constant 0 : i32
    %c0_i32_0 = arith.constant 0 : i32
    %c0_i32_1 = arith.constant 0 : i32
    return %arg0, %c0_i32, %c0_i32_0 : i32, i32, i32
  }
}

module attributes {stable_mosaic.version = 11 : i64} {
  func.func @kernel(%arg0: i32, %arg1: memref<8x32xbf16, #tpu.memory_space<vmem>>, %arg2: memref<32x16xbf16, #tpu.memory_space<vmem>>, %arg3: memref<1x16xf32, #tpu.memory_space<vmem>>, %arg4: memref<8x16xf32, #tpu.memory_space<vmem>>) attributes {dimension_semantics = [#tpu.dimension_semantics<parallel>], iteration_bounds = array<i64: 1>, scalar_prefetch = 0 : i64, scratch_operands = 0 : i64, tpu.core_type = #tpu.core_type<tc>, window_params = [{transform_indices = @transform_0, window_bounds = array<i64: 8, 32>}, {pipeline_mode = #tpu.pipeline_mode<synchronous>, transform_indices = @transform_1, window_bounds = array<i64: 32, 16>}, {pipeline_mode = #tpu.pipeline_mode<synchronous>, transform_indices = @transform_2, window_bounds = array<i64: 1, 16>}, {transform_indices = @transform_3, window_bounds = array<i64: 8, 16>}]} {
    %c0 = arith.constant 0 : index
    %c0_0 = arith.constant 0 : index
    %0 = vector.load %arg1[%c0, %c0_0] : memref<8x32xbf16, #tpu.memory_space<vmem>>, vector<8x32xbf16>
    %c0_1 = arith.constant 0 : index
    %c0_2 = arith.constant 0 : index
    %1 = vector.load %arg2[%c0_1, %c0_2] : memref<32x16xbf16, #tpu.memory_space<vmem>>, vector<32x16xbf16>
    %cst = arith.constant dense<0.000000e+00> : vector<8x16xf32>
    %2 = tpu.matmul %0, %1, %cst {dimension_numbers = #tpu.dot_dimension_numbers<[1], [0], [0], [1], [0, 0, 1, 1], [], []>} : vector<8x32xbf16>, vector<32x16xbf16>, vector<8x16xf32> -> vector<8x16xf32>
    %c0_3 = arith.constant 0 : index
    %c0_4 = arith.constant 0 : index
    %3 = vector.load %arg3[%c0_3, %c0_4] : memref<1x16xf32, #tpu.memory_space<vmem>>, vector<1x16xf32>
    %4 = vector.broadcast %3 : vector<1x16xf32> to vector<8x16xf32>
    %5 = arith.addf %2, %4 : vector<8x16xf32>
    %c0_5 = arith.constant 0 : index
    %c0_6 = arith.constant 0 : index
    %6 = vector.load %arg4[%c0_5, %c0_6] : memref<8x16xf32, #tpu.memory_space<vmem>>, vector<8x16xf32>
    tpu.vector_store %arg4[%c0_5, %c0_6], %5 {strides = array<i32>} : memref<8x16xf32, #tpu.memory_space<vmem>>, vector<8x16xf32>,
    return
  }
  func.func @transform_0(%arg0: i32) -> (i32, i32) {
    %c0_i32 = arith.constant 0 : i32
    %c0_i32_0 = arith.constant 0 : i32
    return %arg0, %c0_i32 : i32, i32
  }
  func.func @transform_1(%arg0: i32) -> (i32, i32) {
    %c0_i32 = arith.constant 0 : i32
    %c0_i32_0 = arith.constant 0 : i32
    %c0_i32_1 = arith.constant 0 : i32
    return %c0_i32, %c0_i32_0 : i32, i32
  }
  func.func @transform_2(%arg0: i32) -> (i32, i32) {
    %c0_i32 = arith.constant 0 : i32
    %c0_i32_0 = arith.constant 0 : i32
    %c0_i32_1 = arith.constant 0 : i32
    return %c0_i32, %c0_i32_0 : i32, i32
  }
  func.func @transform_3(%arg0: i32) -> (i32, i32) {
    %c0_i32 = arith.constant 0 : i32
    %c0_i32_0 = arith.constant 0 : i32
    return %arg0, %c0_i32 : i32, i32
  }
}

</mosaic_0001>

<bundles_post_ra>
// kernel: audio_model_forward.22
= control target key start
LH: loop header
LB: loop body
LE: loop exit
PB: predicated region body
PF: predicated region fallthrough
CT: control target
= control target key end

     0   :  { %s458_s12 = smov 0   ;;  %s460_s13 = smov 0   ;;  %s504_s0 = inlined_call_operand.vmem [shape: f32[2,8,256], index: 0, kind: input, shape index: {}]   ;;  %s505_s1 = inlined_call_operand.vmem [shape: f32[1,8,1], index: 1, kind: input, shape index: {}]   ;;  %s506_s2 = inlined_call_operand.vmem [shape: f32[1,8,1], index: 2, kind: input, shape index: {}]   ;;  %s507_s3 = inlined_call_operand.vmem [shape: f32[2,8,256], index: 3, kind: output, shape index: {}]  }
   0x1   :  { %s462_s14 = smov 0  }
   0x2 LB: > { %s25_s15 = sadd.s32 1, %s431_s13  ;;  %p370_p0 = scmp.ge.s32.totalorder %s435_s14, 1  ;;  %s435_s14 = sphi %s462_s14, %s13_s14   ;;  %s431_s13 = sphi %s460_s13, %s509_s13   ;;  %s427_s12 = sphi %s458_s12, %s508_s12  }
   0x3   : > { %p27_p1 = scmp.ge.s32.totalorder %s25_s15, 2  ;;  %p158_p2 = scmp.lt.s32.totalorder %s435_s14, 3 }
   0x5   : > { %s511_s15 = smov (%p27_p1, %s25_s15), 0  ;;  %p159_p3 = pnand %p370_p0, %p158_p2 }
   0x6   : > { %p191_p4 = scmp.lt.s32.totalorder (!%p159_p3), %s427_s12, 1 }
   0x7   : > { %162 = sbr.rel (%p159_p3) target bundleno = 166 (0xa6), region = 32 }
   0xc   : > { %v251_v0 = vld [vmem:[%s505_s1] sm:$0xff]  ;;  %v437_v1 = vmov 0   ;;  %s513_s12 = smov (!%p191_p4, %s427_s12), 1 }
   0xd   : > { %404 = vset.pattern.permute.xlu0 %v437_v1  ;;  %v259_v2 = vld [vmem:[%s506_s2] sm:$0xff]  ;;  %s377_s20 = sshll.u32 %s513_s12, 4 }
   0xe   : > { %254 = vperm.xlu0 %404, %v251_v0   ;;  %s198_s23 = scalar_lea.vmem %s504_s0, %s377_s20  ;;  %s208_s26 = scalar_lea.vmem %s507_s3, %s377_s20 }
   0xf   : > { %v210_v3 = vld [vmem:[%s198_s23] sm:$0xff]  ;;  %v211_v4 = vld [vmem:[%s198_s23 + $0x8] sm:$0xff] }
  0x10   : > { %v212_v5 = vrot.slane %v210_v3, 4  ;;  %v218_v6 = vrot.slane %v211_v4, 4 }
  0x12   : > { %262 = vperm.xlu0 %404, %v259_v2   ;;  %v213_v7 = vadd.f32 %v212_v5, %v210_v3  ;;  %v219_v8 = vadd.f32 %v218_v6, %v211_v4 }
  0x14   : > { %v214_v9 = vrot.slane %v213_v7, 2  ;;  %v220_v10 = vrot.slane %v219_v8, 2 }
  0x16   : > { %v215_v11 = vadd.f32 %v214_v9, %v213_v7  ;;  %v221_v12 = vadd.f32 %v220_v10, %v219_v8 }
  0x18   : > { %v216_v13 = vrot.slane %v215_v11, 1  ;;  %v222_v14 = vrot.slane %v221_v12, 1 }
  0x1a   : > { %v217_v15 = vadd.f32 %v216_v13, %v215_v11  ;;  %v223_v16 = vadd.f32 %v222_v14, %v221_v12 }
  0x1c   : > { %v225_v17 = vmul.f32 0.125, %v217_v15  ;;  %v226_v18 = vmul.f32 0.125, %v223_v16 }
  0x1e   : > { %v227_v19 = vsub.f32 %v210_v3, %v225_v17  ;;  %v228_v20 = vsub.f32 %v211_v4, %v226_v18 }
  0x20   : > { %v229_v21 = vmul.f32 %v227_v19, %v227_v19  ;;  %v230_v22 = vmul.f32 %v228_v20, %v228_v20 }
  0x22   : > { %v231_v23 = vrot.slane %v229_v21, 4  ;;  %v237_v24 = vrot.slane %v230_v22, 4 }
  0x24   : > { %v232_v25 = vadd.f32 %v231_v23, %v229_v21  ;;  %v238_v26 = vadd.f32 %v237_v24, %v230_v22 }
  0x26   : > { %v233_v27 = vrot.slane %v232_v25, 2  ;;  %v239_v28 = vrot.slane %v238_v26, 2 }
  0x28   : > { %v234_v29 = vadd.f32 %v233_v27, %v232_v25  ;;  %v240_v30 = vadd.f32 %v239_v28, %v238_v26 }
  0x2a   : > { %v235_v31 = vrot.slane %v234_v29, 1  ;;  %v241_v32 = vrot.slane %v240_v30, 1 }
  0x2c   : > { %v236_v33 = vadd.f32 %v235_v31, %v234_v29  ;;  %v242_v34 = vadd.f32 %v241_v32, %v240_v30 }
  0x2e   : > { %v243_v35 = vmul.f32 0.125, %v236_v33  ;;  %v244_v36 = vmul.f32 0.125, %v242_v34 }
  0x30   : > { %v245_v37 = vadd.f32 1e-05, %v243_v35  ;;  %v246_v38 = vadd.f32 1e-05, %v244_v36 }
  0x32   : > { %405 = vrsqrt.f32 %v245_v37 }
  0x33   : > { %407 = vrsqrt.f32 %v246_v38 }
  0x3f   : > { %v406_v39 = vpop.eup %405 }
  0x40   : > { %v408_v40 = vpop.eup %407  ;;  %v249_v41 = vmul.f32 %v406_v39, %v227_v19 }
  0x41   : > { %v250_v42 = vmul.f32 %v408_v40, %v228_v20 }
  0x89   : > { %v255_v43 = vpop.permute.xlu0 %254 }
  0x8a   : > { %v257_v44 = vmul.f32 %v255_v43, %v249_v41  ;;  %v258_v45 = vmul.f32 %v255_v43, %v250_v42 }
  0x8d   : > { %v263_v46 = vpop.permute.xlu0 %262 }
  0x8e   : > { %v265_v47 = vadd.f32 %v263_v46, %v257_v44  ;;  %v266_v48 = vadd.f32 %v263_v46, %v258_v45 }
  0x90   : > { %v269_v49 = vmul.f32 0.70710677, %v265_v47  ;;  %v270_v50 = vmul.f32 0.70710677, %v266_v48  ;;  %v267_v53 = vmul.f32 0.5, %v265_v47  ;;  %v268_v55 = vmul.f32 0.5, %v266_v48 }
  0x92   : > { %409 = verf.f32 %v269_v49 }
  0x93   : > { %411 = verf.f32 %v270_v50 }
  0x9f   : > { %v410_v51 = vpop.eup %409 }
  0xa0   : > { %v412_v52 = vpop.eup %411  ;;  %v273_v54 = vadd.f32 1.0, %v410_v51 }
  0xa1   : > { %v274_v56 = vadd.f32 1.0, %v412_v52 }
  0xa2   : > { %v275_v57 = vmul.f32 %v273_v54, %v267_v53 }
  0xa3   : > { %v276_v58 = vmul.f32 %v274_v56, %v268_v55 }
  0xa4   : > { %277 = vst [vmem:[%s208_s26] sm:$0xff] %v275_v57 }
  0xa5   : > { %278 = vst [vmem:[%s208_s26 + $0x8] sm:$0xff] %v276_v58 }
  0xa6 PF: > { %s13_s14 = sadd.s32 1, %s435_s14   ;;  %s508_s12 = smov %s431_s13 }
  0xa7   : > { %p10_p5 = scmp.ge.s32.totalorder %s13_s14, 4   ;;  %s509_s13 = smov %s511_s15 }
  0xa9   :  { %12 = sbr.rel (!%p10_p5) target bundleno = 2 (0x2), region = 62 }

// kernel: audio_model_forward.21
= control target key start
LH: loop header
LB: loop body
LE: loop exit
PB: predicated region body
PF: predicated region fallthrough
CT: control target
= control target key end

     0   :  { %vm118_vm0 = vcmask 1044480   ;;  %vm119_vm1 = vcmask 1045504   ;;  %v307_v1 = vmov 65535   ;;  %vm93_vm2 = vcmask 220160   ;;  %s433_s1 = inlined_call_operand.vmem [shape: bf16[27,32], index: 1, kind: input, shape index: {}]   ;;  %s434_s0 = inlined_call_operand.vmem [shape: bf16[128,27], index: 0, kind: input, shape index: {}]   ;;  %s435_s2 = inlined_call_operand.vmem [shape: f32[1,32], index: 2, kind: input, shape index: {}]   ;;  %s436_s3 = inlined_call_operand.vmem [shape: f32[128,32], index: 3, kind: output, shape index: {}]  }
   0x1   :  { %v297_v0 = vld [vmem:[%s433_s1 + $0x8] sm:$0x3f]   ;;  %v120_v2 = vsel %vm118_vm0, 4294967295, %v307_v1  ;;  %v299_v4 = vld [vmem:[%s434_s0] sm:$0xff]   ;;  %v303_v10 = vld [vmem:[%s434_s0 + $0x10] sm:$0xff]   ;;  %vm222_vm3 = vcmask 261120  }
   0x2   :  { %v121_v3 = vsel %vm119_vm1, %v120_v2, 0  ;;  %v298_v6 = vld [vmem:[%s433_s1] sm:$0xff]   ;;  %276 = vmatprep.mubr.msk.bf16.mxu0 %vm93_vm2, %v299_v4  ;;  %v301_v8 = vld [vmem:[%s434_s0 + $0x8] sm:$0xff]   ;;  %v304_v11 = vld [vmem:[%s434_s0 + $0x30] sm:$0xff]  }
   0x3   :  { %v123_v5 = vand.u32 %v297_v0, %v121_v3  ;;  %v300_v7 = vld [vmem:[%s434_s0 + $0x20] sm:$0xff]   ;;  %v302_v9 = vld [vmem:[%s434_s0 + $0x28] sm:$0xff]   ;;  %v305_v12 = vld [vmem:[%s434_s0 + $0x18] sm:$0xff]  }
   0x4   :  { %284 = vmatprep.mubr.msk.bf16.mxu1 %vm93_vm2, %v300_v7  ;;  %v306_v13 = vld [vmem:[%s434_s0 + $0x38] sm:$0xff]   ;;  %v243_v14 = vld [vmem:[%s435_s2] ss:$0 sm:$0xff] }
   0x5   :  { %272 = vmatprep.subr.bf16.mxu0 %v123_v5  ;;  %292 = vmatprep.subr.bf16.mxu1 %v123_v5 }
   0x6   :  { %273 = vmatpush3.bf16.msra.mxu0 %v123_v5  ;;  %294 = vmatpush3.bf16.msra.mxu1 %v123_v5 }
   0x7   :  { %274 = vmatprep.subr.bf16.mxu0 %v298_v6  ;;  %293 = vmatprep.subr.bf16.mxu1 %v298_v6 }
   0xa   :  { %275 = vmatpush3.bf16.msra.mxu0 %v298_v6  ;;  %295 = vmatpush3.bf16.msra.mxu1 %v298_v6 }
   0xd   :  { %277 = vmatmul.mubr.msk.bf16.vlgmr.msra.gmra.mxu0 %vm93_vm2, %v301_v8  ;;  %285 = vmatmul.mubr.msk.bf16.vlgmr.msra.gmra.mxu1 %vm93_vm2, %v302_v9 }
   0xe   :  { %280 = vmatprep.mubr.msk.bf16.mxu0 %vm93_vm2, %v303_v10  ;;  %288 = vmatprep.mubr.msk.bf16.mxu1 %vm93_vm2, %v304_v11 }
  0x15   :  { %281 = vmatmul.mubr.msk.bf16.gmra.mxu0 %vm93_vm2, %v305_v12  ;;  %289 = vmatmul.mubr.msk.bf16.gmra.mxu1 %vm93_vm2, %v306_v13 }
  0xcd   :  { %v278_v15 = vpop.f32.mrf.mxu0  ;;  %v286_v16 = vpop.f32.mrf.mxu1 }
  0xce   :  { %v168_v17 = vadd.f32 %v278_v15, %v243_v14  ;;  %v200_v18 = vadd.f32 %v286_v16, %v243_v14 }
  0xcf   :  { %v159_v19 = vpop.f32.mrf.mxu0  ;;  %v191_v20 = vpop.f32.mrf.mxu1 }
  0xd0   :  { %225 = vst.msk [vmem:[%s436_s3 + $0x10] sm:$0xff] %vm222_vm3, %v168_v17  ;;  %233 = vst.msk [vmem:[%s436_s3 + $0x50] sm:$0xff] %vm222_vm3, %v200_v18  ;;  %v160_v21 = vadd.f32 %v243_v14, %v159_v19  ;;  %v192_v22 = vadd.f32 %v243_v14, %v191_v20 }
  0xd1   :  { %v279_v23 = vpop.f32.mrf.mxu0  ;;  %v287_v24 = vpop.f32.mrf.mxu1 }
  0xd2   :  { %223 = vst.msk [vmem:[%s436_s3] sm:$0xff] %vm222_vm3, %v160_v21  ;;  %231 = vst.msk [vmem:[%s436_s3 + $0x40] sm:$0xff] %vm222_vm3, %v192_v22  ;;  %v171_v25 = vadd.f32 %v279_v23, %v243_v14  ;;  %v203_v26 = vadd.f32 %v287_v24, %v243_v14 }
  0xd3   :  { %v162_v27 = vpop.f32.mrf.mxu0  ;;  %v194_v28 = vpop.f32.mrf.mxu1 }
  0xd4   :  { %226 = vst.msk [vmem:[%s436_s3 + $0x18] sm:$0xff] %vm222_vm3, %v171_v25  ;;  %234 = vst.msk [vmem:[%s436_s3 + $0x58] sm:$0xff] %vm222_vm3, %v203_v26  ;;  %v163_v29 = vadd.f32 %v243_v14, %v162_v27  ;;  %v195_v30 = vadd.f32 %v243_v14, %v194_v28 }
  0xd5   :  { %v282_v31 = vpop.f32.mrf.mxu0  ;;  %v290_v32 = vpop.f32.mrf.mxu1 }
  0xd6   :  { %224 = vst.msk [vmem:[%s436_s3 + $0x8] sm:$0xff] %vm222_vm3, %v163_v29  ;;  %232 = vst.msk [vmem:[%s436_s3 + $0x48] sm:$0xff] %vm222_vm3, %v195_v30  ;;  %v184_v33 = vadd.f32 %v282_v31, %v243_v14  ;;  %v216_v34 = vadd.f32 %v290_v32, %v243_v14 }
  0xd7   :  { %v175_v35 = vpop.f32.mrf.mxu0  ;;  %v207_v36 = vpop.f32.mrf.mxu1 }
  0xd8   :  { %229 = vst.msk [vmem:[%s436_s3 + $0x30] sm:$0xff] %vm222_vm3, %v184_v33  ;;  %237 = vst.msk [vmem:[%s436_s3 + $0x70] sm:$0xff] %vm222_vm3, %v216_v34  ;;  %v176_v37 = vadd.f32 %v243_v14, %v175_v35  ;;  %v208_v38 = vadd.f32 %v243_v14, %v207_v36 }
  0xd9   :  { %v283_v39 = vpop.f32.mrf.mxu0  ;;  %v291_v40 = vpop.f32.mrf.mxu1 }
  0xda   :  { %227 = vst.msk [vmem:[%s436_s3 + $0x20] sm:$0xff] %vm222_vm3, %v176_v37  ;;  %235 = vst.msk [vmem:[%s436_s3 + $0x60] sm:$0xff] %vm222_vm3, %v208_v38  ;;  %v187_v41 = vadd.f32 %v283_v39, %v243_v14  ;;  %v219_v42 = vadd.f32 %v291_v40, %v243_v14 }
  0xdb   :  { %v178_v43 = vpop.f32.mrf.mxu0  ;;  %v210_v44 = vpop.f32.mrf.mxu1 }
  0xdc   :  { %230 = vst.msk [vmem:[%s436_s3 + $0x38] sm:$0xff] %vm222_vm3, %v187_v41  ;;  %238 = vst.msk [vmem:[%s436_s3 + $0x78] sm:$0xff] %vm222_vm3, %v219_v42  ;;  %v179_v45 = vadd.f32 %v243_v14, %v178_v43  ;;  %v211_v46 = vadd.f32 %v243_v14, %v210_v44 }
  0xde   :  { %228 = vst.msk [vmem:[%s436_s3 + $0x28] sm:$0xff] %vm222_vm3, %v179_v45  ;;  %236 = vst.msk [vmem:[%s436_s3 + $0x68] sm:$0xff] %vm222_vm3, %v211_v46 }

// kernel: audio_model_forward.25
= control target key start
LH: loop header
LB: loop body
LE: loop exit
PB: predicated region body
PF: predicated region fallthrough
CT: control target
= control target key end

     0   :  { %vm321_vm0 = vcmask 261120   ;;  %s1119_s1 = inlined_call_operand.vmem [shape: bf16[288,32], index: 1, kind: input, shape index: {}]   ;;  %s1120_s0 = inlined_call_operand.vmem [shape: bf16[128,288], index: 0, kind: input, shape index: {}]   ;;  %s1121_s2 = inlined_call_operand.vmem [shape: f32[1,32], index: 2, kind: input, shape index: {}]   ;;  %s1122_s3 = inlined_call_operand.vmem [shape: f32[128,32], index: 3, kind: input, shape index: {}]   ;;  %s1123_s4 = inlined_call_operand.vmem [shape: f32[128,32], index: 4, kind: output, shape index: {}]  }
   0x1   :  { %v753_v0 = vld [vmem:[%s1119_s1 + $0x78] sm:$0xff]   ;;  %v755_v2 = vld [vmem:[%s1119_s1 + $0x70] sm:$0xff]   ;;  %v757_v4 = vld [vmem:[%s1119_s1 + $0x68] sm:$0xff]  }
   0x2   :  { %v754_v1 = vld [vmem:[%s1119_s1 + $0x38] sm:$0xff]   ;;  %643 = vmatprep.subr.bf16.mxu0 %v753_v0  ;;  %737 = vmatprep.subr.bf16.mxu1 %v753_v0  ;;  %v756_v3 = vld [vmem:[%s1119_s1 + $0x30] sm:$0xff]   ;;  %v758_v5 = vld [vmem:[%s1119_s1 + $0x28] sm:$0xff]  }
   0x3   :  { %644 = vmatpush3.bf16.msra.mxu0 %v754_v1  ;;  %745 = vmatpush3.bf16.msra.mxu1 %v754_v1  ;;  %v759_v6 = vld [vmem:[%s1119_s1 + $0x60] sm:$0xff]   ;;  %v761_v8 = vld [vmem:[%s1119_s1 + $0x58] sm:$0xff]   ;;  %v763_v10 = vld [vmem:[%s1119_s1 + $0x50] sm:$0xff]  }
   0x4   :  { %645 = vmatprep.subr.bf16.mxu0 %v755_v2  ;;  %738 = vmatprep.subr.bf16.mxu1 %v755_v2  ;;  %v760_v7 = vld [vmem:[%s1119_s1 + $0x20] sm:$0xff]   ;;  %v762_v9 = vld [vmem:[%s1119_s1 + $0x18] sm:$0xff]   ;;  %v764_v13 = vld [vmem:[%s1119_s1 + $0x10] sm:$0xff]  }
   0x5   :  { %v771_v11 = vld [vmem:[%s1120_s0 + $0x4] ss:$12 sps:$4 sm:$0xff]   ;;  %v774_v12 = vld [vmem:[%s1120_s0 + $0x94] ss:$12 sps:$4 sm:$0xff]   ;;  %v765_v14 = vld [vmem:[%s1119_s1 + $0x48] sm:$0xff]  }
   0x6   :  { %378 = vmatprep.mubr.bf16.mxu0 %v771_v11  ;;  %426 = vmatprep.mubr.bf16.mxu1 %v774_v12  ;;  %v766_v15 = vld [vmem:[%s1119_s1 + $0x8] sm:$0xff]   ;;  %v767_v16 = vld [vmem:[%s1119_s1 + $0x40] sm:$0xff]   ;;  %v772_v20 = vld [vmem:[%s1120_s0 + $0x90] ss:$12 sps:$4 sm:$0xff]  }
   0x7   :  { %646 = vmatpush3.bf16.msra.mxu0 %v756_v3  ;;  %746 = vmatpush3.bf16.msra.mxu1 %v756_v3  ;;  %v768_v17 = vld [vmem:[%s1119_s1] sm:$0xff]   ;;  %v775_v19 = vld [vmem:[%s1119_s1 + $0x88] sm:$0xff]   ;;  %v786_v28 = vld [vmem:[%s1120_s0 + $0x30] ss:$12 sps:$4 sm:$0xff]  }
   0x8   :  { %647 = vmatprep.subr.bf16.mxu0 %v757_v4  ;;  %739 = vmatprep.subr.bf16.mxu1 %v757_v4  ;;  %v769_v18 = vld [vmem:[%s1120_s0] ss:$12 sps:$4 sm:$0xff]   ;;  %v776_v21 = vld [vmem:[%s1120_s0 + $0x1c] ss:$12 sps:$4 sm:$0xff]   ;;  %v780_v24 = vld [vmem:[%s1120_s0 + $0x18] ss:$12 sps:$4 sm:$0xff]  }
   0x9   :  { %v778_v22 = vld [vmem:[%s1120_s0 + $0xac] ss:$12 sps:$4 sm:$0xff]   ;;  %v782_v23 = vld [vmem:[%s1119_s1 + $0x80] sm:$0xff]   ;;  %v781_v25 = vld [vmem:[%s1120_s0 + $0xa8] ss:$12 sps:$4 sm:$0xff]  }
   0xa   :  { %v783_v26 = vld [vmem:[%s1120_s0 + $0x34] ss:$12 sps:$4 sm:$0xff]   ;;  %v788_v30 = vld [vmem:[%s1120_s0 + $0x4c] ss:$12 sps:$4 sm:$0xff]   ;;  %v792_v33 = vld [vmem:[%s1120_s0 + $0x50] ss:$12 sps:$4 sm:$0xff]  }
   0xb   :  { %648 = vmatpush3.bf16.msra.mxu0 %v758_v5  ;;  %747 = vmatpush3.bf16.msra.mxu1 %v758_v5  ;;  %v785_v27 = vld [vmem:[%s1120_s0 + $0x8] ss:$12 sps:$4 sm:$0xff]   ;;  %v787_v29 = vld [vmem:[%s1120_s0 + $0x20] ss:$12 sps:$4 sm:$0xff]   ;;  %v790_v31 = vld [vmem:[%s1120_s0 + $0x38] ss:$12 sps:$4 sm:$0xff]  }
   0xc   :  { %649 = vmatprep.subr.bf16.mxu0 %v759_v6  ;;  %740 = vmatprep.subr.bf16.mxu1 %v759_v6  ;;  %v791_v32 = vld [vmem:[%s1120_s0 + $0x48] ss:$12 sps:$4 sm:$0xff]   ;;  %v793_v34 = vld [vmem:[%s1120_s0 + $0x64] ss:$12 sps:$4 sm:$0xff]   ;;  %v796_v36 = vld [vmem:[%s1120_s0 + $0x60] ss:$12 sps:$4 sm:$0xff]  }
   0xd   :  { %v795_v35 = vld [vmem:[%s1120_s0 + $0x68] ss:$12 sps:$4 sm:$0xff]   ;;  %v797_v37 = vld [vmem:[%s1120_s0 + $0x80] ss:$12 sps:$4 sm:$0xff]   ;;  %v800_v39 = vld [vmem:[%s1120_s0 + $0x98] ss:$12 sps:$4 sm:$0xff]  }
   0xe   :  { %v798_v38 = vld [vmem:[%s1120_s0 + $0x7c] ss:$12 sps:$4 sm:$0xff]   ;;  %v801_v40 = vld [vmem:[%s1120_s0 + $0x78] ss:$12 sps:$4 sm:$0xff]   ;;  %v981_v60 = vld [vmem:[%s1121_s2] ss:$0 sm:$0xff] }
   0xf   :  { %650 = vmatpush3.bf16.msra.mxu0 %v760_v7  ;;  %748 = vmatpush3.bf16.msra.mxu1 %v760_v7  ;;  %v802_v41 = vld [vmem:[%s1120_s0 + $0xb0] ss:$12 sps:$4 sm:$0xff]   ;;  %v540_v7 = vld [vmem:[%s1122_s3] sm:$0xff] }
  0x10   :  { %651 = vmatprep.subr.bf16.mxu0 %v761_v8  ;;  %741 = vmatprep.subr.bf16.mxu1 %v761_v8  ;;  %v542_v1 = vld [vmem:[%s1122_s3 + $0x10] sm:$0xff] }
  0x13   :  { %652 = vmatpush3.bf16.msra.mxu0 %v762_v9  ;;  %749 = vmatpush3.bf16.msra.mxu1 %v762_v9 }
  0x14   :  { %653 = vmatprep.subr.bf16.mxu0 %v763_v10  ;;  %742 = vmatprep.subr.bf16.mxu1 %v763_v10 }
  0x17   :  { %654 = vmatpush3.bf16.msra.mxu0 %v764_v13  ;;  %750 = vmatpush3.bf16.msra.mxu1 %v764_v13  ;;  %v543_v13 = vld [vmem:[%s1122_s3 + $0x18] sm:$0xff] }
  0x18   :  { %655 = vmatprep.subr.bf16.mxu0 %v765_v14  ;;  %743 = vmatprep.subr.bf16.mxu1 %v765_v14 }
  0x1b   :  { %656 = vmatpush3.bf16.msra.mxu0 %v766_v15  ;;  %751 = vmatpush3.bf16.msra.mxu1 %v766_v15 }
  0x1c   :  { %657 = vmatprep.subr.bf16.mxu0 %v767_v16  ;;  %744 = vmatprep.subr.bf16.mxu1 %v767_v16 }
  0x1f   :  { %658 = vmatpush3.bf16.msra.mxu0 %v768_v17  ;;  %752 = vmatpush3.bf16.msra.mxu1 %v768_v17 }
  0x20   :  { %717 = vmatprep.subr.bf16.mxu1 %v775_v19 }
  0x22   :  { %379 = vmatmul.mubr.bf16.vlgmr.msra.gmra.mxu0 %v769_v18  ;;  %427 = vmatmul.mubr.bf16.vlgmr.msra.gmra.mxu1 %v772_v20  ;;  %v541_v20 = vld [vmem:[%s1122_s3 + $0x8] sm:$0xff] }
  0x23   :  { %718 = vmatpush3.bf16.msra.mxu1 %v775_v19  ;;  %386 = vmatprep.mubr.bf16.mxu0 %v776_v21 }
  0x24   :  { %434 = vmatprep.mubr.bf16.mxu1 %v778_v22  ;;  %719 = vmatprep.subr.bf16.mxu1 %v782_v23 }
  0x27   :  { %720 = vmatpush3.bf16.msra.mxu1 %v782_v23 }
  0x2a   :  { %387 = vmatmul.mubr.bf16.gmra.mxu0 %v780_v24  ;;  %435 = vmatmul.mubr.bf16.gmra.mxu1 %v781_v25 }
  0x2b   :  { %394 = vmatprep.mubr.bf16.mxu0 %v783_v26  ;;  %721 = vmatprep.mubr.msk.bf16.mxu1 %vm321_vm0, %v785_v27 }
  0x32   :  { %395 = vmatmul.mubr.bf16.gmra.mxu0 %v786_v28  ;;  %722 = vmatmul.mubr.msk.bf16.vlgmr.msra.gmra.mxu1 %vm321_vm0, %v787_v29 }
  0x33   :  { %402 = vmatprep.mubr.bf16.mxu0 %v788_v30  ;;  %725 = vmatprep.mubr.msk.bf16.mxu1 %vm321_vm0, %v790_v31  ;;  %v544_v30 = vld [vmem:[%s1122_s3 + $0x20] sm:$0xff] }
  0x3a   :  { %403 = vmatmul.mubr.bf16.gmra.mxu0 %v791_v32  ;;  %726 = vmatmul.mubr.msk.bf16.gmra.mxu1 %vm321_vm0, %v792_v33 }
  0x3b   :  { %410 = vmatprep.mubr.bf16.mxu0 %v793_v34  ;;  %729 = vmatprep.mubr.msk.bf16.mxu1 %vm321_vm0, %v795_v35 }
  0x42   :  { %411 = vmatmul.mubr.bf16.gmra.mxu0 %v796_v36  ;;  %730 = vmatmul.mubr.msk.bf16.gmra.mxu1 %vm321_vm0, %v797_v37 }
  0x43   :  { %418 = vmatprep.mubr.bf16.mxu0 %v798_v38  ;;  %733 = vmatprep.mubr.msk.bf16.mxu1 %vm321_vm0, %v800_v39  ;;  %v546_v38 = vld [vmem:[%s1122_s3 + $0x30] sm:$0xff] }
  0x4a   :  { %419 = vmatmul.mubr.bf16.gmra.mxu0 %v801_v40  ;;  %734 = vmatmul.mubr.msk.bf16.gmra.mxu1 %vm321_vm0, %v802_v41  ;;  %v545_v41 = vld [vmem:[%s1122_s3 + $0x28] sm:$0xff] }
  0xe2   :  { %v659_v42 = vpop.f32.mrf.mxu0  ;;  %v962_v43 = vpop.f32.mrf.mxu1 }
  0xe4   :  { %v660_v44 = vpop.f32.mrf.mxu0  ;;  %v964_v45 = vpop.f32.mrf.mxu1 }
  0xe5   :  { %v661_v57 = vadd.f32 %v660_v44, %v659_v42 }
  0xe6   :  { %v662_v46 = vpop.f32.mrf.mxu0  ;;  %v966_v47 = vpop.f32.mrf.mxu1 }
  0xe7   :  { %v381_v4 = vadd.f32 %v661_v57, %v981_v60  ;;  %v547_v57 = vld [vmem:[%s1122_s3 + $0x38] sm:$0xff] }
  0xe8   :  { %v663_v48 = vpop.f32.mrf.mxu0  ;;  %v968_v49 = vpop.f32.mrf.mxu1 }
  0xe9   :  { %v664_v2 = vadd.f32 %v663_v48, %v662_v46 }
  0xea   :  { %v665_v50 = vpop.f32.mrf.mxu0  ;;  %v970_v51 = vpop.f32.mrf.mxu1 }
  0xeb   :  { %v384_v17 = vadd.f32 %v664_v2, %v981_v60 }
  0xec   :  { %v666_v52 = vpop.f32.mrf.mxu0  ;;  %v972_v53 = vpop.f32.mrf.mxu1 }
  0xed   :  { %v667_v54 = vadd.f32 %v666_v52, %v665_v50 }
  0xee   :  { %v668_v55 = vpop.f32.mrf.mxu0  ;;  %v974_v56 = vpop.f32.mrf.mxu1 }
  0xef   :  { %v389_v62 = vadd.f32 %v667_v54, %v981_v60 }
  0xf0   :  { %v669_v58 = vpop.f32.mrf.mxu0  ;;  %v976_v59 = vpop.f32.mrf.mxu1 }
  0xf1   :  { %v670_v61 = vadd.f32 %v669_v58, %v668_v55 }
  0xf2   :  { %v671_v63 = vpop.f32.mrf.mxu0  ;;  %v723_v0 = vpop.f32.mrf.mxu1 }
  0xf3   :  { %v486_v3 = vadd.f32 %v723_v0, %v389_v62  ;;  %v392_v10 = vadd.f32 %v670_v61, %v981_v60  ;;  %v703_v62 = vadd.f32 %v972_v53, %v970_v51  ;;  %v706_v53 = vadd.f32 %v976_v59, %v974_v56  ;;  %v554_v59 = vld [vmem:[%s1122_s3 + $0x70] sm:$0xff] }
  0xf4   :  { %v672_v5 = vpop.f32.mrf.mxu0  ;;  %v477_v6 = vpop.f32.mrf.mxu1 }
  0xf5   :  { %v558_v8 = vadd.f32 %v542_v1, %v486_v3  ;;  %v478_v9 = vadd.f32 %v477_v6, %v381_v4  ;;  %v673_v14 = vadd.f32 %v672_v5, %v671_v63  ;;  %v697_v3 = vadd.f32 %v964_v45, %v962_v43  ;;  %v548_v5 = vld [vmem:[%s1122_s3 + $0x40] sm:$0xff] }
  0xf6   :  { %v674_v11 = vpop.f32.mrf.mxu0  ;;  %v724_v12 = vpop.f32.mrf.mxu1  ;;  %v437_v43 = vadd.f32 %v703_v62, %v981_v60  ;;  %v700_v45 = vadd.f32 %v968_v49, %v966_v47  ;;  %v552_v47 = vld [vmem:[%s1122_s3 + $0x60] sm:$0xff]  ;;  %v440_v49 = vadd.f32 %v706_v53, %v981_v60 }
  0xf7   :  { %574 = vst.msk [vmem:[%s1123_s4 + $0x10] sm:$0xff] %vm321_vm0, %v558_v8  ;;  %v556_v15 = vadd.f32 %v540_v7, %v478_v9  ;;  %v489_v16 = vadd.f32 %v724_v12, %v392_v10  ;;  %v397_v27 = vadd.f32 %v673_v14, %v981_v60  ;;  %v429_v14 = vadd.f32 %v697_v3, %v981_v60 }
  0xf8   :  { %v675_v18 = vpop.f32.mrf.mxu0  ;;  %v480_v19 = vpop.f32.mrf.mxu1 }
  0xf9   :  { %572 = vst.msk [vmem:[%s1123_s4] sm:$0xff] %vm321_vm0, %v556_v15  ;;  %v559_v21 = vadd.f32 %v543_v13, %v489_v16  ;;  %v481_v22 = vadd.f32 %v480_v19, %v384_v17  ;;  %v676_v25 = vadd.f32 %v675_v18, %v674_v11  ;;  %v549_v15 = vld [vmem:[%s1122_s3 + $0x48] sm:$0xff] }
  0xfa   :  { %v677_v23 = vpop.f32.mrf.mxu0  ;;  %v727_v24 = vpop.f32.mrf.mxu1 }
  0xfb   :  { %575 = vst.msk [vmem:[%s1123_s4 + $0x18] sm:$0xff] %vm321_vm0, %v559_v21  ;;  %v557_v26 = vadd.f32 %v541_v20, %v481_v22  ;;  %v400_v37 = vadd.f32 %v676_v25, %v981_v60  ;;  %v432_v25 = vadd.f32 %v700_v45, %v981_v60 }
  0xfc   :  { %v678_v28 = vpop.f32.mrf.mxu0  ;;  %v493_v29 = vpop.f32.mrf.mxu1 }
  0xfd   :  { %573 = vst.msk [vmem:[%s1123_s4 + $0x8] sm:$0xff] %vm321_vm0, %v557_v26  ;;  %v679_v31 = vadd.f32 %v678_v28, %v677_v23  ;;  %v494_v32 = vadd.f32 %v493_v29, %v397_v27 }
  0xfe   :  { %v680_v33 = vpop.f32.mrf.mxu0  ;;  %v728_v34 = vpop.f32.mrf.mxu1 }
  0xff   :  { %v405_v35 = vadd.f32 %v679_v31, %v981_v60  ;;  %v560_v36 = vadd.f32 %v544_v30, %v494_v32  ;;  %v550_v30 = vld [vmem:[%s1122_s3 + $0x50] sm:$0xff] }
 0x100   :  { %v681_v39 = vpop.f32.mrf.mxu0  ;;  %v496_v40 = vpop.f32.mrf.mxu1 }
 0x101   :  { %v502_v42 = vadd.f32 %v727_v24, %v405_v35  ;;  %576 = vst.msk [vmem:[%s1123_s4 + $0x20] sm:$0xff] %vm321_vm0, %v560_v36  ;;  %v682_v44 = vadd.f32 %v681_v39, %v680_v33  ;;  %v497_v46 = vadd.f32 %v496_v40, %v400_v37  ;;  %v555_v24 = vld [vmem:[%s1122_s3 + $0x78] sm:$0xff]  ;;  %v553_v33 = vld [vmem:[%s1122_s3 + $0x68] sm:$0xff] }
 0x102   :  { %v683_v48 = vpop.f32.mrf.mxu0  ;;  %v731_v50 = vpop.f32.mrf.mxu1 }
 0x103   :  { %v562_v52 = vadd.f32 %v546_v38, %v502_v42  ;;  %v408_v54 = vadd.f32 %v682_v44, %v981_v60  ;;  %v561_v55 = vadd.f32 %v545_v41, %v497_v46  ;;  %v551_v41 = vld [vmem:[%s1122_s3 + $0x58] sm:$0xff] }
 0x104   :  { %v684_v58 = vpop.f32.mrf.mxu0  ;;  %v509_v61 = vpop.f32.mrf.mxu1 }
 0x105   :  { %578 = vst.msk [vmem:[%s1123_s4 + $0x30] sm:$0xff] %vm321_vm0, %v562_v52  ;;  %v505_v63 = vadd.f32 %v728_v34, %v408_v54  ;;  %577 = vst.msk [vmem:[%s1123_s4 + $0x28] sm:$0xff] %vm321_vm0, %v561_v55  ;;  %v685_v0 = vadd.f32 %v684_v58, %v683_v48 }
 0x106   :  { %v686_v1 = vpop.f32.mrf.mxu0  ;;  %v732_v2 = vpop.f32.mrf.mxu1 }
 0x107   :  { %v563_v4 = vadd.f32 %v547_v57, %v505_v63  ;;  %v413_v51 = vadd.f32 %v685_v0, %v981_v60 }
 0x108   :  { %v687_v6 = vpop.f32.mrf.mxu0  ;;  %v512_v7 = vpop.f32.mrf.mxu1 }
 0x109   :  { %579 = vst.msk [vmem:[%s1123_s4 + $0x38] sm:$0xff] %vm321_vm0, %v563_v4  ;;  %v510_v8 = vadd.f32 %v509_v61, %v413_v51  ;;  %v688_v9 = vadd.f32 %v687_v6, %v686_v1 }
 0x10a   :  { %v689_v10 = vpop.f32.mrf.mxu0  ;;  %v735_v56 = vpop.f32.mrf.mxu1 }
 0x10b   :  { %v564_v11 = vadd.f32 %v548_v5, %v510_v8  ;;  %v416_v12 = vadd.f32 %v688_v9, %v981_v60  ;;  %v534_v13 = vadd.f32 %v735_v56, %v437_v43 }
 0x10c   :  { %v690_v16 = vpop.f32.mrf.mxu0  ;;  %v525_v17 = vpop.f32.mrf.mxu1 }
 0x10d   :  { %580 = vst.msk [vmem:[%s1123_s4 + $0x40] sm:$0xff] %vm321_vm0, %v564_v11  ;;  %v513_v18 = vadd.f32 %v512_v7, %v416_v12  ;;  %v570_v19 = vadd.f32 %v554_v59, %v534_v13  ;;  %v691_v20 = vadd.f32 %v690_v16, %v689_v10  ;;  %v526_v21 = vadd.f32 %v525_v17, %v429_v14 }
 0x10e   :  { %v692_v22 = vpop.f32.mrf.mxu0  ;;  %v736_v23 = vpop.f32.mrf.mxu1 }
 0x10f   :  { %v565_v26 = vadd.f32 %v549_v15, %v513_v18  ;;  %586 = vst.msk [vmem:[%s1123_s4 + $0x70] sm:$0xff] %vm321_vm0, %v570_v19  ;;  %v421_v27 = vadd.f32 %v691_v20, %v981_v60  ;;  %v568_v28 = vadd.f32 %v552_v47, %v526_v21  ;;  %v537_v29 = vadd.f32 %v736_v23, %v440_v49 }
 0x110   :  { %v693_v31 = vpop.f32.mrf.mxu0  ;;  %v528_v32 = vpop.f32.mrf.mxu1 }
 0x111   :  { %581 = vst.msk [vmem:[%s1123_s4 + $0x48] sm:$0xff] %vm321_vm0, %v565_v26  ;;  %v518_v34 = vadd.f32 %v731_v50, %v421_v27  ;;  %584 = vst.msk [vmem:[%s1123_s4 + $0x60] sm:$0xff] %vm321_vm0, %v568_v28  ;;  %v571_v35 = vadd.f32 %v555_v24, %v537_v29  ;;  %v694_v36 = vadd.f32 %v693_v31, %v692_v22 }
 0x112   :  { %v529_v37 = vadd.f32 %v528_v32, %v432_v25 }
 0x113   :  { %v566_v38 = vadd.f32 %v550_v30, %v518_v34  ;;  %587 = vst.msk [vmem:[%s1123_s4 + $0x78] sm:$0xff] %vm321_vm0, %v571_v35  ;;  %v424_v39 = vadd.f32 %v694_v36, %v981_v60 }
 0x114   :  { %v569_v40 = vadd.f32 %v553_v33, %v529_v37 }
 0x115   :  { %582 = vst.msk [vmem:[%s1123_s4 + $0x50] sm:$0xff] %vm321_vm0, %v566_v38  ;;  %v521_v42 = vadd.f32 %v732_v2, %v424_v39 }
 0x116   :  { %585 = vst.msk [vmem:[%s1123_s4 + $0x68] sm:$0xff] %vm321_vm0, %v569_v40 }
 0x117   :  { %v567_v44 = vadd.f32 %v551_v41, %v521_v42 }
 0x119   :  { %583 = vst.msk [vmem:[%s1123_s4 + $0x58] sm:$0xff] %vm321_vm0, %v567_v44 }

// kernel: audio_model_forward.23
= control target key start
LH: loop header
LB: loop body
LE: loop exit
PB: predicated region body
PF: predicated region fallthrough
CT: control target
= control target key end

     0   :  { %vm318_vm0 = vcmask 261120   ;;  %s1022_s1 = inlined_call_operand.vmem [shape: bf16[288,32], index: 1, kind: input, shape index: {}]   ;;  %s1023_s0 = inlined_call_operand.vmem [shape: bf16[128,288], index: 0, kind: input, shape index: {}]   ;;  %s1024_s2 = inlined_call_operand.vmem [shape: f32[1,32], index: 2, kind: input, shape index: {}]   ;;  %s1025_s3 = inlined_call_operand.vmem [shape: f32[128,32], index: 3, kind: output, shape index: {}]  }
   0x1   :  { %v718_v0 = vld [vmem:[%s1022_s1 + $0x78] sm:$0xff]   ;;  %v720_v2 = vld [vmem:[%s1022_s1 + $0x70] sm:$0xff]   ;;  %v722_v4 = vld [vmem:[%s1022_s1 + $0x68] sm:$0xff]  }
   0x2   :  { %v719_v1 = vld [vmem:[%s1022_s1 + $0x38] sm:$0xff]   ;;  %608 = vmatprep.subr.bf16.mxu0 %v718_v0  ;;  %702 = vmatprep.subr.bf16.mxu1 %v718_v0  ;;  %v721_v3 = vld [vmem:[%s1022_s1 + $0x30] sm:$0xff]   ;;  %v723_v5 = vld [vmem:[%s1022_s1 + $0x28] sm:$0xff]  }
   0x3   :  { %609 = vmatpush3.bf16.msra.mxu0 %v719_v1  ;;  %710 = vmatpush3.bf16.msra.mxu1 %v719_v1  ;;  %v724_v6 = vld [vmem:[%s1022_s1 + $0x60] sm:$0xff]   ;;  %v726_v8 = vld [vmem:[%s1022_s1 + $0x58] sm:$0xff]   ;;  %v728_v10 = vld [vmem:[%s1022_s1 + $0x50] sm:$0xff]  }
   0x4   :  { %610 = vmatprep.subr.bf16.mxu0 %v720_v2  ;;  %703 = vmatprep.subr.bf16.mxu1 %v720_v2  ;;  %v725_v7 = vld [vmem:[%s1022_s1 + $0x20] sm:$0xff]   ;;  %v727_v9 = vld [vmem:[%s1022_s1 + $0x18] sm:$0xff]   ;;  %v729_v13 = vld [vmem:[%s1022_s1 + $0x10] sm:$0xff]  }
   0x5   :  { %v736_v11 = vld [vmem:[%s1023_s0 + $0x4] ss:$12 sps:$4 sm:$0xff]   ;;  %v739_v12 = vld [vmem:[%s1023_s0 + $0x94] ss:$12 sps:$4 sm:$0xff]   ;;  %v730_v14 = vld [vmem:[%s1022_s1 + $0x48] sm:$0xff]  }
   0x6   :  { %375 = vmatprep.mubr.bf16.mxu0 %v736_v11  ;;  %423 = vmatprep.mubr.bf16.mxu1 %v739_v12  ;;  %v731_v15 = vld [vmem:[%s1022_s1 + $0x8] sm:$0xff]   ;;  %v732_v16 = vld [vmem:[%s1022_s1 + $0x40] sm:$0xff]   ;;  %v737_v20 = vld [vmem:[%s1023_s0 + $0x90] ss:$12 sps:$4 sm:$0xff]  }
   0x7   :  { %611 = vmatpush3.bf16.msra.mxu0 %v721_v3  ;;  %711 = vmatpush3.bf16.msra.mxu1 %v721_v3  ;;  %v733_v17 = vld [vmem:[%s1022_s1] sm:$0xff]   ;;  %v740_v19 = vld [vmem:[%s1022_s1 + $0x88] sm:$0xff]   ;;  %v751_v28 = vld [vmem:[%s1023_s0 + $0x30] ss:$12 sps:$4 sm:$0xff]  }
   0x8   :  { %612 = vmatprep.subr.bf16.mxu0 %v722_v4  ;;  %704 = vmatprep.subr.bf16.mxu1 %v722_v4  ;;  %v734_v18 = vld [vmem:[%s1023_s0] ss:$12 sps:$4 sm:$0xff]   ;;  %v741_v21 = vld [vmem:[%s1023_s0 + $0x1c] ss:$12 sps:$4 sm:$0xff]   ;;  %v745_v24 = vld [vmem:[%s1023_s0 + $0x18] ss:$12 sps:$4 sm:$0xff]  }
   0x9   :  { %v743_v22 = vld [vmem:[%s1023_s0 + $0xac] ss:$12 sps:$4 sm:$0xff]   ;;  %v747_v23 = vld [vmem:[%s1022_s1 + $0x80] sm:$0xff]   ;;  %v746_v25 = vld [vmem:[%s1023_s0 + $0xa8] ss:$12 sps:$4 sm:$0xff]  }
   0xa   :  { %v748_v26 = vld [vmem:[%s1023_s0 + $0x34] ss:$12 sps:$4 sm:$0xff]   ;;  %v753_v30 = vld [vmem:[%s1023_s0 + $0x4c] ss:$12 sps:$4 sm:$0xff]   ;;  %v757_v33 = vld [vmem:[%s1023_s0 + $0x50] ss:$12 sps:$4 sm:$0xff]  }
   0xb   :  { %613 = vmatpush3.bf16.msra.mxu0 %v723_v5  ;;  %712 = vmatpush3.bf16.msra.mxu1 %v723_v5  ;;  %v750_v27 = vld [vmem:[%s1023_s0 + $0x8] ss:$12 sps:$4 sm:$0xff]   ;;  %v752_v29 = vld [vmem:[%s1023_s0 + $0x20] ss:$12 sps:$4 sm:$0xff]   ;;  %v755_v31 = vld [vmem:[%s1023_s0 + $0x38] ss:$12 sps:$4 sm:$0xff]  }
   0xc   :  { %614 = vmatprep.subr.bf16.mxu0 %v724_v6  ;;  %705 = vmatprep.subr.bf16.mxu1 %v724_v6  ;;  %v756_v32 = vld [vmem:[%s1023_s0 + $0x48] ss:$12 sps:$4 sm:$0xff]   ;;  %v758_v34 = vld [vmem:[%s1023_s0 + $0x64] ss:$12 sps:$4 sm:$0xff]   ;;  %v761_v36 = vld [vmem:[%s1023_s0 + $0x60] ss:$12 sps:$4 sm:$0xff]  }
   0xd   :  { %v760_v35 = vld [vmem:[%s1023_s0 + $0x68] ss:$12 sps:$4 sm:$0xff]   ;;  %v762_v37 = vld [vmem:[%s1023_s0 + $0x80] ss:$12 sps:$4 sm:$0xff]   ;;  %v765_v39 = vld [vmem:[%s1023_s0 + $0x98] ss:$12 sps:$4 sm:$0xff]  }
   0xe   :  { %v763_v38 = vld [vmem:[%s1023_s0 + $0x7c] ss:$12 sps:$4 sm:$0xff]   ;;  %v766_v40 = vld [vmem:[%s1023_s0 + $0x78] ss:$12 sps:$4 sm:$0xff]   ;;  %v935_v60 = vld [vmem:[%s1024_s2] ss:$0 sm:$0xff] }
   0xf   :  { %615 = vmatpush3.bf16.msra.mxu0 %v725_v7  ;;  %713 = vmatpush3.bf16.msra.mxu1 %v725_v7  ;;  %v767_v41 = vld [vmem:[%s1023_s0 + $0xb0] ss:$12 sps:$4 sm:$0xff]  }
  0x10   :  { %616 = vmatprep.subr.bf16.mxu0 %v726_v8  ;;  %706 = vmatprep.subr.bf16.mxu1 %v726_v8 }
  0x13   :  { %617 = vmatpush3.bf16.msra.mxu0 %v727_v9  ;;  %714 = vmatpush3.bf16.msra.mxu1 %v727_v9 }
  0x14   :  { %618 = vmatprep.subr.bf16.mxu0 %v728_v10  ;;  %707 = vmatprep.subr.bf16.mxu1 %v728_v10 }
  0x17   :  { %619 = vmatpush3.bf16.msra.mxu0 %v729_v13  ;;  %715 = vmatpush3.bf16.msra.mxu1 %v729_v13 }
  0x18   :  { %620 = vmatprep.subr.bf16.mxu0 %v730_v14  ;;  %708 = vmatprep.subr.bf16.mxu1 %v730_v14 }
  0x1b   :  { %621 = vmatpush3.bf16.msra.mxu0 %v731_v15  ;;  %716 = vmatpush3.bf16.msra.mxu1 %v731_v15 }
  0x1c   :  { %622 = vmatprep.subr.bf16.mxu0 %v732_v16  ;;  %709 = vmatprep.subr.bf16.mxu1 %v732_v16 }
  0x1f   :  { %623 = vmatpush3.bf16.msra.mxu0 %v733_v17  ;;  %717 = vmatpush3.bf16.msra.mxu1 %v733_v17 }
  0x20   :  { %682 = vmatprep.subr.bf16.mxu1 %v740_v19 }
  0x22   :  { %376 = vmatmul.mubr.bf16.vlgmr.msra.gmra.mxu0 %v734_v18  ;;  %424 = vmatmul.mubr.bf16.vlgmr.msra.gmra.mxu1 %v737_v20 }
  0x23   :  { %683 = vmatpush3.bf16.msra.mxu1 %v740_v19  ;;  %383 = vmatprep.mubr.bf16.mxu0 %v741_v21 }
  0x24   :  { %431 = vmatprep.mubr.bf16.mxu1 %v743_v22  ;;  %684 = vmatprep.subr.bf16.mxu1 %v747_v23 }
  0x27   :  { %685 = vmatpush3.bf16.msra.mxu1 %v747_v23 }
  0x2a   :  { %384 = vmatmul.mubr.bf16.gmra.mxu0 %v745_v24  ;;  %432 = vmatmul.mubr.bf16.gmra.mxu1 %v746_v25 }
  0x2b   :  { %391 = vmatprep.mubr.bf16.mxu0 %v748_v26  ;;  %686 = vmatprep.mubr.msk.bf16.mxu1 %vm318_vm0, %v750_v27 }
  0x32   :  { %392 = vmatmul.mubr.bf16.gmra.mxu0 %v751_v28  ;;  %687 = vmatmul.mubr.msk.bf16.vlgmr.msra.gmra.mxu1 %vm318_vm0, %v752_v29 }
  0x33   :  { %399 = vmatprep.mubr.bf16.mxu0 %v753_v30  ;;  %690 = vmatprep.mubr.msk.bf16.mxu1 %vm318_vm0, %v755_v31 }
  0x3a   :  { %400 = vmatmul.mubr.bf16.gmra.mxu0 %v756_v32  ;;  %691 = vmatmul.mubr.msk.bf16.gmra.mxu1 %vm318_vm0, %v757_v33 }
  0x3b   :  { %407 = vmatprep.mubr.bf16.mxu0 %v758_v34  ;;  %694 = vmatprep.mubr.msk.bf16.mxu1 %vm318_vm0, %v760_v35 }
  0x42   :  { %408 = vmatmul.mubr.bf16.gmra.mxu0 %v761_v36  ;;  %695 = vmatmul.mubr.msk.bf16.gmra.mxu1 %vm318_vm0, %v762_v37 }
  0x43   :  { %415 = vmatprep.mubr.bf16.mxu0 %v763_v38  ;;  %698 = vmatprep.mubr.msk.bf16.mxu1 %vm318_vm0, %v765_v39 }
  0x4a   :  { %416 = vmatmul.mubr.bf16.gmra.mxu0 %v766_v40  ;;  %699 = vmatmul.mubr.msk.bf16.gmra.mxu1 %vm318_vm0, %v767_v41 }
  0xe2   :  { %v624_v42 = vpop.f32.mrf.mxu0  ;;  %v922_v43 = vpop.f32.mrf.mxu1 }
  0xe4   :  { %v625_v44 = vpop.f32.mrf.mxu0  ;;  %v924_v45 = vpop.f32.mrf.mxu1 }
  0xe5   :  { %v626_v57 = vadd.f32 %v625_v44, %v624_v42  ;;  %v662_v44 = vadd.f32 %v924_v45, %v922_v43 }
  0xe6   :  { %v627_v46 = vpop.f32.mrf.mxu0  ;;  %v926_v47 = vpop.f32.mrf.mxu1 }
  0xe7   :  { %v378_v3 = vadd.f32 %v626_v57, %v935_v60 }
  0xe8   :  { %v628_v48 = vpop.f32.mrf.mxu0  ;;  %v928_v49 = vpop.f32.mrf.mxu1 }
  0xe9   :  { %v629_v1 = vadd.f32 %v628_v48, %v627_v46  ;;  %v665_v43 = vadd.f32 %v928_v49, %v926_v47 }
  0xea   :  { %v630_v50 = vpop.f32.mrf.mxu0  ;;  %v666_v51 = vpop.f32.mrf.mxu1 }
  0xeb   :  { %v381_v12 = vadd.f32 %v629_v1, %v935_v60 }
  0xec   :  { %v631_v52 = vpop.f32.mrf.mxu0  ;;  %v667_v53 = vpop.f32.mrf.mxu1 }
  0xed   :  { %v632_v54 = vadd.f32 %v631_v52, %v630_v50  ;;  %v668_v38 = vadd.f32 %v667_v53, %v666_v51 }
  0xee   :  { %v633_v55 = vpop.f32.mrf.mxu0  ;;  %v930_v56 = vpop.f32.mrf.mxu1 }
  0xef   :  { %v386_v62 = vadd.f32 %v632_v54, %v935_v60  ;;  %v434_v53 = vadd.f32 %v668_v38, %v935_v60 }
  0xf0   :  { %v634_v58 = vpop.f32.mrf.mxu0  ;;  %v670_v59 = vpop.f32.mrf.mxu1 }
  0xf1   :  { %v635_v61 = vadd.f32 %v634_v58, %v633_v55  ;;  %v671_v52 = vadd.f32 %v670_v59, %v930_v56 }
  0xf2   :  { %v636_v63 = vpop.f32.mrf.mxu0  ;;  %v688_v0 = vpop.f32.mrf.mxu1 }
  0xf3   :  { %v483_v2 = vadd.f32 %v688_v0, %v386_v62  ;;  %v389_v7 = vadd.f32 %v635_v61, %v935_v60  ;;  %v426_v61 = vadd.f32 %v662_v44, %v935_v60  ;;  %v437_v49 = vadd.f32 %v671_v52, %v935_v60 }
  0xf4   :  { %v637_v4 = vpop.f32.mrf.mxu0  ;;  %v474_v5 = vpop.f32.mrf.mxu1 }
  0xf5   :  { %539 = vst.msk [vmem:[%s1025_s3 + $0x10] sm:$0xff] %vm318_vm0, %v483_v2  ;;  %v475_v6 = vadd.f32 %v474_v5, %v378_v3  ;;  %v638_v10 = vadd.f32 %v637_v4, %v636_v63  ;;  %v429_v4 = vadd.f32 %v665_v43, %v935_v60 }
  0xf6   :  { %v639_v8 = vpop.f32.mrf.mxu0  ;;  %v689_v9 = vpop.f32.mrf.mxu1 }
  0xf7   :  { %537 = vst.msk [vmem:[%s1025_s3] sm:$0xff] %vm318_vm0, %v475_v6  ;;  %v486_v11 = vadd.f32 %v689_v9, %v389_v7  ;;  %v394_v19 = vadd.f32 %v638_v10, %v935_v60 }
  0xf8   :  { %v640_v13 = vpop.f32.mrf.mxu0  ;;  %v477_v14 = vpop.f32.mrf.mxu1 }
  0xf9   :  { %540 = vst.msk [vmem:[%s1025_s3 + $0x18] sm:$0xff] %vm318_vm0, %v486_v11  ;;  %v478_v15 = vadd.f32 %v477_v14, %v381_v12  ;;  %v641_v18 = vadd.f32 %v640_v13, %v639_v8 }
  0xfa   :  { %v642_v16 = vpop.f32.mrf.mxu0  ;;  %v692_v17 = vpop.f32.mrf.mxu1 }
  0xfb   :  { %538 = vst.msk [vmem:[%s1025_s3 + $0x8] sm:$0xff] %vm318_vm0, %v478_v15  ;;  %v397_v27 = vadd.f32 %v641_v18, %v935_v60 }
  0xfc   :  { %v643_v20 = vpop.f32.mrf.mxu0  ;;  %v490_v21 = vpop.f32.mrf.mxu1 }
  0xfd   :  { %v644_v22 = vadd.f32 %v643_v20, %v642_v16  ;;  %v491_v23 = vadd.f32 %v490_v21, %v394_v19 }
  0xfe   :  { %v645_v24 = vpop.f32.mrf.mxu0  ;;  %v693_v25 = vpop.f32.mrf.mxu1 }
  0xff   :  { %v402_v26 = vadd.f32 %v644_v22, %v935_v60  ;;  %541 = vst.msk [vmem:[%s1025_s3 + $0x20] sm:$0xff] %vm318_vm0, %v491_v23 }
 0x100   :  { %v646_v28 = vpop.f32.mrf.mxu0  ;;  %v493_v29 = vpop.f32.mrf.mxu1 }
 0x101   :  { %v499_v30 = vadd.f32 %v692_v17, %v402_v26  ;;  %v647_v31 = vadd.f32 %v646_v28, %v645_v24  ;;  %v494_v32 = vadd.f32 %v493_v29, %v397_v27 }
 0x102   :  { %v648_v33 = vpop.f32.mrf.mxu0  ;;  %v696_v34 = vpop.f32.mrf.mxu1 }
 0x103   :  { %543 = vst.msk [vmem:[%s1025_s3 + $0x30] sm:$0xff] %vm318_vm0, %v499_v30  ;;  %v405_v35 = vadd.f32 %v647_v31, %v935_v60  ;;  %542 = vst.msk [vmem:[%s1025_s3 + $0x28] sm:$0xff] %vm318_vm0, %v494_v32 }
 0x104   :  { %v649_v36 = vpop.f32.mrf.mxu0  ;;  %v506_v37 = vpop.f32.mrf.mxu1 }
 0x105   :  { %v502_v39 = vadd.f32 %v693_v25, %v405_v35  ;;  %v650_v40 = vadd.f32 %v649_v36, %v648_v33 }
 0x106   :  { %v651_v41 = vpop.f32.mrf.mxu0  ;;  %v697_v42 = vpop.f32.mrf.mxu1 }
 0x107   :  { %544 = vst.msk [vmem:[%s1025_s3 + $0x38] sm:$0xff] %vm318_vm0, %v502_v39  ;;  %v410_v46 = vadd.f32 %v650_v40, %v935_v60 }
 0x108   :  { %v652_v48 = vpop.f32.mrf.mxu0  ;;  %v509_v50 = vpop.f32.mrf.mxu1 }
 0x109   :  { %v507_v54 = vadd.f32 %v506_v37, %v410_v46  ;;  %v653_v51 = vadd.f32 %v652_v48, %v651_v41 }
 0x10a   :  { %v654_v55 = vpop.f32.mrf.mxu0  ;;  %v700_v57 = vpop.f32.mrf.mxu1 }
 0x10b   :  { %545 = vst.msk [vmem:[%s1025_s3 + $0x40] sm:$0xff] %vm318_vm0, %v507_v54  ;;  %v413_v45 = vadd.f32 %v653_v51, %v935_v60  ;;  %v531_v58 = vadd.f32 %v700_v57, %v434_v53 }
 0x10c   :  { %v655_v56 = vpop.f32.mrf.mxu0  ;;  %v522_v59 = vpop.f32.mrf.mxu1 }
 0x10d   :  { %v510_v62 = vadd.f32 %v509_v50, %v413_v45  ;;  %551 = vst.msk [vmem:[%s1025_s3 + $0x70] sm:$0xff] %vm318_vm0, %v531_v58  ;;  %v656_v63 = vadd.f32 %v655_v56, %v654_v55  ;;  %v523_v47 = vadd.f32 %v522_v59, %v426_v61 }
 0x10e   :  { %v657_v0 = vpop.f32.mrf.mxu0  ;;  %v701_v1 = vpop.f32.mrf.mxu1 }
 0x10f   :  { %546 = vst.msk [vmem:[%s1025_s3 + $0x48] sm:$0xff] %vm318_vm0, %v510_v62  ;;  %v418_v2 = vadd.f32 %v656_v63, %v935_v60  ;;  %549 = vst.msk [vmem:[%s1025_s3 + $0x60] sm:$0xff] %vm318_vm0, %v523_v47  ;;  %v534_v3 = vadd.f32 %v701_v1, %v437_v49 }
 0x110   :  { %v658_v5 = vpop.f32.mrf.mxu0  ;;  %v525_v6 = vpop.f32.mrf.mxu1 }
 0x111   :  { %v515_v7 = vadd.f32 %v696_v34, %v418_v2  ;;  %552 = vst.msk [vmem:[%s1025_s3 + $0x78] sm:$0xff] %vm318_vm0, %v534_v3  ;;  %v659_v8 = vadd.f32 %v658_v5, %v657_v0  ;;  %v526_v9 = vadd.f32 %v525_v6, %v429_v4 }
 0x113   :  { %547 = vst.msk [vmem:[%s1025_s3 + $0x50] sm:$0xff] %vm318_vm0, %v515_v7  ;;  %v421_v10 = vadd.f32 %v659_v8, %v935_v60  ;;  %550 = vst.msk [vmem:[%s1025_s3 + $0x68] sm:$0xff] %vm318_vm0, %v526_v9 }
 0x115   :  { %v518_v11 = vadd.f32 %v697_v42, %v421_v10 }
 0x117   :  { %548 = vst.msk [vmem:[%s1025_s3 + $0x58] sm:$0xff] %vm318_vm0, %v518_v11 }

// kernel: audio_model_forward.31
= control target key start
LH: loop header
LB: loop body
LE: loop exit
PB: predicated region body
PF: predicated region fallthrough
CT: control target
= control target key end

     0   :  { %vm16_vm0 = vcmask 261120   ;;  %s132_s0 = inlined_call_operand.vmem [shape: f32[16,32], index: 0, kind: input, shape index: {}]   ;;  %s133_s1 = inlined_call_operand.vmem [shape: f32[1,32], index: 1, kind: input, shape index: {}]   ;;  %s134_s2 = inlined_call_operand.vmem [shape: f32[1,32], index: 2, kind: input, shape index: {}]   ;;  %s135_s3 = inlined_call_operand.vmem [shape: f32[16,32], index: 3, kind: output, shape index: {}]  }
   0x1   :  { %v14_v0 = vld [vmem:[%s132_s0] sm:$0xff]  ;;  %v15_v1 = vld [vmem:[%s132_s0 + $0x8] sm:$0xff] }
   0x2   :  { %v17_v2 = vsel %vm16_vm0, %v14_v0, 0.0  ;;  %v20_v3 = vsel %vm16_vm0, %v15_v1, 0.0  ;;  %v78_v21 = vld [vmem:[%s133_s1] ss:$0 sm:$0xff] }
   0x3   :  { %18 = vadd.xlane.f32.xlu0 %v17_v2  ;;  %v79_v23 = vld [vmem:[%s134_s2] ss:$0 sm:$0xff] }
   0x7   :  { %21 = vadd.xlane.f32.xlu0 %v20_v3 }
  0x8c   :  { %v19_v4 = vpop.xlane.xlu0 %18 }
  0x8d   :  { %v24_v5 = vmul.f32 0.03125, %v19_v4 }
  0x8f   :  { %v26_v6 = vsub.f32 %v14_v0, %v24_v5 }
  0x90   :  { %v22_v7 = vpop.xlane.xlu0 %21 }
  0x91   :  { %v25_v8 = vmul.f32 0.03125, %v22_v7  ;;  %v28_v9 = vmul.f32 %v26_v6, %v26_v6 }
  0x93   :  { %v27_v10 = vsub.f32 %v15_v1, %v25_v8  ;;  %v30_v11 = vsel %vm16_vm0, %v28_v9, 0.0 }
  0x94   :  { %31 = vadd.xlane.f32.xlu1 %v30_v11 }
  0x95   :  { %v29_v12 = vmul.f32 %v27_v10, %v27_v10 }
  0x97   :  { %v33_v13 = vsel %vm16_vm0, %v29_v12, 0.0 }
  0x98   :  { %34 = vadd.xlane.f32.xlu1 %v33_v13 }
 0x11d   :  { %v32_v14 = vpop.xlane.xlu1 %31 }
 0x11e   :  { %v36_v15 = vmul.f32 0.03125, %v32_v14 }
 0x120   :  { %v38_v16 = vadd.f32 1e-05, %v36_v15 }
 0x121   :  { %v35_v17 = vpop.xlane.xlu1 %34 }
 0x122   :  { %80 = vrsqrt.f32 %v38_v16  ;;  %v37_v18 = vmul.f32 0.03125, %v35_v17 }
 0x124   :  { %v39_v19 = vadd.f32 1e-05, %v37_v18 }
 0x126   :  { %82 = vrsqrt.f32 %v39_v19 }
 0x12f   :  { %v81_v20 = vpop.eup %80 }
 0x130   :  { %v42_v22 = vmul.f32 %v81_v20, %v26_v6 }
 0x132   :  { %v51_v24 = vmul.f32 %v78_v21, %v42_v22 }
 0x133   :  { %v83_v25 = vpop.eup %82 }
 0x134   :  { %v60_v26 = vadd.f32 %v79_v23, %v51_v24  ;;  %v43_v27 = vmul.f32 %v83_v25, %v27_v10 }
 0x136   :  { %v64_v28 = vmul.f32 0.70710677, %v60_v26  ;;  %v52_v29 = vmul.f32 %v78_v21, %v43_v27  ;;  %v62_v33 = vmul.f32 0.5, %v60_v26 }
 0x138   :  { %84 = verf.f32 %v64_v28  ;;  %v61_v30 = vadd.f32 %v79_v23, %v52_v29 }
 0x13a   :  { %v65_v31 = vmul.f32 0.70710677, %v61_v30  ;;  %v63_v37 = vmul.f32 0.5, %v61_v30 }
 0x13c   :  { %86 = verf.f32 %v65_v31 }
 0x145   :  { %v85_v32 = vpop.eup %84 }
 0x146   :  { %v68_v34 = vadd.f32 1.0, %v85_v32 }
 0x148   :  { %v70_v35 = vmul.f32 %v68_v34, %v62_v33 }
 0x149   :  { %v87_v36 = vpop.eup %86 }
 0x14a   :  { %72 = vst.msk [vmem:[%s135_s3] sm:$0xff] %vm16_vm0, %v70_v35  ;;  %v69_v38 = vadd.f32 1.0, %v87_v36 }
 0x14c   :  { %v71_v39 = vmul.f32 %v69_v38, %v63_v37 }
 0x14e   :  { %73 = vst.msk [vmem:[%s135_s3 + $0x8] sm:$0xff] %vm16_vm0, %v71_v39 }

// kernel: audio_model_forward.30
= control target key start
LH: loop header
LB: loop body
LE: loop exit
PB: predicated region body
PF: predicated region fallthrough
CT: control target
= control target key end

     0   :  { %vm203_vm0 = vcmask 261120   ;;  %s353_s1 = inlined_call_operand.vmem [shape: bf16[256,32], index: 1, kind: input, shape index: {}]   ;;  %s354_s0 = inlined_call_operand.vmem [shape: bf16[16,256], index: 0, kind: input, shape index: {}]   ;;  %s355_s2 = inlined_call_operand.vmem [shape: f32[1,32], index: 2, kind: input, shape index: {}]   ;;  %s356_s3 = inlined_call_operand.vmem [shape: f32[16,32], index: 3, kind: output, shape index: {}]  }
   0x1   :  { %v251_v0 = vld [vmem:[%s353_s1 + $0x78] sm:$0xff]   ;;  %v253_v2 = vld [vmem:[%s353_s1 + $0x70] sm:$0xff]   ;;  %v255_v4 = vld [vmem:[%s353_s1 + $0x68] sm:$0xff]  }
   0x2   :  { %v252_v1 = vld [vmem:[%s353_s1 + $0x38] sm:$0xff]   ;;  %229 = vmatprep.subr.bf16.mxu0 %v251_v0  ;;  %v254_v3 = vld [vmem:[%s353_s1 + $0x30] sm:$0xff]   ;;  %v256_v5 = vld [vmem:[%s353_s1 + $0x28] sm:$0xff]  }
   0x3   :  { %230 = vmatpush3.bf16.msra.mxu0 %v252_v1  ;;  %v257_v6 = vld [vmem:[%s353_s1 + $0x60] sm:$0xff]   ;;  %v259_v8 = vld [vmem:[%s353_s1 + $0x58] sm:$0xff]   ;;  %v261_v10 = vld [vmem:[%s353_s1 + $0x50] sm:$0xff]  }
   0x4   :  { %231 = vmatprep.subr.bf16.mxu0 %v253_v2  ;;  %v258_v7 = vld [vmem:[%s353_s1 + $0x20] sm:$0xff]   ;;  %v260_v9 = vld [vmem:[%s353_s1 + $0x18] sm:$0xff]   ;;  %v262_v12 = vld [vmem:[%s353_s1 + $0x10] sm:$0xff]  }
   0x5   :  { %v269_v11 = vld [vmem:[%s354_s0 + $0x4] ss:$8 sps:$4 sm:$0xff]   ;;  %v267_v17 = vld [vmem:[%s354_s0] ss:$8 sps:$4 sm:$0xff]  }
   0x6   :  { %194 = vmatprep.mubr.bf16.mxu0 %v269_v11  ;;  %v263_v13 = vld [vmem:[%s353_s1 + $0x48] sm:$0xff]   ;;  %v265_v15 = vld [vmem:[%s353_s1 + $0x40] sm:$0xff]  }
   0x7   :  { %232 = vmatpush3.bf16.msra.mxu0 %v254_v3  ;;  %v264_v14 = vld [vmem:[%s353_s1 + $0x8] sm:$0xff]   ;;  %v266_v16 = vld [vmem:[%s353_s1] sm:$0xff]  }
   0x8   :  { %233 = vmatprep.subr.bf16.mxu0 %v255_v4  ;;  %v210_v19 = vld [vmem:[%s355_s2] ss:$0 sm:$0xff] }
   0xb   :  { %234 = vmatpush3.bf16.msra.mxu0 %v256_v5 }
   0xc   :  { %235 = vmatprep.subr.bf16.mxu0 %v257_v6 }
   0xf   :  { %236 = vmatpush3.bf16.msra.mxu0 %v258_v7 }
  0x10   :  { %237 = vmatprep.subr.bf16.mxu0 %v259_v8 }
  0x13   :  { %238 = vmatpush3.bf16.msra.mxu0 %v260_v9 }
  0x14   :  { %239 = vmatprep.subr.bf16.mxu0 %v261_v10 }
  0x17   :  { %240 = vmatpush3.bf16.msra.mxu0 %v262_v12 }
  0x18   :  { %241 = vmatprep.subr.bf16.mxu0 %v263_v13 }
  0x1b   :  { %242 = vmatpush3.bf16.msra.mxu0 %v264_v14 }
  0x1c   :  { %243 = vmatprep.subr.bf16.mxu0 %v265_v15 }
  0x1f   :  { %244 = vmatpush3.bf16.msra.mxu0 %v266_v16 }
  0x22   :  { %195 = vmatmul.mubr.bf16.vlgmr.msra.gmra.mxu0 %v267_v17 }
  0xe2   :  { %v245_v18 = vpop.f32.mrf.mxu0 }
  0xe4   :  { %v246_v20 = vpop.f32.mrf.mxu0 }
  0xe5   :  { %v247_v21 = vadd.f32 %v246_v20, %v245_v18 }
  0xe6   :  { %v248_v22 = vpop.f32.mrf.mxu0 }
  0xe7   :  { %v197_v23 = vadd.f32 %v247_v21, %v210_v19 }
  0xe8   :  { %v249_v24 = vpop.f32.mrf.mxu0 }
  0xe9   :  { %204 = vst.msk [vmem:[%s356_s3] sm:$0xff] %vm203_vm0, %v197_v23  ;;  %v250_v25 = vadd.f32 %v249_v24, %v248_v22 }
  0xeb   :  { %v200_v26 = vadd.f32 %v250_v25, %v210_v19 }
  0xed   :  { %205 = vst.msk [vmem:[%s356_s3 + $0x8] sm:$0xff] %vm203_vm0, %v200_v26 }

// kernel: audio_model_forward.32
= control target key start
LH: loop header
LB: loop body
LE: loop exit
PB: predicated region body
PF: predicated region fallthrough
CT: control target
= control target key end

     0   :  { %v118_v0 = vmov 0.0   ;;  %vm119_vm0 = vmmov 0   ;;  %vm45_vm1 = vcmask 261120   ;;  %vm90_vm2 = vcmask 785408   ;;  %s158_s1 = inlined_call_operand.vmem [shape: bf16[32,96], index: 1, kind: input, shape index: {}]   ;;  %s159_s0 = inlined_call_operand.vmem [shape: bf16[16,32], index: 0, kind: input, shape index: {}]   ;;  %s160_s2 = inlined_call_operand.vmem [shape: f32[1,96], index: 2, kind: input, shape index: {}]   ;;  %s161_s3 = inlined_call_operand.vmem [shape: f32[16,96], index: 3, kind: output, shape index: {}]  }
   0x1   :  { %105 = vmatprep.subr.bf16.mxu0 %v118_v0  ;;  %v115_v1 = vld [vmem:[%s158_s1 + $0x8] sm:$0xff]   ;;  %109 = vmatprep.mubr.msk.bf16.mxu0 %vm119_vm0, %v118_v0  ;;  %v116_v2 = vld [vmem:[%s158_s1] sm:$0xff]  }
   0x2   :  { %106 = vmatpush3.bf16.msra.mxu0 %v115_v1  ;;  %v117_v3 = vld [vmem:[%s159_s0] sm:$0xff]  }
   0x3   :  { %107 = vmatprep.subr.bf16.mxu0 %v118_v0  ;;  %v97_v4 = vld [vmem:[%s160_s2] ss:$0 sm:$0xff] }
   0x6   :  { %108 = vmatpush3.bf16.msra.mxu0 %v116_v2 }
   0x9   :  { %110 = vmatmul.mubr.msk.bf16.vlgmr.msra.gmra.mxu0 %vm45_vm1, %v117_v3 }
  0xc9   :  { %v83_v5 = vpop.f32.mrf.mxu0 }
  0xca   :  { %v84_v6 = vadd.f32 %v97_v4, %v83_v5 }
  0xcb   :  { %v111_v7 = vpop.f32.mrf.mxu0 }
  0xcc   :  { %91 = vst.msk [vmem:[%s161_s3] sm:$0xff] %vm90_vm2, %v84_v6 }
  0xcd   :  { %v86_v8 = vpop.f32.mrf.mxu0 }
  0xce   :  { %v87_v9 = vadd.f32 %v97_v4, %v86_v8 }
  0xcf   :  { %v112_v10 = vpop.f32.mrf.mxu0 }
  0xd0   :  { %92 = vst.msk [vmem:[%s161_s3 + $0x8] sm:$0xff] %vm90_vm2, %v87_v9 }

// kernel: audio_model_forward.35
= control target key start
LH: loop header
LB: loop body
LE: loop exit
PB: predicated region body
PF: predicated region fallthrough
CT: control target
= control target key end

     0   :  { %vm16_vm0 = vcmask 523264   ;;  %s132_s0 = inlined_call_operand.vmem [shape: f32[16,64], index: 0, kind: input, shape index: {}]   ;;  %s133_s1 = inlined_call_operand.vmem [shape: f32[1,64], index: 1, kind: input, shape index: {}]   ;;  %s134_s2 = inlined_call_operand.vmem [shape: f32[1,64], index: 2, kind: input, shape index: {}]   ;;  %s135_s3 = inlined_call_operand.vmem [shape: f32[16,64], index: 3, kind: output, shape index: {}]  }
   0x1   :  { %v14_v0 = vld [vmem:[%s132_s0] sm:$0xff]  ;;  %v15_v1 = vld [vmem:[%s132_s0 + $0x8] sm:$0xff] }
   0x2   :  { %v17_v2 = vsel %vm16_vm0, %v14_v0, 0.0  ;;  %v20_v3 = vsel %vm16_vm0, %v15_v1, 0.0  ;;  %v78_v21 = vld [vmem:[%s133_s1] ss:$0 sm:$0xff] }
   0x3   :  { %18 = vadd.xlane.f32.xlu0 %v17_v2  ;;  %v79_v23 = vld [vmem:[%s134_s2] ss:$0 sm:$0xff] }
   0x7   :  { %21 = vadd.xlane.f32.xlu0 %v20_v3 }
  0x8c   :  { %v19_v4 = vpop.xlane.xlu0 %18 }
  0x8d   :  { %v24_v5 = vmul.f32 0.015625, %v19_v4 }
  0x8f   :  { %v26_v6 = vsub.f32 %v14_v0, %v24_v5 }
  0x90   :  { %v22_v7 = vpop.xlane.xlu0 %21 }
  0x91   :  { %v25_v8 = vmul.f32 0.015625, %v22_v7  ;;  %v28_v9 = vmul.f32 %v26_v6, %v26_v6 }
  0x93   :  { %v27_v10 = vsub.f32 %v15_v1, %v25_v8  ;;  %v30_v11 = vsel %vm16_vm0, %v28_v9, 0.0 }
  0x94   :  { %31 = vadd.xlane.f32.xlu1 %v30_v11 }
  0x95   :  { %v29_v12 = vmul.f32 %v27_v10, %v27_v10 }
  0x97   :  { %v33_v13 = vsel %vm16_vm0, %v29_v12, 0.0 }
  0x98   :  { %34 = vadd.xlane.f32.xlu1 %v33_v13 }
 0x11d   :  { %v32_v14 = vpop.xlane.xlu1 %31 }
 0x11e   :  { %v36_v15 = vmul.f32 0.015625, %v32_v14 }
 0x120   :  { %v38_v16 = vadd.f32 1e-05, %v36_v15 }
 0x121   :  { %v35_v17 = vpop.xlane.xlu1 %34 }
 0x122   :  { %80 = vrsqrt.f32 %v38_v16  ;;  %v37_v18 = vmul.f32 0.015625, %v35_v17 }
 0x124   :  { %v39_v19 = vadd.f32 1e-05, %v37_v18 }
 0x126   :  { %82 = vrsqrt.f32 %v39_v19 }
 0x12f   :  { %v81_v20 = vpop.eup %80 }
 0x130   :  { %v42_v22 = vmul.f32 %v81_v20, %v26_v6 }
 0x132   :  { %v51_v24 = vmul.f32 %v78_v21, %v42_v22 }
 0x133   :  { %v83_v25 = vpop.eup %82 }
 0x134   :  { %v60_v26 = vadd.f32 %v79_v23, %v51_v24  ;;  %v43_v27 = vmul.f32 %v83_v25, %v27_v10 }
 0x136   :  { %v64_v28 = vmul.f32 0.70710677, %v60_v26  ;;  %v52_v29 = vmul.f32 %v78_v21, %v43_v27  ;;  %v62_v33 = vmul.f32 0.5, %v60_v26 }
 0x138   :  { %84 = verf.f32 %v64_v28  ;;  %v61_v30 = vadd.f32 %v79_v23, %v52_v29 }
 0x13a   :  { %v65_v31 = vmul.f32 0.70710677, %v61_v30  ;;  %v63_v37 = vmul.f32 0.5, %v61_v30 }
 0x13c   :  { %86 = verf.f32 %v65_v31 }
 0x145   :  { %v85_v32 = vpop.eup %84 }
 0x146   :  { %v68_v34 = vadd.f32 1.0, %v85_v32 }
 0x148   :  { %v70_v35 = vmul.f32 %v68_v34, %v62_v33 }
 0x149   :  { %v87_v36 = vpop.eup %86 }
 0x14a   :  { %72 = vst.msk [vmem:[%s135_s3] sm:$0xff] %vm16_vm0, %v70_v35  ;;  %v69_v38 = vadd.f32 1.0, %v87_v36 }
 0x14c   :  { %v71_v39 = vmul.f32 %v69_v38, %v63_v37 }
 0x14e   :  { %73 = vst.msk [vmem:[%s135_s3 + $0x8] sm:$0xff] %vm16_vm0, %v71_v39 }

// kernel: audio_model_forward.37
= control target key start
LH: loop header
LB: loop body
LE: loop exit
PB: predicated region body
PF: predicated region fallthrough
CT: control target
= control target key end

     0   :  { %v144_v0 = vmov 0.0   ;;  %vm145_vm0 = vmmov 0   ;;  %vm61_vm1 = vcmask 523264   ;;  %vm106_vm2 = vcmask 785408   ;;  %s190_s1 = inlined_call_operand.vmem [shape: bf16[64,96], index: 1, kind: input, shape index: {}]   ;;  %s191_s0 = inlined_call_operand.vmem [shape: bf16[16,64], index: 0, kind: input, shape index: {}]   ;;  %s192_s2 = inlined_call_operand.vmem [shape: f32[1,96], index: 2, kind: input, shape index: {}]   ;;  %s193_s3 = inlined_call_operand.vmem [shape: f32[16,96], index: 3, kind: output, shape index: {}]  }
   0x1   :  { %125 = vmatprep.subr.bf16.mxu0 %v144_v0  ;;  %v139_v1 = vld [vmem:[%s190_s1 + $0x18] sm:$0xff]   ;;  %133 = vmatprep.mubr.msk.bf16.mxu0 %vm145_vm0, %v144_v0  ;;  %v140_v2 = vld [vmem:[%s190_s1 + $0x10] sm:$0xff]   ;;  %v141_v3 = vld [vmem:[%s190_s1 + $0x8] sm:$0xff]  }
   0x2   :  { %126 = vmatpush3.bf16.msra.mxu0 %v139_v1  ;;  %v142_v4 = vld [vmem:[%s190_s1] sm:$0xff]  }
   0x3   :  { %127 = vmatprep.subr.bf16.mxu0 %v144_v0  ;;  %v143_v5 = vld [vmem:[%s191_s0] sm:$0xff]  }
   0x4   :  { %v113_v6 = vld [vmem:[%s192_s2] ss:$0 sm:$0xff] }
   0x6   :  { %128 = vmatpush3.bf16.msra.mxu0 %v140_v2 }
   0x7   :  { %129 = vmatprep.subr.bf16.mxu0 %v144_v0 }
   0xa   :  { %130 = vmatpush3.bf16.msra.mxu0 %v141_v3 }
   0xb   :  { %131 = vmatprep.subr.bf16.mxu0 %v144_v0 }
   0xe   :  { %132 = vmatpush3.bf16.msra.mxu0 %v142_v4 }
  0x11   :  { %134 = vmatmul.mubr.msk.bf16.vlgmr.msra.gmra.mxu0 %vm61_vm1, %v143_v5 }
  0xd1   :  { %v99_v7 = vpop.f32.mrf.mxu0 }
  0xd2   :  { %v100_v8 = vadd.f32 %v113_v6, %v99_v7 }
  0xd3   :  { %v135_v9 = vpop.f32.mrf.mxu0 }
  0xd4   :  { %107 = vst.msk [vmem:[%s193_s3] sm:$0xff] %vm106_vm2, %v100_v8 }
  0xd5   :  { %v102_v10 = vpop.f32.mrf.mxu0 }
  0xd6   :  { %v103_v11 = vadd.f32 %v113_v6, %v102_v10 }
  0xd7   :  { %v136_v12 = vpop.f32.mrf.mxu0 }
  0xd8   :  { %108 = vst.msk [vmem:[%s193_s3 + $0x8] sm:$0xff] %vm106_vm2, %v103_v11 }

// kernel: audio_model_forward.34
= control target key start
LH: loop header
LB: loop body
LE: loop exit
PB: predicated region body
PF: predicated region fallthrough
CT: control target
= control target key end

     0   :  { %s800_s24 = smov 0   ;;  %s871_s0 = inlined_call_operand.vmem [shape: f32[8,2,96], index: 0, kind: input, shape index: {}]   ;;  %s872_s1 = inlined_call_operand.vmem [shape: f32[8,2,96], index: 1, kind: input, shape index: {}]   ;;  %s873_s2 = inlined_call_operand.vmem [shape: f32[32,96], index: 2, kind: input, shape index: {}]   ;;  %s874_s3 = inlined_call_operand.vmem [shape: f32[32,96], index: 3, kind: input, shape index: {}]   ;;  %s875_s4 = inlined_call_operand.vmem [shape: f32[1,32], index: 4, kind: input, shape index: {}]   ;;  %s876_s5 = inlined_call_operand.vmem [shape: f32[1,32], index: 5, kind: input, shape index: {}]   ;;  %s877_s6 = inlined_call_operand.vmem [shape: f32[8,2,32], index: 6, kind: output, shape index: {0}]   ;;  %s878_s7 = inlined_call_operand.vmem [shape: f32[8,2,32], index: 7, kind: output, shape index: {1}]  }
   0x1 LB: > { %s670_s25 = sadd.s32 4294967295, %s752_s24   ;;  %p674_p0 = scmp.ge.s32.totalorder %s752_s24, 1  ;;  %s752_s24 = sphi %s800_s24, %s18_s24  }
   0x2   : > { %p254_p1 = scmp.lt.s32.totalorder %s752_s24, 9 }
   0x4   : > { %p255_p2 = pnand %p674_p0, %p254_p1 }
   0x5   : > { %p294_p3 = scmp.lt.s32.totalorder (!%p255_p2), %s670_s25, 7  ;;  %s298_s26 = ssub.s32 (!%p255_p2), 7, %s670_s25 }
   0x6   : > { %258 = sbr.rel (%p255_p2) target bundleno = 710 (0x2c6), region = 44  ;;  %p299_p4 = scmp.lt.s32.totalorder (!%p255_p2), %s298_s26, 7 }
   0x7   : > { %p679_p5 = scmp.ne.s32.totalorder (!%p255_p2), %s670_s25, 0 }
   0xb   : > { %s295_s27 = scalar_select %p294_p3, %s670_s25, 7 }
   0xc   : > { %s880_s26 = smov (!%p299_p4, %s298_s26), 7  ;;  %317 = sbr.rel (%p679_p5) target bundleno = 19 (0x13), region = 48 }
   0xd   : > { %s675_s28 = sshll.u32 %s295_s27, 1  ;;  %s676_s9 = sshll.u32 %s880_s26, 1 }
   0xe   : > { %s811_s8 = scalar_lea.vmem %s871_s0, %s675_s28  ;;  %s816_s12 = scalar_lea.vmem %s872_s1, %s676_s9 }
   0xf   : > { %s821_s15 = scalar_lea.vmem %s877_s6, %s675_s28  ;;  %s826_s18 = scalar_lea.vmem %s878_s7, %s676_s9 }
  0x11   : > { %vm318_vm0 = vcmask 254976   ;;  %v754_v0 = vmov 0.0  }
  0x12   : > { %319 = vst.msk [vmem:[#allocation2] sm:$0x3] %vm318_vm0, %v754_v0  ;;  %320 = vst.msk [vmem:[#allocation3] sm:$0x3] %vm318_vm0, %v754_v0 }
  0x13 PF: > { %v325_v1 = vld [vmem:[%s873_s2 + $0x18] sm:$0xff]  ;;  %v755_v3 = vmov 0.0   ;;  %v324_v4 = vld [vmem:[%s873_s2 + $0x10] sm:$0xff]  ;;  %v323_v6 = vld [vmem:[%s873_s2 + $0x8] sm:$0xff]  ;;  %vm756_vm1 = vmmov 0   ;;  %vm326_vm2 = vcmask 261120  }
  0x14   : > { %v451_v2 = vld [vmem:[%s874_s3 + $0x18] sm:$0xff]  ;;  %698 = vmatprep.subr.mxu0 %v755_v3  ;;  %709 = vmatprep.subr.mxu1 %v755_v3  ;;  %v450_v5 = vld [vmem:[%s874_s3 + $0x10] sm:$0xff]  ;;  %v449_v7 = vld [vmem:[%s874_s3 + $0x8] sm:$0xff]  ;;  %s757_s19 = smov 64   ;;  %vm444_vm3 = vcmask 254976  }
  0x15   : > { %699 = vmatpush3.msra.mxu0 %v325_v1  ;;  %710 = vmatpush3.msra.mxu1 %v451_v2  ;;  %v322_v8 = vld [vmem:[%s873_s2] sm:$0xff] }
  0x16   : > { %700 = vmatprep.subr.mxu0 %v755_v3  ;;  %711 = vmatprep.subr.mxu1 %v755_v3  ;;  %v448_v10 = vld [vmem:[%s874_s3] sm:$0xff] }
  0x17   : > { %701 = vmatpush3.msra.mxu0 %v324_v4  ;;  %712 = vmatpush3.msra.mxu1 %v450_v5  ;;  %v682_v11 = vld [vmem:[%s875_s4] ss:$0 sm:$0xff] }
  0x18   : > { %702 = vmatprep.subr.mxu0 %v755_v3  ;;  %713 = vmatprep.subr.mxu1 %v755_v3  ;;  %v685_v13 = vld [vmem:[%s876_s5] ss:$0 sm:$0xff] }
  0x19   : > { %703 = vmatpush3.msra.mxu0 %v323_v6  ;;  %706 = vmatprep.mubr.msk.f32.mxu0 %vm756_vm1, %v755_v3  ;;  %v321_v9 = vld [vmem:[#allocation2] sm:$0x3]  ;;  %v447_v12 = vld [vmem:[#allocation3] sm:$0x3] }
  0x1a   : > { %704 = vmatprep.subr.mxu0 %v755_v3  ;;  %714 = vmatpush3.msra.mxu1 %v449_v7  ;;  %v400_v22 = vld [vmem:[%s811_s8] sm:$0x3]  ;;  %s758_s8 = smov 32  }
  0x1b   : > { %705 = vmatpush3.msra.mxu0 %v322_v8  ;;  %715 = vmatprep.subr.mxu1 %v755_v3  ;;  %v525_v24 = vld [vmem:[%s816_s12] sm:$0x3]  ;;  %s759_s12 = smov 96  }
  0x1c   : > { %707 = vmatmul.mubr.msk.f32.vlgmr.msra.gmra.mxu0 %vm326_vm2, %v321_v9  ;;  %716 = vmatpush3.msra.mxu1 %v448_v10 }
  0x1d   : > { %717 = vmatprep.mubr.msk.f32.mxu1 %vm756_vm1, %v755_v3  ;;  %414 = vrot.lane.b32.xlu0 %v682_v11, %s757_s19 }
  0x1e   : > { %718 = vmatmul.mubr.msk.f32.vlgmr.msra.gmra.mxu1 %vm326_vm2, %v447_v12 }
  0x21   : > { %539 = vrot.lane.b32.xlu0 %v685_v13, %s757_s19 }
  0x8f   : > { %v415_v14 = vpop.permute.xlu0 %414 }
  0x93   : > { %v540_v16 = vpop.permute.xlu0 %539 }
  0xdc   : > { %v396_v15 = vpop.f32.mrf.mxu0 }
  0xdd   : > { %v417_v17 = vadd.f32 %v415_v14, %v396_v15  ;;  %v401_v23 = vadd.f32 %v400_v22, %v396_v15 }
  0xde   : > { %v708_v18 = vpop.f32.mrf.mxu0  ;;  %v521_v19 = vpop.f32.mrf.mxu1 }
  0xdf   : > { %419 = vrot.lane.b32.xlu1 %v417_v17, %s757_s19  ;;  %v542_v20 = vadd.f32 %v540_v16, %v521_v19  ;;  %v681_v25 = vmul.f32 -1.442695, %v401_v23  ;;  %v526_v26 = vadd.f32 %v525_v24, %v521_v19 }
  0xe0   : > { %v719_v21 = vpop.f32.mrf.mxu1 }
  0xe1   : > { %734 = vpow2.f32 %v681_v25  ;;  %v684_v27 = vmul.f32 -1.442695, %v526_v26 }
  0xe3   : > { %544 = vrot.lane.b32.xlu1 %v542_v20, %s757_s19  ;;  %736 = vpow2.f32 %v684_v27 }
  0xee   : > { %v735_v28 = vpop.eup %734 }
  0xef   : > { %v405_v29 = vadd.f32 1.0, %v735_v28 }
  0xf0   : > { %v737_v30 = vpop.eup %736 }
  0xf1   : > { %738 = vrcp.f32 %v405_v29  ;;  %v530_v31 = vadd.f32 1.0, %v737_v30 }
  0xf3   : > { %740 = vrcp.f32 %v530_v31 }
  0xfe   : > { %v739_v32 = vpop.eup %738 }
  0xff   : > { %v429_v45 = vsub.f32 1.0, %v739_v32 }
 0x100   : > { %v741_v35 = vpop.eup %740 }
 0x101   : > { %v554_v51 = vsub.f32 1.0, %v741_v35 }
 0x151   : > { %v420_v33 = vpop.permute.xlu1 %419 }
 0x152   : > { %v422_v34 = vmul.f32 %v739_v32, %v420_v33 }
 0x154   : > { %424 = vrot.lane.b32.xlu0 %v422_v34, %s757_s19 }
 0x155   : > { %v545_v36 = vpop.permute.xlu1 %544 }
 0x156   : > { %v547_v37 = vmul.f32 %v741_v35, %v545_v36 }
 0x158   : > { %549 = vrot.lane.b32.xlu1 %v547_v37, %s757_s19 }
 0x15c   : > { %435 = vrot.lane.b32.xlu1 %v321_v9, %s758_s8 }
 0x160   : > { %560 = vrot.lane.b32.xlu1 %v447_v12, %s758_s8 }
 0x1c6   : > { %v425_v38 = vpop.permute.xlu0 %424 }
 0x1c7   : > { %v427_v39 = vadd.f32 %v425_v38, %v400_v22 }
 0x1c9   : > { %742 = vtanh.f32 %v427_v39 }
 0x1ca   : > { %v550_v40 = vpop.permute.xlu1 %549 }
 0x1cb   : > { %v552_v41 = vadd.f32 %v550_v40, %v525_v24 }
 0x1cd   : > { %744 = vtanh.f32 %v552_v41 }
 0x1ce   : > { %v436_v44 = vpop.permute.xlu1 %435 }
 0x1cf   : > { %v438_v47 = vmul.f32 %v739_v32, %v436_v44 }
 0x1d2   : > { %v561_v49 = vpop.permute.xlu1 %560 }
 0x1d3   : > { %v563_v53 = vmul.f32 %v741_v35, %v561_v49 }
 0x1d6   : > { %v743_v42 = vpop.eup %742 }
 0x1d7   : > { %431 = vrot.lane.b32.xlu0 %v743_v42, %s759_s12 }
 0x1da   : > { %v745_v43 = vpop.eup %744 }
 0x1db   : > { %556 = vrot.lane.b32.xlu0 %v745_v43, %s759_s12 }
 0x249   : > { %v432_v46 = vpop.permute.xlu0 %431 }
 0x24a   : > { %v434_v48 = vmul.f32 %v432_v46, %v429_v45 }
 0x24c   : > { %v439_v50 = vadd.f32 %v438_v47, %v434_v48 }
 0x24d   : > { %v557_v52 = vpop.permute.xlu0 %556 }
 0x24e   : > { %v559_v54 = vmul.f32 %v557_v52, %v554_v51  ;;  %441 = vrot.lane.b32.xlu0 %v439_v50, %s759_s12 }
 0x250   : > { %v564_v55 = vadd.f32 %v563_v53, %v559_v54 }
 0x252   : > { %566 = vrot.lane.b32.xlu1 %v564_v55, %s759_s12 }
 0x2c0   : > { %v442_v56 = vpop.permute.xlu0 %441 }
 0x2c1   : > { %445 = vst.msk [vmem:[#allocation2] sm:$0x3] %vm444_vm3, %v442_v56  ;;  %446 = vst.msk [vmem:[%s821_s15] sm:$0x3] %vm444_vm3, %v442_v56 }
 0x2c4   : > { %v567_v57 = vpop.permute.xlu1 %566 }
 0x2c5   : > { %569 = vst.msk [vmem:[#allocation3] sm:$0x3] %vm444_vm3, %v567_v57  ;;  %570 = vst.msk [vmem:[%s826_s18] sm:$0x3] %vm444_vm3, %v567_v57 }
 0x2c6 PF: > { %s18_s24 = sadd.s32 1, %s752_s24  }
 0x2c7   : > { %p15_p6 = scmp.ge.s32.totalorder %s18_s24, 10  }
 0x2c9   :  { %17 = sbr.rel (!%p15_p6) target bundleno = 1 (0x1), region = 93 }

// kernel: audio_model_forward.38
= control target key start
LH: loop header
LB: loop body
LE: loop exit
PB: predicated region body
PF: predicated region fallthrough
CT: control target
= control target key end

     0   :  { %s799_s24 = smov 0   ;;  %s876_s0 = inlined_call_operand.vmem [shape: f32[2,8,96], index: 0, kind: input, shape index: {}]   ;;  %s877_s1 = inlined_call_operand.vmem [shape: f32[2,8,96], index: 1, kind: input, shape index: {}]   ;;  %s878_s2 = inlined_call_operand.vmem [shape: f32[32,96], index: 2, kind: input, shape index: {}]   ;;  %s879_s3 = inlined_call_operand.vmem [shape: f32[32,96], index: 3, kind: input, shape index: {}]   ;;  %s880_s4 = inlined_call_operand.vmem [shape: f32[1,32], index: 4, kind: input, shape index: {}]   ;;  %s881_s5 = inlined_call_operand.vmem [shape: f32[1,32], index: 5, kind: input, shape index: {}]   ;;  %s882_s6 = inlined_call_operand.vmem [shape: f32[2,8,32], index: 6, kind: output, shape index: {0}]   ;;  %s883_s7 = inlined_call_operand.vmem [shape: f32[2,8,32], index: 7, kind: output, shape index: {1}]  }
   0x1 LB: > { %s669_s25 = sadd.s32 4294967295, %s751_s24   ;;  %p673_p0 = scmp.ge.s32.totalorder %s751_s24, 1  ;;  %s751_s24 = sphi %s799_s24, %s18_s24  }
   0x2   : > { %p254_p1 = scmp.lt.s32.totalorder %s751_s24, 3 }
   0x4   : > { %p255_p2 = pnand %p673_p0, %p254_p1 }
   0x5   : > { %p294_p3 = scmp.lt.s32.totalorder (!%p255_p2), %s669_s25, 1  ;;  %s298_s26 = ssub.s32 (!%p255_p2), 1, %s669_s25 }
   0x6   : > { %258 = sbr.rel (%p255_p2) target bundleno = 710 (0x2c6), region = 44  ;;  %p299_p4 = scmp.lt.s32.totalorder (!%p255_p2), %s298_s26, 1 }
   0x7   : > { %p678_p5 = scmp.ne.s32.totalorder (!%p255_p2), %s669_s25, 0 }
   0xb   : > { %s295_s27 = scalar_select %p294_p3, %s669_s25, 1 }
   0xc   : > { %s885_s26 = smov (!%p299_p4, %s298_s26), 1  ;;  %317 = sbr.rel (%p678_p5) target bundleno = 19 (0x13), region = 48 }
   0xd   : > { %s674_s28 = sshll.u32 %s295_s27, 3  ;;  %s675_s9 = sshll.u32 %s885_s26, 3 }
   0xe   : > { %s810_s8 = scalar_lea.vmem %s876_s0, %s674_s28  ;;  %s815_s12 = scalar_lea.vmem %s877_s1, %s675_s9 }
   0xf   : > { %s820_s15 = scalar_lea.vmem %s882_s6, %s674_s28  ;;  %s825_s18 = scalar_lea.vmem %s883_s7, %s675_s9 }
  0x11   : > { %vm318_vm0 = vcmask 261120   ;;  %v753_v0 = vmov 0.0  }
  0x12   : > { %319 = vst.msk [vmem:[#allocation2] sm:$0xff] %vm318_vm0, %v753_v0  ;;  %320 = vst.msk [vmem:[#allocation3] sm:$0xff] %vm318_vm0, %v753_v0 }
  0x13 PF: > { %v325_v1 = vld [vmem:[%s878_s2 + $0x18] sm:$0xff]  ;;  %v754_v3 = vmov 0.0   ;;  %v324_v4 = vld [vmem:[%s878_s2 + $0x10] sm:$0xff]  ;;  %v323_v6 = vld [vmem:[%s878_s2 + $0x8] sm:$0xff]  ;;  %vm755_vm1 = vmmov 0   ;;  %vm326_vm2 = vcmask 261120  }
  0x14   : > { %v450_v2 = vld [vmem:[%s879_s3 + $0x18] sm:$0xff]  ;;  %697 = vmatprep.subr.mxu0 %v754_v3  ;;  %708 = vmatprep.subr.mxu1 %v754_v3  ;;  %v449_v5 = vld [vmem:[%s879_s3 + $0x10] sm:$0xff]  ;;  %v448_v7 = vld [vmem:[%s879_s3 + $0x8] sm:$0xff]  ;;  %s756_s19 = smov 64  }
  0x15   : > { %698 = vmatpush3.msra.mxu0 %v325_v1  ;;  %709 = vmatpush3.msra.mxu1 %v450_v2  ;;  %v322_v8 = vld [vmem:[%s878_s2] sm:$0xff] }
  0x16   : > { %699 = vmatprep.subr.mxu0 %v754_v3  ;;  %710 = vmatprep.subr.mxu1 %v754_v3  ;;  %v447_v10 = vld [vmem:[%s879_s3] sm:$0xff] }
  0x17   : > { %700 = vmatpush3.msra.mxu0 %v324_v4  ;;  %711 = vmatpush3.msra.mxu1 %v449_v5  ;;  %v681_v11 = vld [vmem:[%s880_s4] ss:$0 sm:$0xff] }
  0x18   : > { %701 = vmatprep.subr.mxu0 %v754_v3  ;;  %712 = vmatprep.subr.mxu1 %v754_v3  ;;  %v684_v13 = vld [vmem:[%s881_s5] ss:$0 sm:$0xff] }
  0x19   : > { %702 = vmatpush3.msra.mxu0 %v323_v6  ;;  %705 = vmatprep.mubr.msk.f32.mxu0 %vm755_vm1, %v754_v3  ;;  %v321_v9 = vld [vmem:[#allocation2] sm:$0xff]  ;;  %v446_v12 = vld [vmem:[#allocation3] sm:$0xff] }
  0x1a   : > { %703 = vmatprep.subr.mxu0 %v754_v3  ;;  %713 = vmatpush3.msra.mxu1 %v448_v7  ;;  %v400_v22 = vld [vmem:[%s810_s8] sm:$0xff]  ;;  %s757_s8 = smov 32  }
  0x1b   : > { %704 = vmatpush3.msra.mxu0 %v322_v8  ;;  %714 = vmatprep.subr.mxu1 %v754_v3  ;;  %v524_v24 = vld [vmem:[%s815_s12] sm:$0xff]  ;;  %s758_s12 = smov 96  }
  0x1c   : > { %706 = vmatmul.mubr.msk.f32.vlgmr.msra.gmra.mxu0 %vm326_vm2, %v321_v9  ;;  %715 = vmatpush3.msra.mxu1 %v447_v10 }
  0x1d   : > { %716 = vmatprep.mubr.msk.f32.mxu1 %vm755_vm1, %v754_v3  ;;  %414 = vrot.lane.b32.xlu0 %v681_v11, %s756_s19 }
  0x1e   : > { %717 = vmatmul.mubr.msk.f32.vlgmr.msra.gmra.mxu1 %vm326_vm2, %v446_v12 }
  0x21   : > { %538 = vrot.lane.b32.xlu0 %v684_v13, %s756_s19 }
  0x8f   : > { %v415_v14 = vpop.permute.xlu0 %414 }
  0x93   : > { %v539_v16 = vpop.permute.xlu0 %538 }
  0xdc   : > { %v396_v15 = vpop.f32.mrf.mxu0 }
  0xdd   : > { %v417_v17 = vadd.f32 %v415_v14, %v396_v15  ;;  %v401_v23 = vadd.f32 %v400_v22, %v396_v15 }
  0xde   : > { %v707_v18 = vpop.f32.mrf.mxu0  ;;  %v520_v19 = vpop.f32.mrf.mxu1 }
  0xdf   : > { %419 = vrot.lane.b32.xlu1 %v417_v17, %s756_s19  ;;  %v541_v20 = vadd.f32 %v539_v16, %v520_v19  ;;  %v680_v25 = vmul.f32 -1.442695, %v401_v23  ;;  %v525_v26 = vadd.f32 %v524_v24, %v520_v19 }
  0xe0   : > { %v718_v21 = vpop.f32.mrf.mxu1 }
  0xe1   : > { %733 = vpow2.f32 %v680_v25  ;;  %v683_v27 = vmul.f32 -1.442695, %v525_v26 }
  0xe3   : > { %543 = vrot.lane.b32.xlu1 %v541_v20, %s756_s19  ;;  %735 = vpow2.f32 %v683_v27 }
  0xee   : > { %v734_v28 = vpop.eup %733 }
  0xef   : > { %v405_v29 = vadd.f32 1.0, %v734_v28 }
  0xf0   : > { %v736_v30 = vpop.eup %735 }
  0xf1   : > { %737 = vrcp.f32 %v405_v29  ;;  %v529_v31 = vadd.f32 1.0, %v736_v30 }
  0xf3   : > { %739 = vrcp.f32 %v529_v31 }
  0xfe   : > { %v738_v32 = vpop.eup %737 }
  0xff   : > { %v429_v45 = vsub.f32 1.0, %v738_v32 }
 0x100   : > { %v740_v35 = vpop.eup %739 }
 0x101   : > { %v553_v51 = vsub.f32 1.0, %v740_v35 }
 0x151   : > { %v420_v33 = vpop.permute.xlu1 %419 }
 0x152   : > { %v422_v34 = vmul.f32 %v738_v32, %v420_v33 }
 0x154   : > { %424 = vrot.lane.b32.xlu0 %v422_v34, %s756_s19 }
 0x155   : > { %v544_v36 = vpop.permute.xlu1 %543 }
 0x156   : > { %v546_v37 = vmul.f32 %v740_v35, %v544_v36 }
 0x158   : > { %548 = vrot.lane.b32.xlu1 %v546_v37, %s756_s19 }
 0x15c   : > { %435 = vrot.lane.b32.xlu1 %v321_v9, %s757_s8 }
 0x160   : > { %559 = vrot.lane.b32.xlu1 %v446_v12, %s757_s8 }
 0x1c6   : > { %v425_v38 = vpop.permute.xlu0 %424 }
 0x1c7   : > { %v427_v39 = vadd.f32 %v425_v38, %v400_v22 }
 0x1c9   : > { %741 = vtanh.f32 %v427_v39 }
 0x1ca   : > { %v549_v40 = vpop.permute.xlu1 %548 }
 0x1cb   : > { %v551_v41 = vadd.f32 %v549_v40, %v524_v24 }
 0x1cd   : > { %743 = vtanh.f32 %v551_v41 }
 0x1ce   : > { %v436_v44 = vpop.permute.xlu1 %435 }
 0x1cf   : > { %v438_v47 = vmul.f32 %v738_v32, %v436_v44 }
 0x1d2   : > { %v560_v49 = vpop.permute.xlu1 %559 }
 0x1d3   : > { %v562_v53 = vmul.f32 %v740_v35, %v560_v49 }
 0x1d6   : > { %v742_v42 = vpop.eup %741 }
 0x1d7   : > { %431 = vrot.lane.b32.xlu0 %v742_v42, %s758_s12 }
 0x1da   : > { %v744_v43 = vpop.eup %743 }
 0x1db   : > { %555 = vrot.lane.b32.xlu0 %v744_v43, %s758_s12 }
 0x249   : > { %v432_v46 = vpop.permute.xlu0 %431 }
 0x24a   : > { %v434_v48 = vmul.f32 %v432_v46, %v429_v45 }
 0x24c   : > { %v439_v50 = vadd.f32 %v438_v47, %v434_v48 }
 0x24d   : > { %v556_v52 = vpop.permute.xlu0 %555 }
 0x24e   : > { %v558_v54 = vmul.f32 %v556_v52, %v553_v51  ;;  %441 = vrot.lane.b32.xlu0 %v439_v50, %s758_s12 }
 0x250   : > { %v563_v55 = vadd.f32 %v562_v53, %v558_v54 }
 0x252   : > { %565 = vrot.lane.b32.xlu1 %v563_v55, %s758_s12 }
 0x2c0   : > { %v442_v56 = vpop.permute.xlu0 %441 }
 0x2c1   : > { %444 = vst.msk [vmem:[#allocation2] sm:$0xff] %vm326_vm2, %v442_v56  ;;  %445 = vst.msk [vmem:[%s820_s15] sm:$0xff] %vm326_vm2, %v442_v56 }
 0x2c4   : > { %v566_v57 = vpop.permute.xlu1 %565 }
 0x2c5   : > { %568 = vst.msk [vmem:[#allocation3] sm:$0xff] %vm326_vm2, %v566_v57  ;;  %569 = vst.msk [vmem:[%s825_s18] sm:$0xff] %vm326_vm2, %v566_v57 }
 0x2c6 PF: > { %s18_s24 = sadd.s32 1, %s751_s24  }
 0x2c7   : > { %p15_p6 = scmp.ge.s32.totalorder %s18_s24, 4  }
 0x2c9   :  { %17 = sbr.rel (!%p15_p6) target bundleno = 1 (0x1), region = 93 }

// kernel: audio_model_forward.40
= control target key start
LH: loop header
LB: loop body
LE: loop exit
PB: predicated region body
PF: predicated region fallthrough
CT: control target
= control target key end

     0   :  { %s204_s6 = smov 0   ;;  %s215_s0 = inlined_call_operand.vmem [shape: f32[2,8,32], index: 0, kind: input, shape index: {}]   ;;  %s216_s1 = inlined_call_operand.vmem [shape: f32[2,1,32], index: 1, kind: output, shape index: {}]  }
   0x1 LB: > { %s170_s7 = sadd.s32 4294967295, %s192_s6   ;;  %p174_p0 = scmp.ge.s32.totalorder %s192_s6, 1  ;;  %s192_s6 = sphi %s204_s6, %s11_s6  }
   0x2   : > { %p86_p1 = scmp.lt.s32.totalorder %s192_s6, 3 }
   0x4   : > { %p87_p2 = pnand %p174_p0, %p86_p1 }
   0x5   : > { %p103_p3 = scmp.lt.s32.totalorder (!%p87_p2), %s170_s7, 1 }
   0x6   : > { %90 = sbr.rel (%p87_p2) target bundleno = 31 (0x1f), region = 24 }
   0xb   : > { %s218_s7 = smov (!%p103_p3, %s170_s7), 1  ;;  %vm111_vm0 = vcmask 261120   ;;  %vm121_vm1 = vcmask 253952  }
   0xc   : > { %s175_s8 = sshll.u32 %s218_s7, 3  ;;  %s109_s14 = scalar_lea.vmem %s216_s1, %s218_s7 }
   0xd   : > { %s106_s11 = scalar_lea.vmem %s215_s0, %s175_s8 }
   0xe   : > { %v110_v0 = vld [vmem:[%s106_s11] sm:$0xff] }
   0xf   : > { %v112_v1 = vsel %vm111_vm0, %v110_v0, 0.0 }
  0x10   : > { %v113_v2 = vrot.slane %v112_v1, 4 }
  0x12   : > { %v114_v3 = vadd.f32 %v113_v2, %v112_v1 }
  0x14   : > { %v115_v4 = vrot.slane %v114_v3, 2 }
  0x16   : > { %v116_v5 = vadd.f32 %v115_v4, %v114_v3 }
  0x18   : > { %v117_v6 = vrot.slane %v116_v5, 1 }
  0x1a   : > { %v118_v7 = vadd.f32 %v117_v6, %v116_v5 }
  0x1c   : > { %v120_v8 = vmul.f32 0.125, %v118_v7 }
  0x1e   : > { %122 = vst.msk [vmem:[%s109_s14] sm:$0x1] %vm121_vm1, %v120_v8 }
  0x1f PF: > { %s11_s6 = sadd.s32 1, %s192_s6  }
  0x20   : > { %p8_p4 = scmp.ge.s32.totalorder %s11_s6, 4  }
  0x22   :  { %10 = sbr.rel (!%p8_p4) target bundleno = 1 (0x1), region = 54 }

// kernel: audio_model_forward.39
= control target key start
LH: loop header
LB: loop body
LE: loop exit
PB: predicated region body
PF: predicated region fallthrough
CT: control target
= control target key end

     0   :  { %v158_v0 = vmov 0.0   ;;  %vm159_vm0 = vmmov 0   ;;  %vm61_vm1 = vcmask 523264   ;;  %vm116_vm2 = vcmask 261120   ;;  %s204_s1 = inlined_call_operand.vmem [shape: bf16[64,32], index: 1, kind: input, shape index: {}]   ;;  %s205_s0 = inlined_call_operand.vmem [shape: bf16[16,64], index: 0, kind: input, shape index: {}]   ;;  %s206_s2 = inlined_call_operand.vmem [shape: f32[1,32], index: 2, kind: input, shape index: {}]   ;;  %s207_s3 = inlined_call_operand.vmem [shape: f32[16,32], index: 3, kind: output, shape index: {}]  }
   0x1   :  { %135 = vmatprep.subr.bf16.mxu0 %v158_v0  ;;  %v149_v1 = vld [vmem:[%s204_s1 + $0x18] sm:$0xff]   ;;  %143 = vmatprep.mubr.msk.bf16.mxu0 %vm159_vm0, %v158_v0  ;;  %v150_v2 = vld [vmem:[%s204_s1 + $0x10] sm:$0xff]   ;;  %v151_v3 = vld [vmem:[%s204_s1 + $0x8] sm:$0xff]  }
   0x2   :  { %136 = vmatpush3.bf16.msra.mxu0 %v149_v1  ;;  %v152_v4 = vld [vmem:[%s204_s1] sm:$0xff]  }
   0x3   :  { %137 = vmatprep.subr.bf16.mxu0 %v158_v0  ;;  %v153_v5 = vld [vmem:[%s205_s0] sm:$0xff]  }
   0x4   :  { %v123_v6 = vld [vmem:[%s206_s2] ss:$0 sm:$0xff] }
   0x6   :  { %138 = vmatpush3.bf16.msra.mxu0 %v150_v2 }
   0x7   :  { %139 = vmatprep.subr.bf16.mxu0 %v158_v0 }
   0xa   :  { %140 = vmatpush3.bf16.msra.mxu0 %v151_v3 }
   0xb   :  { %141 = vmatprep.subr.bf16.mxu0 %v158_v0 }
   0xe   :  { %142 = vmatpush3.bf16.msra.mxu0 %v152_v4 }
  0x11   :  { %144 = vmatmul.mubr.msk.bf16.vlgmr.msra.gmra.mxu0 %vm61_vm1, %v153_v5 }
  0xd1   :  { %v99_v7 = vpop.f32.mrf.mxu0 }
  0xd2   :  { %v100_v8 = vadd.f32 %v123_v6, %v99_v7 }
  0xd3   :  { %v145_v9 = vpop.f32.mrf.mxu0 }
  0xd4   :  { %v108_v10 = vmul.f32 0.70710677, %v100_v8  ;;  %v106_v16 = vmul.f32 0.5, %v100_v8 }
  0xd5   :  { %v102_v11 = vpop.f32.mrf.mxu0 }
  0xd6   :  { %154 = verf.f32 %v108_v10  ;;  %v103_v12 = vadd.f32 %v123_v6, %v102_v11 }
  0xd7   :  { %v146_v13 = vpop.f32.mrf.mxu0 }
  0xd8   :  { %v109_v14 = vmul.f32 0.70710677, %v103_v12  ;;  %v107_v20 = vmul.f32 0.5, %v103_v12 }
  0xda   :  { %156 = verf.f32 %v109_v14 }
  0xe3   :  { %v155_v15 = vpop.eup %154 }
  0xe4   :  { %v112_v17 = vadd.f32 1.0, %v155_v15 }
  0xe6   :  { %v114_v18 = vmul.f32 %v112_v17, %v106_v16 }
  0xe7   :  { %v157_v19 = vpop.eup %156 }
  0xe8   :  { %117 = vst.msk [vmem:[%s207_s3] sm:$0xff] %vm116_vm2, %v114_v18  ;;  %v113_v21 = vadd.f32 1.0, %v157_v19 }
  0xea   :  { %v115_v22 = vmul.f32 %v113_v21, %v107_v20 }
  0xec   :  { %118 = vst.msk [vmem:[%s207_s3 + $0x8] sm:$0xff] %vm116_vm2, %v115_v22 }

// kernel: audio_model_forward.41
= control target key start
LH: loop header
LB: loop body
LE: loop exit
PB: predicated region body
PF: predicated region fallthrough
CT: control target
= control target key end

     0   :  { %v108_v0 = vmov 0.0   ;;  %vm109_vm0 = vmmov 0   ;;  %vm39_vm1 = vcmask 261120   ;;  %vm83_vm2 = vcmask 130048   ;;  %s145_s1 = inlined_call_operand.vmem [shape: bf16[32,16], index: 1, kind: input, shape index: {}]   ;;  %s146_s0 = inlined_call_operand.vmem [shape: bf16[8,32], index: 0, kind: input, shape index: {}]   ;;  %s147_s2 = inlined_call_operand.vmem [shape: f32[1,16], index: 2, kind: input, shape index: {}]   ;;  %s148_s3 = inlined_call_operand.vmem [shape: f32[8,16], index: 3, kind: output, shape index: {}]  }
   0x1   :  { %96 = vmatprep.subr.bf16.mxu0 %v108_v0  ;;  %v106_v1 = vld [vmem:[%s145_s1 + $0x8] sm:$0xff]   ;;  %100 = vmatprep.mubr.msk.bf16.mxu0 %vm109_vm0, %v108_v0  ;;  %v107_v2 = vld [vmem:[%s145_s1] sm:$0xff]  }
   0x2   :  { %97 = vmatpush3.bf16.msra.mxu0 %v106_v1  ;;  %v15_v3 = vld [vmem:[%s146_s0] sm:$0xf] }
   0x3   :  { %98 = vmatprep.subr.bf16.mxu0 %v108_v0  ;;  %v89_v4 = vld [vmem:[%s147_s2] ss:$0 sm:$0xff] }
   0x6   :  { %99 = vmatpush3.bf16.msra.mxu0 %v107_v2 }
   0x9   :  { %101 = vmatmul.mubr.msk.bf16.vlgmr.msra.gmra.mxu0 %vm39_vm1, %v15_v3 }
  0xc9   :  { %v77_v5 = vpop.f32.mrf.mxu0 }
  0xca   :  { %v78_v6 = vadd.f32 %v89_v4, %v77_v5 }
  0xcb   :  { %v102_v7 = vpop.f32.mrf.mxu0 }
  0xcc   :  { %84 = vst.msk [vmem:[%s148_s3] sm:$0xff] %vm83_vm2, %v78_v6 }
  0xcd   :  { %v80_v8 = vpop.f32.mrf.mxu0 }
  0xcf   :  { %v103_v9 = vpop.f32.mrf.mxu0 }

</bundles_post_ra>
